<compile_context>
chip_gen: v7x
topology: tpu7x:2x2x1
jax: 0.10.0
libtpu: 0.0.40
codegen_flags: <defaults>
</compile_context>

<pallas_src>
import numpy as np

import jax
import jax.numpy as jnp
from jax.experimental import pallas as pl
from jax.experimental.pallas import tpu as pltpu

_EPS = 1e-14


# ----------------------------- window boundaries ------------------------------
def _windows(in_size, out_size):
    """Static adaptive-pooling window boundaries (same floor/ceil as the torch code)."""
    stride = in_size / out_size
    return tuple(
        (int(np.floor(i * stride)), int(np.ceil((i + 1) * stride)))
        for i in range(out_size)
    )


# ------------------------------ Pallas kernel ---------------------------------
def _make_kernel(row_windows, col_windows):
    """Build the kernel for a fixed (static) set of row/column windows.

    Tile layout (lane-dense, batch folded into lanes):
      x_ref : (H, W, L)          activation tile
      o_ref : (out_h, out_w, L)  pooled output tile
    """

    def kernel(x_ref, o_ref):
        for o, (ys, ye) in enumerate(row_windows):
            ln = float(ye - ys)
            # ---- pass 1: per-column window mean (exact f32 VPU adds) ----
            acc = x_ref[ys].astype(jnp.float32)                    # (W, L)
            for hh in range(ys + 1, ye):
                acc = acc + x_ref[hh].astype(jnp.float32)
            mean = acc / ln
            # ---- pass 2: centered sum of squared deviations (biased var) ----
            d = x_ref[ys].astype(jnp.float32) - mean
            sq = d * d
            for hh in range(ys + 1, ye):
                d = x_ref[hh].astype(jnp.float32) - mean
                sq = sq + d * d
            std = jnp.sqrt(sq / ln + _EPS)                         # (W, L)
            # ---- sum the per-column stds over each adaptive column bin ----
            for q, (xs, xe) in enumerate(col_windows):
                col = jnp.sum(std[xs:xe, :], axis=0)               # (L,)
                o_ref[o, q, :] = col.astype(o_ref.dtype)

    return kernel


# ---------------------------------- wrapper ------------------------------------
def adaptive_std_pool2d(x_nchw, output_size, *, batch_lanes=1024):
    """AdaptiveStdPooling2d.forward.  x_nchw: (N, C, H, W) -> (N, C, out_h, out_w)."""
    n, c, h, w = x_nchw.shape
    out_h = output_size[0] if output_size[0] is not None else h
    out_w = output_size[1] if output_size[1] is not None else w
    row_windows = _windows(h, out_h)
    col_windows = _windows(w, out_w)

    b = n * c
    itemsize = jnp.dtype(x_nchw.dtype).itemsize
    # Lane tile: multiple of 128, sized so the double-buffered input block stays
    # <= ~8 MiB (well inside v5e's 16 MiB and v7x's 32 MiB scoped-VMEM defaults).
    budget = 8 * 1024 * 1024
    max_lanes = max(128, (budget // (2 * h * w * itemsize)) // 128 * 128)
    lane_tile = int(min(max(128, (batch_lanes // 128) * 128), max_lanes))
    b_pad = ((b + lane_tile - 1) // lane_tile) * lane_tile

    # Channels-last, lane-dense layout: (B, H, W) -> (H, W, B); pad B for lanes.
    # Zero padding is harmless: padded slices never reach the real output.
    xt = jnp.transpose(x_nchw.reshape(b, h, w), (1, 2, 0))
    if b_pad != b:
        xt = jnp.pad(xt, ((0, 0), (0, 0), (0, b_pad - b)))

    out = pl.pallas_call(
        _make_kernel(row_windows, col_windows),
        out_shape=jax.ShapeDtypeStruct((out_h, out_w, b_pad), x_nchw.dtype),
        grid_spec=pltpu.PrefetchScalarGridSpec(
            num_scalar_prefetch=0,
            grid=(b_pad // lane_tile,),
            in_specs=[pl.BlockSpec((h, w, lane_tile), lambda i: (0, 0, i))],
            out_specs=pl.BlockSpec((out_h, out_w, lane_tile),
                                   lambda i: (0, 0, i)),
        ),
        compiler_params=pltpu.CompilerParams(
            dimension_semantics=("parallel",)),
    )(xt)

    out = out[:, :, :b]                                  # drop lane padding
    return jnp.transpose(out, (2, 0, 1)).reshape(n, c, out_h, out_w)


# ----------------------------- pure-JAX reference ------------------------------
def _ref_adaptive_std_pool(x, output_size):
    n, c, h, w = x.shape
    out_h = output_size[0] if output_size[0] is not None else h
    out_w = output_size[1] if output_size[1] is not None else w
    x_stride = w / out_w
    y_stride = h / out_h
    cols = []
    for x_idx in range(out_w):
        xs = int(np.floor(x_idx * x_stride))
        xe = int(np.ceil((x_idx + 1) * x_stride))
        rows = []
        for y_idx in range(out_h):
            ys = int(np.floor(y_idx * y_stride))
            ye = int(np.ceil((y_idx + 1) * y_stride))
            win = x[:, :, ys:ye, xs:xe]
            var = jnp.var(win, axis=2, keepdims=True)       # biased (ddof=0)
            std = jnp.sqrt(var + _EPS)
            rows.append(jnp.sum(std, axis=3, keepdims=True))
        cols.append(jnp.concatenate(rows, axis=2))
    return jnp.concatenate(cols, axis=3)


# ------------------------------------ main -------------------------------------
if __name__ == "__main__":
    key = jax.random.PRNGKey(0)
    x = jax.random.normal(key, (2, 4, 16, 16), jnp.float32)   # (N, C, H, W)

    # Exercise even, non-integer (overlapping windows), and None output sizes.
    for out_size in [(4, 4), (3, 5), (None, 4)]:
        got = jax.block_until_ready(adaptive_std_pool2d(x, out_size))
        ref = jax.block_until_ready(_ref_adaptive_std_pool(x, out_size))
        np.testing.assert_allclose(np.asarray(got), np.asarray(ref),
                                   rtol=1e-4, atol=1e-4)

    print("KERNEL_OK")
</pallas_src>

<mosaic_0001>
module attributes {stable_mosaic.version = 11 : i64} {
  func.func @kernel(%arg0: i32, %arg1: memref<16x16x1024xf32, #tpu.memory_space<vmem>>, %arg2: memref<4x4x1024xf32, #tpu.memory_space<vmem>>) attributes {dimension_semantics = [#tpu.dimension_semantics<parallel>], iteration_bounds = array<i64: 1>, scalar_prefetch = 0 : i64, scratch_operands = 0 : i64, tpu.core_type = #tpu.core_type<tc>, window_params = [{transform_indices = @transform_0, window_bounds = array<i64: 16, 16, 1024>}, {transform_indices = @transform_1, window_bounds = array<i64: 4, 4, 1024>}]} {
    %c0 = arith.constant 0 : index
    %c0_0 = arith.constant 0 : index
    %c0_1 = arith.constant 0 : index
    %0 = vector.load %arg1[%c0, %c0_0, %c0_1] : memref<16x16x1024xf32, #tpu.memory_space<vmem>>, vector<1x16x1024xf32>
    %1 = vector.shape_cast %0 : vector<1x16x1024xf32> to vector<16x1024xf32>
    %c1 = arith.constant 1 : index
    %c0_2 = arith.constant 0 : index
    %c0_3 = arith.constant 0 : index
    %2 = vector.load %arg1[%c1, %c0_2, %c0_3] : memref<16x16x1024xf32, #tpu.memory_space<vmem>>, vector<1x16x1024xf32>
    %3 = vector.shape_cast %2 : vector<1x16x1024xf32> to vector<16x1024xf32>
    %4 = arith.addf %1, %3 : vector<16x1024xf32>
    %c2 = arith.constant 2 : index
    %c0_4 = arith.constant 0 : index
    %c0_5 = arith.constant 0 : index
    %5 = vector.load %arg1[%c2, %c0_4, %c0_5] : memref<16x16x1024xf32, #tpu.memory_space<vmem>>, vector<1x16x1024xf32>
    %6 = vector.shape_cast %5 : vector<1x16x1024xf32> to vector<16x1024xf32>
    %7 = arith.addf %4, %6 : vector<16x1024xf32>
    %c3 = arith.constant 3 : index
    %c0_6 = arith.constant 0 : index
    %c0_7 = arith.constant 0 : index
    %8 = vector.load %arg1[%c3, %c0_6, %c0_7] : memref<16x16x1024xf32, #tpu.memory_space<vmem>>, vector<1x16x1024xf32>
    %9 = vector.shape_cast %8 : vector<1x16x1024xf32> to vector<16x1024xf32>
    %10 = arith.addf %7, %9 : vector<16x1024xf32>
    %cst = arith.constant 4.000000e+00 : f32
    %11 = vector.broadcast %cst : f32 to vector<16x1024xf32>
    %12 = arith.divf %10, %11 : vector<16x1024xf32>
    %c0_8 = arith.constant 0 : index
    %c0_9 = arith.constant 0 : index
    %c0_10 = arith.constant 0 : index
    %13 = vector.load %arg1[%c0_8, %c0_9, %c0_10] : memref<16x16x1024xf32, #tpu.memory_space<vmem>>, vector<1x16x1024xf32>
    %14 = vector.shape_cast %13 : vector<1x16x1024xf32> to vector<16x1024xf32>
    %15 = arith.subf %14, %12 : vector<16x1024xf32>
    %16 = arith.mulf %15, %15 : vector<16x1024xf32>
    %c1_11 = arith.constant 1 : index
    %c0_12 = arith.constant 0 : index
    %c0_13 = arith.constant 0 : index
    %17 = vector.load %arg1[%c1_11, %c0_12, %c0_13] : memref<16x16x1024xf32, #tpu.memory_space<vmem>>, vector<1x16x1024xf32>
    %18 = vector.shape_cast %17 : vector<1x16x1024xf32> to vector<16x1024xf32>
    %19 = arith.subf %18, %12 : vector<16x1024xf32>
    %20 = arith.mulf %19, %19 : vector<16x1024xf32>
    %21 = arith.addf %16, %20 : vector<16x1024xf32>
    %c2_14 = arith.constant 2 : index
    %c0_15 = arith.constant 0 : index
    %c0_16 = arith.constant 0 : index
    %22 = vector.load %arg1[%c2_14, %c0_15, %c0_16] : memref<16x16x1024xf32, #tpu.memory_space<vmem>>, vector<1x16x1024xf32>
    %23 = vector.shape_cast %22 : vector<1x16x1024xf32> to vector<16x1024xf32>
    %24 = arith.subf %23, %12 : vector<16x1024xf32>
    %25 = arith.mulf %24, %24 : vector<16x1024xf32>
    %26 = arith.addf %21, %25 : vector<16x1024xf32>
    %c3_17 = arith.constant 3 : index
    %c0_18 = arith.constant 0 : index
    %c0_19 = arith.constant 0 : index
    %27 = vector.load %arg1[%c3_17, %c0_18, %c0_19] : memref<16x16x1024xf32, #tpu.memory_space<vmem>>, vector<1x16x1024xf32>
    %28 = vector.shape_cast %27 : vector<1x16x1024xf32> to vector<16x1024xf32>
    %29 = arith.subf %28, %12 : vector<16x1024xf32>
    %30 = arith.mulf %29, %29 : vector<16x1024xf32>
    %31 = arith.addf %26, %30 : vector<16x1024xf32>
    %cst_20 = arith.constant 4.000000e+00 : f32
    %32 = vector.broadcast %cst_20 : f32 to vector<16x1024xf32>
    %33 = arith.divf %31, %32 : vector<16x1024xf32>
    %cst_21 = arith.constant 9.99999982E-15 : f32
    %34 = vector.broadcast %cst_21 : f32 to vector<16x1024xf32>
    %35 = arith.addf %33, %34 : vector<16x1024xf32>
    %36 = math.sqrt %35 : vector<16x1024xf32>
    %37 = vector.extract_strided_slice %36 {offsets = [0, 0], sizes = [4, 1024], strides = [1, 1]} : vector<16x1024xf32> to vector<4x1024xf32>
    %cst_22 = arith.constant dense<0.000000e+00> : vector<1024xf32>
    %38 = vector.multi_reduction <add>, %37, %cst_22 [0] : vector<4x1024xf32> to vector<1024xf32>
    %c0_23 = arith.constant 0 : index
    %c0_24 = arith.constant 0 : index
    %c0_25 = arith.constant 0 : index
    %39 = vector.load %arg2[%c0_23, %c0_24, %c0_25] : memref<4x4x1024xf32, #tpu.memory_space<vmem>>, vector<1x1x1024xf32>
    %40 = vector.shape_cast %39 : vector<1x1x1024xf32> to vector<1024xf32>
    %41 = vector.shape_cast %38 : vector<1024xf32> to vector<1x1x1024xf32>
    tpu.vector_store %arg2[%c0_23, %c0_24, %c0_25], %41 {strides = array<i32>} : memref<4x4x1024xf32, #tpu.memory_space<vmem>>, vector<1x1x1024xf32>,
    %42 = vector.extract_strided_slice %36 {offsets = [4, 0], sizes = [4, 1024], strides = [1, 1]} : vector<16x1024xf32> to vector<4x1024xf32>
    %cst_26 = arith.constant dense<0.000000e+00> : vector<1024xf32>
    %43 = vector.multi_reduction <add>, %42, %cst_26 [0] : vector<4x1024xf32> to vector<1024xf32>
    %c0_27 = arith.constant 0 : index
    %c1_28 = arith.constant 1 : index
    %c0_29 = arith.constant 0 : index
    %44 = vector.load %arg2[%c0_27, %c1_28, %c0_29] : memref<4x4x1024xf32, #tpu.memory_space<vmem>>, vector<1x1x1024xf32>
    %45 = vector.shape_cast %44 : vector<1x1x1024xf32> to vector<1024xf32>
    %46 = vector.shape_cast %43 : vector<1024xf32> to vector<1x1x1024xf32>
    tpu.vector_store %arg2[%c0_27, %c1_28, %c0_29], %46 {strides = array<i32>} : memref<4x4x1024xf32, #tpu.memory_space<vmem>>, vector<1x1x1024xf32>,
    %47 = vector.extract_strided_slice %36 {offsets = [8, 0], sizes = [4, 1024], strides = [1, 1]} : vector<16x1024xf32> to vector<4x1024xf32>
    %cst_30 = arith.constant dense<0.000000e+00> : vector<1024xf32>
    %48 = vector.multi_reduction <add>, %47, %cst_30 [0] : vector<4x1024xf32> to vector<1024xf32>
    %c0_31 = arith.constant 0 : index
    %c2_32 = arith.constant 2 : index
    %c0_33 = arith.constant 0 : index
    %49 = vector.load %arg2[%c0_31, %c2_32, %c0_33] : memref<4x4x1024xf32, #tpu.memory_space<vmem>>, vector<1x1x1024xf32>
    %50 = vector.shape_cast %49 : vector<1x1x1024xf32> to vector<1024xf32>
    %51 = vector.shape_cast %48 : vector<1024xf32> to vector<1x1x1024xf32>
    tpu.vector_store %arg2[%c0_31, %c2_32, %c0_33], %51 {strides = array<i32>} : memref<4x4x1024xf32, #tpu.memory_space<vmem>>, vector<1x1x1024xf32>,
    %52 = vector.extract_strided_slice %36 {offsets = [12, 0], sizes = [4, 1024], strides = [1, 1]} : vector<16x1024xf32> to vector<4x1024xf32>
    %cst_34 = arith.constant dense<0.000000e+00> : vector<1024xf32>
    %53 = vector.multi_reduction <add>, %52, %cst_34 [0] : vector<4x1024xf32> to vector<1024xf32>
    %c0_35 = arith.constant 0 : index
    %c3_36 = arith.constant 3 : index
    %c0_37 = arith.constant 0 : index
    %54 = vector.load %arg2[%c0_35, %c3_36, %c0_37] : memref<4x4x1024xf32, #tpu.memory_space<vmem>>, vector<1x1x1024xf32>
    %55 = vector.shape_cast %54 : vector<1x1x1024xf32> to vector<1024xf32>
    %56 = vector.shape_cast %53 : vector<1024xf32> to vector<1x1x1024xf32>
    tpu.vector_store %arg2[%c0_35, %c3_36, %c0_37], %56 {strides = array<i32>} : memref<4x4x1024xf32, #tpu.memory_space<vmem>>, vector<1x1x1024xf32>,
    %c4 = arith.constant 4 : index
    %c0_38 = arith.constant 0 : index
    %c0_39 = arith.constant 0 : index
    %57 = vector.load %arg1[%c4, %c0_38, %c0_39] : memref<16x16x1024xf32, #tpu.memory_space<vmem>>, vector<1x16x1024xf32>
    %58 = vector.shape_cast %57 : vector<1x16x1024xf32> to vector<16x1024xf32>
    %c5 = arith.constant 5 : index
    %c0_40 = arith.constant 0 : index
    %c0_41 = arith.constant 0 : index
    %59 = vector.load %arg1[%c5, %c0_40, %c0_41] : memref<16x16x1024xf32, #tpu.memory_space<vmem>>, vector<1x16x1024xf32>
    %60 = vector.shape_cast %59 : vector<1x16x1024xf32> to vector<16x1024xf32>
    %61 = arith.addf %58, %60 : vector<16x1024xf32>
    %c6 = arith.constant 6 : index
    %c0_42 = arith.constant 0 : index
    %c0_43 = arith.constant 0 : index
    %62 = vector.load %arg1[%c6, %c0_42, %c0_43] : memref<16x16x1024xf32, #tpu.memory_space<vmem>>, vector<1x16x1024xf32>
    %63 = vector.shape_cast %62 : vector<1x16x1024xf32> to vector<16x1024xf32>
    %64 = arith.addf %61, %63 : vector<16x1024xf32>
    %c7 = arith.constant 7 : index
    %c0_44 = arith.constant 0 : index
    %c0_45 = arith.constant 0 : index
    %65 = vector.load %arg1[%c7, %c0_44, %c0_45] : memref<16x16x1024xf32, #tpu.memory_space<vmem>>, vector<1x16x1024xf32>
    %66 = vector.shape_cast %65 : vector<1x16x1024xf32> to vector<16x1024xf32>
    %67 = arith.addf %64, %66 : vector<16x1024xf32>
    %cst_46 = arith.constant 4.000000e+00 : f32
    %68 = vector.broadcast %cst_46 : f32 to vector<16x1024xf32>
    %69 = arith.divf %67, %68 : vector<16x1024xf32>
    %c4_47 = arith.constant 4 : index
    %c0_48 = arith.constant 0 : index
    %c0_49 = arith.constant 0 : index
    %70 = vector.load %arg1[%c4_47, %c0_48, %c0_49] : memref<16x16x1024xf32, #tpu.memory_space<vmem>>, vector<1x16x1024xf32>
    %71 = vector.shape_cast %70 : vector<1x16x1024xf32> to vector<16x1024xf32>
    %72 = arith.subf %71, %69 : vector<16x1024xf32>
    %73 = arith.mulf %72, %72 : vector<16x1024xf32>
    %c5_50 = arith.constant 5 : index
    %c0_51 = arith.constant 0 : index
    %c0_52 = arith.constant 0 : index
    %74 = vector.load %arg1[%c5_50, %c0_51, %c0_52] : memref<16x16x1024xf32, #tpu.memory_space<vmem>>, vector<1x16x1024xf32>
    %75 = vector.shape_cast %74 : vector<1x16x1024xf32> to vector<16x1024xf32>
    %76 = arith.subf %75, %69 : vector<16x1024xf32>
    %77 = arith.mulf %76, %76 : vector<16x1024xf32>
    %78 = arith.addf %73, %77 : vector<16x1024xf32>
    %c6_53 = arith.constant 6 : index
    %c0_54 = arith.constant 0 : index
    %c0_55 = arith.constant 0 : index
    %79 = vector.load %arg1[%c6_53, %c0_54, %c0_55] : memref<16x16x1024xf32, #tpu.memory_space<vmem>>, vector<1x16x1024xf32>
    %80 = vector.shape_cast %79 : vector<1x16x1024xf32> to vector<16x1024xf32>
    %81 = arith.subf %80, %69 : vector<16x1024xf32>
    %82 = arith.mulf %81, %81 : vector<16x1024xf32>
    %83 = arith.addf %78, %82 : vector<16x1024xf32>
    %c7_56 = arith.constant 7 : index
    %c0_57 = arith.constant 0 : index
    %c0_58 = arith.constant 0 : index
    %84 = vector.load %arg1[%c7_56, %c0_57, %c0_58] : memref<16x16x1024xf32, #tpu.memory_space<vmem>>, vector<1x16x1024xf32>
    %85 = vector.shape_cast %84 : vector<1x16x1024xf32> to vector<16x1024xf32>
    %86 = arith.subf %85, %69 : vector<16x1024xf32>
    %87 = arith.mulf %86, %86 : vector<16x1024xf32>
    %88 = arith.addf %83, %87 : vector<16x1024xf32>
    %cst_59 = arith.constant 4.000000e+00 : f32
    %89 = vector.broadcast %cst_59 : f32 to vector<16x1024xf32>
    %90 = arith.divf %88, %89 : vector<16x1024xf32>
    %cst_60 = arith.constant 9.99999982E-15 : f32
    %91 = vector.broadcast %cst_60 : f32 to vector<16x1024xf32>
    %92 = arith.addf %90, %91 : vector<16x1024xf32>
    %93 = math.sqrt %92 : vector<16x1024xf32>
    %94 = vector.extract_strided_slice %93 {offsets = [0, 0], sizes = [4, 1024], strides = [1, 1]} : vector<16x1024xf32> to vector<4x1024xf32>
    %cst_61 = arith.constant dense<0.000000e+00> : vector<1024xf32>
    %95 = vector.multi_reduction <add>, %94, %cst_61 [0] : vector<4x1024xf32> to vector<1024xf32>
    %c1_62 = arith.constant 1 : index
    %c0_63 = arith.constant 0 : index
    %c0_64 = arith.constant 0 : index
    %96 = vector.load %arg2[%c1_62, %c0_63, %c0_64] : memref<4x4x1024xf32, #tpu.memory_space<vmem>>, vector<1x1x1024xf32>
    %97 = vector.shape_cast %96 : vector<1x1x1024xf32> to vector<1024xf32>
    %98 = vector.shape_cast %95 : vector<1024xf32> to vector<1x1x1024xf32>
    tpu.vector_store %arg2[%c1_62, %c0_63, %c0_64], %98 {strides = array<i32>} : memref<4x4x1024xf32, #tpu.memory_space<vmem>>, vector<1x1x1024xf32>,
    %99 = vector.extract_strided_slice %93 {offsets = [4, 0], sizes = [4, 1024], strides = [1, 1]} : vector<16x1024xf32> to vector<4x1024xf32>
    %cst_65 = arith.constant dense<0.000000e+00> : vector<1024xf32>
    %100 = vector.multi_reduction <add>, %99, %cst_65 [0] : vector<4x1024xf32> to vector<1024xf32>
    %c1_66 = arith.constant 1 : index
    %c1_67 = arith.constant 1 : index
    %c0_68 = arith.constant 0 : index
    %101 = vector.load %arg2[%c1_66, %c1_67, %c0_68] : memref<4x4x1024xf32, #tpu.memory_space<vmem>>, vector<1x1x1024xf32>
    %102 = vector.shape_cast %101 : vector<1x1x1024xf32> to vector<1024xf32>
    %103 = vector.shape_cast %100 : vector<1024xf32> to vector<1x1x1024xf32>
    tpu.vector_store %arg2[%c1_66, %c1_67, %c0_68], %103 {strides = array<i32>} : memref<4x4x1024xf32, #tpu.memory_space<vmem>>, vector<1x1x1024xf32>,
    %104 = vector.extract_strided_slice %93 {offsets = [8, 0], sizes = [4, 1024], strides = [1, 1]} : vector<16x1024xf32> to vector<4x1024xf32>
    %cst_69 = arith.constant dense<0.000000e+00> : vector<1024xf32>
    %105 = vector.multi_reduction <add>, %104, %cst_69 [0] : vector<4x1024xf32> to vector<1024xf32>
    %c1_70 = arith.constant 1 : index
    %c2_71 = arith.constant 2 : index
    %c0_72 = arith.constant 0 : index
    %106 = vector.load %arg2[%c1_70, %c2_71, %c0_72] : memref<4x4x1024xf32, #tpu.memory_space<vmem>>, vector<1x1x1024xf32>
    %107 = vector.shape_cast %106 : vector<1x1x1024xf32> to vector<1024xf32>
    %108 = vector.shape_cast %105 : vector<1024xf32> to vector<1x1x1024xf32>
    tpu.vector_store %arg2[%c1_70, %c2_71, %c0_72], %108 {strides = array<i32>} : memref<4x4x1024xf32, #tpu.memory_space<vmem>>, vector<1x1x1024xf32>,
    %109 = vector.extract_strided_slice %93 {offsets = [12, 0], sizes = [4, 1024], strides = [1, 1]} : vector<16x1024xf32> to vector<4x1024xf32>
    %cst_73 = arith.constant dense<0.000000e+00> : vector<1024xf32>
    %110 = vector.multi_reduction <add>, %109, %cst_73 [0] : vector<4x1024xf32> to vector<1024xf32>
    %c1_74 = arith.constant 1 : index
    %c3_75 = arith.constant 3 : index
    %c0_76 = arith.constant 0 : index
    %111 = vector.load %arg2[%c1_74, %c3_75, %c0_76] : memref<4x4x1024xf32, #tpu.memory_space<vmem>>, vector<1x1x1024xf32>
    %112 = vector.shape_cast %111 : vector<1x1x1024xf32> to vector<1024xf32>
    %113 = vector.shape_cast %110 : vector<1024xf32> to vector<1x1x1024xf32>
    tpu.vector_store %arg2[%c1_74, %c3_75, %c0_76], %113 {strides = array<i32>} : memref<4x4x1024xf32, #tpu.memory_space<vmem>>, vector<1x1x1024xf32>,
    %c8 = arith.constant 8 : index
    %c0_77 = arith.constant 0 : index
    %c0_78 = arith.constant 0 : index
    %114 = vector.load %arg1[%c8, %c0_77, %c0_78] : memref<16x16x1024xf32, #tpu.memory_space<vmem>>, vector<1x16x1024xf32>
    %115 = vector.shape_cast %114 : vector<1x16x1024xf32> to vector<16x1024xf32>
    %c9 = arith.constant 9 : index
    %c0_79 = arith.constant 0 : index
    %c0_80 = arith.constant 0 : index
    %116 = vector.load %arg1[%c9, %c0_79, %c0_80] : memref<16x16x1024xf32, #tpu.memory_space<vmem>>, vector<1x16x1024xf32>
    %117 = vector.shape_cast %116 : vector<1x16x1024xf32> to vector<16x1024xf32>
    %118 = arith.addf %115, %117 : vector<16x1024xf32>
    %c10 = arith.constant 10 : index
    %c0_81 = arith.constant 0 : index
    %c0_82 = arith.constant 0 : index
    %119 = vector.load %arg1[%c10, %c0_81, %c0_82] : memref<16x16x1024xf32, #tpu.memory_space<vmem>>, vector<1x16x1024xf32>
    %120 = vector.shape_cast %119 : vector<1x16x1024xf32> to vector<16x1024xf32>
    %121 = arith.addf %118, %120 : vector<16x1024xf32>
    %c11 = arith.constant 11 : index
    %c0_83 = arith.constant 0 : index
    %c0_84 = arith.constant 0 : index
    %122 = vector.load %arg1[%c11, %c0_83, %c0_84] : memref<16x16x1024xf32, #tpu.memory_space<vmem>>, vector<1x16x1024xf32>
    %123 = vector.shape_cast %122 : vector<1x16x1024xf32> to vector<16x1024xf32>
    %124 = arith.addf %121, %123 : vector<16x1024xf32>
    %cst_85 = arith.constant 4.000000e+00 : f32
    %125 = vector.broadcast %cst_85 : f32 to vector<16x1024xf32>
    %126 = arith.divf %124, %125 : vector<16x1024xf32>
    %c8_86 = arith.constant 8 : index
    %c0_87 = arith.constant 0 : index
    %c0_88 = arith.constant 0 : index
    %127 = vector.load %arg1[%c8_86, %c0_87, %c0_88] : memref<16x16x1024xf32, #tpu.memory_space<vmem>>, vector<1x16x1024xf32>
    %128 = vector.shape_cast %127 : vector<1x16x1024xf32> to vector<16x1024xf32>
    %129 = arith.subf %128, %126 : vector<16x1024xf32>
    %130 = arith.mulf %129, %129 : vector<16x1024xf32>
    %c9_89 = arith.constant 9 : index
    %c0_90 = arith.constant 0 : index
    %c0_91 = arith.constant 0 : index
    %131 = vector.load %arg1[%c9_89, %c0_90, %c0_91] : memref<16x16x1024xf32, #tpu.memory_space<vmem>>, vector<1x16x1024xf32>
    %132 = vector.shape_cast %131 : vector<1x16x1024xf32> to vector<16x1024xf32>
    %133 = arith.subf %132, %126 : vector<16x1024xf32>
    %134 = arith.mulf %133, %133 : vector<16x1024xf32>
    %135 = arith.addf %130, %134 : vector<16x1024xf32>
    %c10_92 = arith.constant 10 : index
    %c0_93 = arith.constant 0 : index
    %c0_94 = arith.constant 0 : index
    %136 = vector.load %arg1[%c10_92, %c0_93, %c0_94] : memref<16x16x1024xf32, #tpu.memory_space<vmem>>, vector<1x16x1024xf32>
    %137 = vector.shape_cast %136 : vector<1x16x1024xf32> to vector<16x1024xf32>
    %138 = arith.subf %137, %126 : vector<16x1024xf32>
    %139 = arith.mulf %138, %138 : vector<16x1024xf32>
    %140 = arith.addf %135, %139 : vector<16x1024xf32>
    %c11_95 = arith.constant 11 : index
    %c0_96 = arith.constant 0 : index
    %c0_97 = arith.constant 0 : index
    %141 = vector.load %arg1[%c11_95, %c0_96, %c0_97] : memref<16x16x1024xf32, #tpu.memory_space<vmem>>, vector<1x16x1024xf32>
    %142 = vector.shape_cast %141 : vector<1x16x1024xf32> to vector<16x1024xf32>
    %143 = arith.subf %142, %126 : vector<16x1024xf32>
    %144 = arith.mulf %143, %143 : vector<16x1024xf32>
    %145 = arith.addf %140, %144 : vector<16x1024xf32>
    %cst_98 = arith.constant 4.000000e+00 : f32
    %146 = vector.broadcast %cst_98 : f32 to vector<16x1024xf32>
    %147 = arith.divf %145, %146 : vector<16x1024xf32>
    %cst_99 = arith.constant 9.99999982E-15 : f32
    %148 = vector.broadcast %cst_99 : f32 to vector<16x1024xf32>
    %149 = arith.addf %147, %148 : vector<16x1024xf32>
    %150 = math.sqrt %149 : vector<16x1024xf32>
    %151 = vector.extract_strided_slice %150 {offsets = [0, 0], sizes = [4, 1024], strides = [1, 1]} : vector<16x1024xf32> to vector<4x1024xf32>
    %cst_100 = arith.constant dense<0.000000e+00> : vector<1024xf32>
    %152 = vector.multi_reduction <add>, %151, %cst_100 [0] : vector<4x1024xf32> to vector<1024xf32>
    %c2_101 = arith.constant 2 : index
    %c0_102 = arith.constant 0 : index
    %c0_103 = arith.constant 0 : index
    %153 = vector.load %arg2[%c2_101, %c0_102, %c0_103] : memref<4x4x1024xf32, #tpu.memory_space<vmem>>, vector<1x1x1024xf32>
    %154 = vector.shape_cast %153 : vector<1x1x1024xf32> to vector<1024xf32>
    %155 = vector.shape_cast %152 : vector<1024xf32> to vector<1x1x1024xf32>
    tpu.vector_store %arg2[%c2_101, %c0_102, %c0_103], %155 {strides = array<i32>} : memref<4x4x1024xf32, #tpu.memory_space<vmem>>, vector<1x1x1024xf32>,
    %156 = vector.extract_strided_slice %150 {offsets = [4, 0], sizes = [4, 1024], strides = [1, 1]} : vector<16x1024xf32> to vector<4x1024xf32>
    %cst_104 = arith.constant dense<0.000000e+00> : vector<1024xf32>
    %157 = vector.multi_reduction <add>, %156, %cst_104 [0] : vector<4x1024xf32> to vector<1024xf32>
    %c2_105 = arith.constant 2 : index
    %c1_106 = arith.constant 1 : index
    %c0_107 = arith.constant 0 : index
    %158 = vector.load %arg2[%c2_105, %c1_106, %c0_107] : memref<4x4x1024xf32, #tpu.memory_space<vmem>>, vector<1x1x1024xf32>
    %159 = vector.shape_cast %158 : vector<1x1x1024xf32> to vector<1024xf32>
    %160 = vector.shape_cast %157 : vector<1024xf32> to vector<1x1x1024xf32>
    tpu.vector_store %arg2[%c2_105, %c1_106, %c0_107], %160 {strides = array<i32>} : memref<4x4x1024xf32, #tpu.memory_space<vmem>>, vector<1x1x1024xf32>,
    %161 = vector.extract_strided_slice %150 {offsets = [8, 0], sizes = [4, 1024], strides = [1, 1]} : vector<16x1024xf32> to vector<4x1024xf32>
    %cst_108 = arith.constant dense<0.000000e+00> : vector<1024xf32>
    %162 = vector.multi_reduction <add>, %161, %cst_108 [0] : vector<4x1024xf32> to vector<1024xf32>
    %c2_109 = arith.constant 2 : index
    %c2_110 = arith.constant 2 : index
    %c0_111 = arith.constant 0 : index
    %163 = vector.load %arg2[%c2_109, %c2_110, %c0_111] : memref<4x4x1024xf32, #tpu.memory_space<vmem>>, vector<1x1x1024xf32>
    %164 = vector.shape_cast %163 : vector<1x1x1024xf32> to vector<1024xf32>
    %165 = vector.shape_cast %162 : vector<1024xf32> to vector<1x1x1024xf32>
    tpu.vector_store %arg2[%c2_109, %c2_110, %c0_111], %165 {strides = array<i32>} : memref<4x4x1024xf32, #tpu.memory_space<vmem>>, vector<1x1x1024xf32>,
    %166 = vector.extract_strided_slice %150 {offsets = [12, 0], sizes = [4, 1024], strides = [1, 1]} : vector<16x1024xf32> to vector<4x1024xf32>
    %cst_112 = arith.constant dense<0.000000e+00> : vector<1024xf32>
    %167 = vector.multi_reduction <add>, %166, %cst_112 [0] : vector<4x1024xf32> to vector<1024xf32>
    %c2_113 = arith.constant 2 : index
    %c3_114 = arith.constant 3 : index
    %c0_115 = arith.constant 0 : index
    %168 = vector.load %arg2[%c2_113, %c3_114, %c0_115] : memref<4x4x1024xf32, #tpu.memory_space<vmem>>, vector<1x1x1024xf32>
    %169 = vector.shape_cast %168 : vector<1x1x1024xf32> to vector<1024xf32>
    %170 = vector.shape_cast %167 : vector<1024xf32> to vector<1x1x1024xf32>
    tpu.vector_store %arg2[%c2_113, %c3_114, %c0_115], %170 {strides = array<i32>} : memref<4x4x1024xf32, #tpu.memory_space<vmem>>, vector<1x1x1024xf32>,
    %c12 = arith.constant 12 : index
    %c0_116 = arith.constant 0 : index
    %c0_117 = arith.constant 0 : index
    %171 = vector.load %arg1[%c12, %c0_116, %c0_117] : memref<16x16x1024xf32, #tpu.memory_space<vmem>>, vector<1x16x1024xf32>
    %172 = vector.shape_cast %171 : vector<1x16x1024xf32> to vector<16x1024xf32>
    %c13 = arith.constant 13 : index
    %c0_118 = arith.constant 0 : index
    %c0_119 = arith.constant 0 : index
    %173 = vector.load %arg1[%c13, %c0_118, %c0_119] : memref<16x16x1024xf32, #tpu.memory_space<vmem>>, vector<1x16x1024xf32>
    %174 = vector.shape_cast %173 : vector<1x16x1024xf32> to vector<16x1024xf32>
    %175 = arith.addf %172, %174 : vector<16x1024xf32>
    %c14 = arith.constant 14 : index
    %c0_120 = arith.constant 0 : index
    %c0_121 = arith.constant 0 : index
    %176 = vector.load %arg1[%c14, %c0_120, %c0_121] : memref<16x16x1024xf32, #tpu.memory_space<vmem>>, vector<1x16x1024xf32>
    %177 = vector.shape_cast %176 : vector<1x16x1024xf32> to vector<16x1024xf32>
    %178 = arith.addf %175, %177 : vector<16x1024xf32>
    %c15 = arith.constant 15 : index
    %c0_122 = arith.constant 0 : index
    %c0_123 = arith.constant 0 : index
    %179 = vector.load %arg1[%c15, %c0_122, %c0_123] : memref<16x16x1024xf32, #tpu.memory_space<vmem>>, vector<1x16x1024xf32>
    %180 = vector.shape_cast %179 : vector<1x16x1024xf32> to vector<16x1024xf32>
    %181 = arith.addf %178, %180 : vector<16x1024xf32>
    %cst_124 = arith.constant 4.000000e+00 : f32
    %182 = vector.broadcast %cst_124 : f32 to vector<16x1024xf32>
    %183 = arith.divf %181, %182 : vector<16x1024xf32>
    %c12_125 = arith.constant 12 : index
    %c0_126 = arith.constant 0 : index
    %c0_127 = arith.constant 0 : index
    %184 = vector.load %arg1[%c12_125, %c0_126, %c0_127] : memref<16x16x1024xf32, #tpu.memory_space<vmem>>, vector<1x16x1024xf32>
    %185 = vector.shape_cast %184 : vector<1x16x1024xf32> to vector<16x1024xf32>
    %186 = arith.subf %185, %183 : vector<16x1024xf32>
    %187 = arith.mulf %186, %186 : vector<16x1024xf32>
    %c13_128 = arith.constant 13 : index
    %c0_129 = arith.constant 0 : index
    %c0_130 = arith.constant 0 : index
    %188 = vector.load %arg1[%c13_128, %c0_129, %c0_130] : memref<16x16x1024xf32, #tpu.memory_space<vmem>>, vector<1x16x1024xf32>
    %189 = vector.shape_cast %188 : vector<1x16x1024xf32> to vector<16x1024xf32>
    %190 = arith.subf %189, %183 : vector<16x1024xf32>
    %191 = arith.mulf %190, %190 : vector<16x1024xf32>
    %192 = arith.addf %187, %191 : vector<16x1024xf32>
    %c14_131 = arith.constant 14 : index
    %c0_132 = arith.constant 0 : index
    %c0_133 = arith.constant 0 : index
    %193 = vector.load %arg1[%c14_131, %c0_132, %c0_133] : memref<16x16x1024xf32, #tpu.memory_space<vmem>>, vector<1x16x1024xf32>
    %194 = vector.shape_cast %193 : vector<1x16x1024xf32> to vector<16x1024xf32>
    %195 = arith.subf %194, %183 : vector<16x1024xf32>
    %196 = arith.mulf %195, %195 : vector<16x1024xf32>
    %197 = arith.addf %192, %196 : vector<16x1024xf32>
    %c15_134 = arith.constant 15 : index
    %c0_135 = arith.constant 0 : index
    %c0_136 = arith.constant 0 : index
    %198 = vector.load %arg1[%c15_134, %c0_135, %c0_136] : memref<16x16x1024xf32, #tpu.memory_space<vmem>>, vector<1x16x1024xf32>
    %199 = vector.shape_cast %198 : vector<1x16x1024xf32> to vector<16x1024xf32>
    %200 = arith.subf %199, %183 : vector<16x1024xf32>
    %201 = arith.mulf %200, %200 : vector<16x1024xf32>
    %202 = arith.addf %197, %201 : vector<16x1024xf32>
    %cst_137 = arith.constant 4.000000e+00 : f32
    %203 = vector.broadcast %cst_137 : f32 to vector<16x1024xf32>
    %204 = arith.divf %202, %203 : vector<16x1024xf32>
    %cst_138 = arith.constant 9.99999982E-15 : f32
    %205 = vector.broadcast %cst_138 : f32 to vector<16x1024xf32>
    %206 = arith.addf %204, %205 : vector<16x1024xf32>
    %207 = math.sqrt %206 : vector<16x1024xf32>
    %208 = vector.extract_strided_slice %207 {offsets = [0, 0], sizes = [4, 1024], strides = [1, 1]} : vector<16x1024xf32> to vector<4x1024xf32>
    %cst_139 = arith.constant dense<0.000000e+00> : vector<1024xf32>
    %209 = vector.multi_reduction <add>, %208, %cst_139 [0] : vector<4x1024xf32> to vector<1024xf32>
    %c3_140 = arith.constant 3 : index
    %c0_141 = arith.constant 0 : index
    %c0_142 = arith.constant 0 : index
    %210 = vector.load %arg2[%c3_140, %c0_141, %c0_142] : memref<4x4x1024xf32, #tpu.memory_space<vmem>>, vector<1x1x1024xf32>
    %211 = vector.shape_cast %210 : vector<1x1x1024xf32> to vector<1024xf32>
    %212 = vector.shape_cast %209 : vector<1024xf32> to vector<1x1x1024xf32>
    tpu.vector_store %arg2[%c3_140, %c0_141, %c0_142], %212 {strides = array<i32>} : memref<4x4x1024xf32, #tpu.memory_space<vmem>>, vector<1x1x1024xf32>,
    %213 = vector.extract_strided_slice %207 {offsets = [4, 0], sizes = [4, 1024], strides = [1, 1]} : vector<16x1024xf32> to vector<4x1024xf32>
    %cst_143 = arith.constant dense<0.000000e+00> : vector<1024xf32>
    %214 = vector.multi_reduction <add>, %213, %cst_143 [0] : vector<4x1024xf32> to vector<1024xf32>
    %c3_144 = arith.constant 3 : index
    %c1_145 = arith.constant 1 : index
    %c0_146 = arith.constant 0 : index
    %215 = vector.load %arg2[%c3_144, %c1_145, %c0_146] : memref<4x4x1024xf32, #tpu.memory_space<vmem>>, vector<1x1x1024xf32>
    %216 = vector.shape_cast %215 : vector<1x1x1024xf32> to vector<1024xf32>
    %217 = vector.shape_cast %214 : vector<1024xf32> to vector<1x1x1024xf32>
    tpu.vector_store %arg2[%c3_144, %c1_145, %c0_146], %217 {strides = array<i32>} : memref<4x4x1024xf32, #tpu.memory_space<vmem>>, vector<1x1x1024xf32>,
    %218 = vector.extract_strided_slice %207 {offsets = [8, 0], sizes = [4, 1024], strides = [1, 1]} : vector<16x1024xf32> to vector<4x1024xf32>
    %cst_147 = arith.constant dense<0.000000e+00> : vector<1024xf32>
    %219 = vector.multi_reduction <add>, %218, %cst_147 [0] : vector<4x1024xf32> to vector<1024xf32>
    %c3_148 = arith.constant 3 : index
    %c2_149 = arith.constant 2 : index
    %c0_150 = arith.constant 0 : index
    %220 = vector.load %arg2[%c3_148, %c2_149, %c0_150] : memref<4x4x1024xf32, #tpu.memory_space<vmem>>, vector<1x1x1024xf32>
    %221 = vector.shape_cast %220 : vector<1x1x1024xf32> to vector<1024xf32>
    %222 = vector.shape_cast %219 : vector<1024xf32> to vector<1x1x1024xf32>
    tpu.vector_store %arg2[%c3_148, %c2_149, %c0_150], %222 {strides = array<i32>} : memref<4x4x1024xf32, #tpu.memory_space<vmem>>, vector<1x1x1024xf32>,
    %223 = vector.extract_strided_slice %207 {offsets = [12, 0], sizes = [4, 1024], strides = [1, 1]} : vector<16x1024xf32> to vector<4x1024xf32>
    %cst_151 = arith.constant dense<0.000000e+00> : vector<1024xf32>
    %224 = vector.multi_reduction <add>, %223, %cst_151 [0] : vector<4x1024xf32> to vector<1024xf32>
    %c3_152 = arith.constant 3 : index
    %c3_153 = arith.constant 3 : index
    %c0_154 = arith.constant 0 : index
    %225 = vector.load %arg2[%c3_152, %c3_153, %c0_154] : memref<4x4x1024xf32, #tpu.memory_space<vmem>>, vector<1x1x1024xf32>
    %226 = vector.shape_cast %225 : vector<1x1x1024xf32> to vector<1024xf32>
    %227 = vector.shape_cast %224 : vector<1024xf32> to vector<1x1x1024xf32>
    tpu.vector_store %arg2[%c3_152, %c3_153, %c0_154], %227 {strides = array<i32>} : memref<4x4x1024xf32, #tpu.memory_space<vmem>>, vector<1x1x1024xf32>,
    return
  }
  func.func @transform_0(%arg0: i32) -> (i32, i32, i32) {
    %c0_i32 = arith.constant 0 : i32
    %c0_i32_0 = arith.constant 0 : i32
    %c0_i32_1 = arith.constant 0 : i32
    return %c0_i32, %c0_i32_0, %arg0 : i32, i32, i32
  }
  func.func @transform_1(%arg0: i32) -> (i32, i32, i32) {
    %c0_i32 = arith.constant 0 : i32
    %c0_i32_0 = arith.constant 0 : i32
    %c0_i32_1 = arith.constant 0 : i32
    return %c0_i32, %c0_i32_0, %arg0 : i32, i32, i32
  }
}

</mosaic_0001>

<bundles_post_ra>
// kernel: tpu_custom_call.1
= control target key start
LH: loop header
LB: loop body
LE: loop exit
PB: predicated region body
PF: predicated region fallthrough
CT: control target
= control target key end

     0   :  { %6 = vsyncpa [#allocation3], 0  ;;  %s6831_s0 = inlined_call_operand.hbm [shape: f32[16,16,1024], index: 0, kind: input, shape index: {}]   ;;  %s6832_s1 = inlined_call_operand.hbm [shape: f32[4,4,1024], index: 1, kind: output, shape index: {}]  }
   0x1   :  { %7 = vsyncpa [#allocation4], 0  ;;  %s4088_s6 = smov [#allocation2]   ;;  %s4040_s10 = scalar_lea.hbm %s6831_s0, 32768 }
   0x2   :  { %s13_s7 = sshll.u32 %s4088_s6, 4  ;;  %p4041_p0 = scmp.ne.s32.totalorder %s6831_s0, %s4040_s10  ;;  %s14_s7 = int_to_ptr.vmem [resolvable:$true] %s13_s7 }
   0x3   :  { %p4044_p1 = scmp.lt.u32.totalorder %s4040_s10, %s6831_s0 }
   0x5   :  { %p4046_p2 = pnand %p4044_p1, %p4041_p0 }
   0x7   :  { %4049 = shalt.err (!%p4046_p2)
}
   0x8   :  { %s4050_s15 = scalar_lea.vmem %s14_s7, 32768  ;;  %p4055_p4 = scmp.lt.s32.totalorder %s14_s7, %s14_s7 }
   0x9   :  { %p4051_p3 = scmp.ne.s32.totalorder %s14_s7, %s4050_s15  ;;  %p4056_p5 = scmp.lt.s32.totalorder %s4050_s15, %s4050_s15 }
   0xb   :  { %p4057_p6 = por %p4056_p5, %p4055_p4 }
   0xd   :  { %p4058_p7 = pnand %p4057_p6, %p4051_p3 }
   0xf   :  { %4061 = shalt.err (!%p4058_p7)
}
  0x10   :  { %s4089_s16 = smov 1024   ;;  %s4090_s17 = smov 64  }
  0x11   :  { %19 = dma.hbm_to_vmem [thread:$0]  %s6831_s0, 32768, %s14_s7, [#allocation3], %s4089_s16, %s4089_s16, %s4090_s17  }
  0x12   :  { %4084 = dma.done.wait [#allocation3], 32768  }
  0x13   :  { %4085 = vsyncadd [#allocation3], 4294934528  ;;  %v4117_v0 = vld [vmem:[#allocation2] sm:$0xff]  ;;  %v4119_v1 = vld [vmem:[#allocation2 + $0x8] sm:$0xff]  ;;  %v4091_v6 = vmov 1966171168   ;;  %v547_v16 = vlaneseq }
  0x14   :  { %v4121_v2 = vld [vmem:[#allocation2 + $0x10] sm:$0xff]  ;;  %v4123_v3 = vld [vmem:[#allocation2 + $0x80] sm:$0xff]  ;;  %v4125_v4 = vld [vmem:[#allocation2 + $0x88] sm:$0xff]  ;;  %v4129_v7 = vunpack.c.l.s4 %v4091_v6  ;;  %s4092_s0 = smov [#allocation5]  }
  0x15   :  { %v4127_v5 = vld [vmem:[#allocation2 + $0x90] sm:$0xff]  ;;  %v4131_v8 = vld [vmem:[#allocation2 + $0x18] sm:$0xff]  ;;  %v4133_v9 = vld [vmem:[#allocation2 + $0x20] sm:$0xff]  ;;  %v56_v37 = vadd.f32 %v4123_v3, %v4117_v0  ;;  %v57_v38 = vadd.f32 %v4125_v4, %v4119_v1  ;;  %v4198_v43 = vshrl.u32 %v547_v16, 7  ;;  %s3884_s20 = sshll.u32 %s4092_s0, 4  ;;  %s3885_s20 = int_to_ptr.vmem [resolvable:$true] %s3884_s20 }
  0x16   :  { %7066 = vst [vmem:[#allocation8_spill] sm:$0xff] %v4129_v7  ;;  %v4135_v10 = vld [vmem:[#allocation2 + $0x28] sm:$0xff]  ;;  %v4137_v11 = vld [vmem:[#allocation2 + $0x30] sm:$0xff]  ;;  %v4139_v12 = vld [vmem:[#allocation2 + $0x98] sm:$0xff]  ;;  %v58_v39 = vadd.f32 %v4127_v5, %v4121_v2  ;;  %s4062_s21 = scalar_lea.vmem %s3885_s20, 2048  ;;  %p4067_p9 = scmp.lt.s32.totalorder %s3885_s20, %s3885_s20 }
  0x17   :  { %v4141_v13 = vld [vmem:[#allocation2 + $0xa0] sm:$0xff]  ;;  %v4143_v14 = vld [vmem:[#allocation2 + $0xa8] sm:$0xff]  ;;  %v4145_v15 = vld [vmem:[#allocation2 + $0xb0] sm:$0xff]  ;;  %7078 = vst [vmem:[#allocation20_spill] sm:$0xff] %v4198_v43  ;;  %v59_v44 = vadd.f32 %v4139_v12, %v4131_v8  ;;  %p4063_p8 = scmp.ne.s32.totalorder %s3885_s20, %s4062_s21  ;;  %p4068_p10 = scmp.lt.s32.totalorder %s4062_s21, %s4062_s21 }
  0x18   :  { %7067 = vst [vmem:[#allocation9_spill] sm:$0xff] %v4145_v15  ;;  %v4147_v17 = vld [vmem:[#allocation2 + $0x38] sm:$0xff]  ;;  %v4149_v18 = vld [vmem:[#allocation2 + $0x40] sm:$0xff]  ;;  %v4151_v19 = vld [vmem:[#allocation2 + $0x48] sm:$0xff]  ;;  %v60_v45 = vadd.f32 %v4141_v13, %v4133_v9  ;;  %v61_v46 = vadd.f32 %v4143_v14, %v4135_v10  ;;  %v62_v47 = vadd.f32 %v4145_v15, %v4137_v11 }
  0x19   :  { %v4153_v20 = vld [vmem:[#allocation2 + $0x50] sm:$0xff]  ;;  %v4155_v21 = vld [vmem:[#allocation2 + $0xb8] sm:$0xff]  ;;  %v4157_v22 = vld [vmem:[#allocation2 + $0xc0] sm:$0xff]  ;;  %p4069_p11 = por %p4068_p10, %p4067_p9 }
  0x1a   :  { %7068 = vst [vmem:[#allocation10_spill] sm:$0xff] %v4155_v21  ;;  %7069 = vst [vmem:[#allocation11_spill] sm:$0xff] %v4157_v22  ;;  %v4159_v23 = vld [vmem:[#allocation2 + $0xc8] sm:$0xff]  ;;  %v4161_v24 = vld [vmem:[#allocation2 + $0xd0] sm:$0xff]  ;;  %v63_v51 = vadd.f32 %v4155_v21, %v4147_v17  ;;  %v64_v52 = vadd.f32 %v4157_v22, %v4149_v18 }
  0x1b   :  { %7070 = vst [vmem:[#allocation12_spill] sm:$0xff] %v4159_v23  ;;  %7071 = vst [vmem:[#allocation13_spill] sm:$0xff] %v4161_v24  ;;  %v4163_v25 = vld [vmem:[#allocation2 + $0x58] sm:$0xff]  ;;  %v4165_v26 = vld [vmem:[#allocation2 + $0x60] sm:$0xff]  ;;  %v65_v53 = vadd.f32 %v4159_v23, %v4151_v19  ;;  %v66_v54 = vadd.f32 %v4161_v24, %v4153_v20  ;;  %p4070_p12 = pnand %p4069_p11, %p4063_p8 }
  0x1c   :  { %v4167_v27 = vld [vmem:[#allocation2 + $0x68] sm:$0xff]  ;;  %v4169_v28 = vld [vmem:[#allocation2 + $0x70] sm:$0xff]  ;;  %v4171_v29 = vld [vmem:[#allocation2 + $0xd8] sm:$0xff] }
  0x1d   :  { %7072 = vst [vmem:[#allocation14_spill] sm:$0xff] %v4171_v29  ;;  %v4173_v30 = vld [vmem:[#allocation2 + $0xe0] sm:$0xff]  ;;  %v4175_v31 = vld [vmem:[#allocation2 + $0xe8] sm:$0xff]  ;;  %v4177_v32 = vld [vmem:[#allocation2 + $0x78] sm:$0xff]  ;;  %v67_v58 = vadd.f32 %v4171_v29, %v4163_v25 }
  0x1e   :  { %7073 = vst [vmem:[#allocation15_spill] sm:$0xff] %v4173_v30  ;;  %7074 = vst [vmem:[#allocation16_spill] sm:$0xff] %v4175_v31  ;;  %v4179_v33 = vld [vmem:[#allocation2 + $0xf0] sm:$0xff]  ;;  %v4181_v34 = vld [vmem:[#allocation2 + $0xf8] sm:$0xff]  ;;  %v68_v59 = vadd.f32 %v4173_v30, %v4165_v26  ;;  %v69_v60 = vadd.f32 %v4175_v31, %v4167_v27 }
  0x1f   :  { %7075 = vst [vmem:[#allocation17_spill] sm:$0xff] %v4179_v33  ;;  %7076 = vst [vmem:[#allocation18_spill] sm:$0xff] %v4181_v34  ;;  %v4183_v35 = vld [vmem:[#allocation2 + $0x100] sm:$0xff]  ;;  %v4192_v40 = vld [vmem:[#allocation2 + $0x108] sm:$0xff]  ;;  %v70_v61 = vadd.f32 %v4179_v33, %v4169_v28  ;;  %v71_v16 = vadd.f32 %v4181_v34, %v4177_v32 }
  0x20   :  { %v4194_v41 = vld [vmem:[#allocation2 + $0x110] sm:$0xff]  ;;  %v4196_v42 = vld [vmem:[#allocation2 + $0x118] sm:$0xff]  ;;  %v4208_v48 = vld [vmem:[#allocation2 + $0x120] sm:$0xff]  ;;  %v89_v31 = vadd.f32 %v4183_v35, %v56_v37  ;;  %v90_v30 = vadd.f32 %v4192_v40, %v57_v38 }
  0x21   :  { %7077 = vst [vmem:[#allocation19_spill] sm:$0xff] %v4196_v42  ;;  %7079 = vst [vmem:[#allocation21_spill] sm:$0xff] %v4208_v48  ;;  %v4210_v49 = vld [vmem:[#allocation2 + $0x128] sm:$0xff]  ;;  %v4212_v50 = vld [vmem:[#allocation2 + $0x130] sm:$0xff]  ;;  %v91_v33 = vadd.f32 %v4194_v41, %v58_v39  ;;  %v92_v29 = vadd.f32 %v4196_v42, %v59_v44  ;;  %v93_v24 = vadd.f32 %v4208_v48, %v60_v45 }
  0x22   :  { %7080 = vst [vmem:[#allocation22_spill] sm:$0xff] %v4210_v49  ;;  %7081 = vst [vmem:[#allocation23_spill] sm:$0xff] %v4212_v50  ;;  %v4222_v55 = vld [vmem:[#allocation2 + $0x138] sm:$0xff]  ;;  %v4224_v56 = vld [vmem:[#allocation2 + $0x140] sm:$0xff]  ;;  %v94_v23 = vadd.f32 %v4210_v49, %v61_v46  ;;  %v95_v34 = vadd.f32 %v4212_v50, %v62_v47 }
  0x23   :  { %7082 = vst [vmem:[#allocation24_spill] sm:$0xff] %v4222_v55  ;;  %7083 = vst [vmem:[#allocation25_spill] sm:$0xff] %v4224_v56  ;;  %v4226_v57 = vld [vmem:[#allocation2 + $0x148] sm:$0xff]  ;;  %v4236_v62 = vld [vmem:[#allocation2 + $0x150] sm:$0xff]  ;;  %v96_v37 = vadd.f32 %v4222_v55, %v63_v51  ;;  %v97_v38 = vadd.f32 %v4224_v56, %v64_v52 }
  0x24   :  { %7084 = vst [vmem:[#allocation26_spill] sm:$0xff] %v4226_v57  ;;  %7085 = vst [vmem:[#allocation27_spill] sm:$0xff] %v4236_v62  ;;  %v4238_v63 = vld [vmem:[#allocation2 + $0x158] sm:$0xff]  ;;  %v4240_v6 = vld [vmem:[#allocation2 + $0x160] sm:$0xff]  ;;  %v98_v39 = vadd.f32 %v4226_v57, %v65_v53  ;;  %v99_v44 = vadd.f32 %v4236_v62, %v66_v54 }
  0x25   :  { %7086 = vst [vmem:[#allocation28_spill] sm:$0xff] %v4238_v63  ;;  %7087 = vst [vmem:[#allocation29_spill] sm:$0xff] %v4240_v6  ;;  %v4244_v36 = vld [vmem:[#allocation2 + $0x168] sm:$0xff]  ;;  %v4246_v7 = vld [vmem:[#allocation2 + $0x170] sm:$0xff]  ;;  %v100_v47 = vadd.f32 %v4238_v63, %v67_v58  ;;  %v101_v50 = vadd.f32 %v4240_v6, %v68_v59 }
  0x26   :  { %7088 = vst [vmem:[#allocation30_spill] sm:$0xff] %v4244_v36  ;;  %7089 = vst [vmem:[#allocation31_spill] sm:$0xff] %v4246_v7  ;;  %v4248_v43 = vld [vmem:[#allocation2 + $0x178] sm:$0xff]  ;;  %v4257_v22 = vld [vmem:[#allocation2 + $0x180] sm:$0xff]  ;;  %v102_v49 = vadd.f32 %v4244_v36, %v69_v60  ;;  %v103_v51 = vadd.f32 %v4246_v7, %v70_v61 }
  0x27   :  { %7090 = vst [vmem:[#allocation32_spill] sm:$0xff] %v4248_v43  ;;  %7091 = vst [vmem:[#allocation33_spill] sm:$0xff] %v4257_v22  ;;  %v4259_v21 = vld [vmem:[#allocation2 + $0x188] sm:$0xff]  ;;  %v4261_v15 = vld [vmem:[#allocation2 + $0x190] sm:$0xff]  ;;  %v104_v54 = vadd.f32 %v4248_v43, %v71_v16  ;;  %v122_v58 = vadd.f32 %v4257_v22, %v89_v31 }
  0x28   :  { %7092 = vst [vmem:[#allocation34_spill] sm:$0xff] %v4259_v21  ;;  %7093 = vst [vmem:[#allocation35_spill] sm:$0xff] %v4261_v15  ;;  %v4267_v42 = vld [vmem:[#allocation2 + $0x198] sm:$0xff]  ;;  %v4269_v45 = vld [vmem:[#allocation2 + $0x1a0] sm:$0xff]  ;;  %v123_v59 = vadd.f32 %v4259_v21, %v90_v30  ;;  %v124_v60 = vadd.f32 %v4261_v15, %v91_v33 }
  0x29   :  { %7094 = vst [vmem:[#allocation36_spill] sm:$0xff] %v4267_v42  ;;  %7095 = vst [vmem:[#allocation37_spill] sm:$0xff] %v4269_v45  ;;  %v4271_v46 = vld [vmem:[#allocation2 + $0x1a8] sm:$0xff]  ;;  %v4277_v55 = vld [vmem:[#allocation2 + $0x1b0] sm:$0xff]  ;;  %v125_v16 = vadd.f32 %v4267_v42, %v92_v29  ;;  %v126_v43 = vadd.f32 %v4269_v45, %v93_v24 }
  0x2a   :  { %7096 = vst [vmem:[#allocation38_spill] sm:$0xff] %v4271_v46  ;;  %7097 = vst [vmem:[#allocation39_spill] sm:$0xff] %v4277_v55  ;;  %v4279_v52 = vld [vmem:[#allocation2 + $0x1b8] sm:$0xff]  ;;  %v4281_v53 = vld [vmem:[#allocation2 + $0x1c0] sm:$0xff]  ;;  %v127_v6 = vadd.f32 %v4271_v46, %v94_v23  ;;  %v128_v63 = vadd.f32 %v4277_v55, %v95_v34  ;;  %v4314_v55 = vmul.f32 0.25, %v122_v58  ;;  %v4316_v46 = vmul.f32 0.25, %v123_v59 }
  0x2b   :  { %7098 = vst [vmem:[#allocation40_spill] sm:$0xff] %v4279_v52  ;;  %7099 = vst [vmem:[#allocation41_spill] sm:$0xff] %v4281_v53  ;;  %v4284_v62 = vld [vmem:[#allocation2 + $0x1c8] sm:$0xff]  ;;  %v4286_v57 = vld [vmem:[#allocation2 + $0x1d0] sm:$0xff]  ;;  %v129_v30 = vadd.f32 %v4279_v52, %v96_v37  ;;  %v130_v31 = vadd.f32 %v4281_v53, %v97_v38  ;;  %v4318_v37 = vmul.f32 0.25, %v124_v60  ;;  %v4320_v38 = vmul.f32 0.25, %v125_v16 }
  0x2c   :  { %7100 = vst [vmem:[#allocation42_spill] sm:$0xff] %v4284_v62  ;;  %7101 = vst [vmem:[#allocation43_spill] sm:$0xff] %v4286_v57  ;;  %v4288_v56 = vld [vmem:[#allocation2 + $0x1d8] sm:$0xff]  ;;  %v4293_v61 = vld [vmem:[#allocation2 + $0x1e0] sm:$0xff]  ;;  %v131_v33 = vadd.f32 %v4284_v62, %v98_v39  ;;  %v132_v15 = vadd.f32 %v4286_v57, %v99_v44  ;;  %v4322_v39 = vmul.f32 0.25, %v126_v43  ;;  %v4324_v44 = vmul.f32 0.25, %v127_v6 }
  0x2d   :  { %7102 = vst [vmem:[#allocation44_spill] sm:$0xff] %v4288_v56  ;;  %7103 = vst [vmem:[#allocation45_spill] sm:$0xff] %v4293_v61  ;;  %v4295_v7 = vld [vmem:[#allocation2 + $0x1e8] sm:$0xff]  ;;  %v4297_v36 = vld [vmem:[#allocation2 + $0x1f0] sm:$0xff]  ;;  %v133_v21 = vadd.f32 %v4288_v56, %v100_v47  ;;  %v134_v29 = vadd.f32 %v4293_v61, %v101_v50  ;;  %v4326_v47 = vmul.f32 0.25, %v128_v63  ;;  %v4328_v50 = vmul.f32 0.25, %v129_v30 }
  0x2e   :  { %7104 = vst [vmem:[#allocation46_spill] sm:$0xff] %v4295_v7  ;;  %7105 = vst [vmem:[#allocation47_spill] sm:$0xff] %v4297_v36  ;;  %v4303_v48 = vld [vmem:[#allocation2 + $0x1f8] sm:$0xff]  ;;  %v135_v24 = vadd.f32 %v4295_v7, %v102_v49  ;;  %v136_v23 = vadd.f32 %v4297_v36, %v103_v51  ;;  %v4330_v49 = vmul.f32 0.25, %v130_v31  ;;  %v4332_v51 = vmul.f32 0.25, %v131_v33 }
  0x2f   :  { %7106 = vst [vmem:[#allocation48_spill] sm:$0xff] %v4303_v48  ;;  %v137_v34 = vadd.f32 %v4303_v48, %v104_v54  ;;  %v4334_v54 = vmul.f32 0.25, %v132_v15  ;;  %v4336_v58 = vmul.f32 0.25, %v133_v21  ;;  %v4338_v59 = vmul.f32 0.25, %v134_v29 }
  0x30   :  { %7107 = vst [vmem:[#allocation49_spill] sm:$0xff] %v4330_v49  ;;  %7108 = vst [vmem:[#allocation50_spill] sm:$0xff] %v4332_v51  ;;  %v4340_v60 = vmul.f32 0.25, %v135_v24  ;;  %v4342_v43 = vmul.f32 0.25, %v136_v23  ;;  %v155_v63 = vsub.f32 %v4117_v0, %v4314_v55  ;;  %v156_v16 = vsub.f32 %v4119_v1, %v4316_v46 }
  0x31   :  { %7109 = vst [vmem:[#allocation51_spill] sm:$0xff] %v4334_v54  ;;  %7110 = vst [vmem:[#allocation52_spill] sm:$0xff] %v4336_v58  ;;  %v4344_v6 = vmul.f32 0.25, %v137_v34  ;;  %v157_v15 = vsub.f32 %v4121_v2, %v4318_v37  ;;  %v158_v21 = vsub.f32 %v4131_v8, %v4320_v38  ;;  %v159_v30 = vsub.f32 %v4133_v9, %v4322_v39 }
  0x32   :  { %7111 = vst [vmem:[#allocation53_spill] sm:$0xff] %v4338_v59  ;;  %7112 = vst [vmem:[#allocation54_spill] sm:$0xff] %v4340_v60  ;;  %v160_v31 = vsub.f32 %v4135_v10, %v4324_v44  ;;  %v161_v33 = vsub.f32 %v4137_v11, %v4326_v47  ;;  %v162_v0 = vsub.f32 %v4147_v17, %v4328_v50 }
  0x33   :  { %7113 = vst [vmem:[#allocation55_spill] sm:$0xff] %v4342_v43  ;;  %v163_v1 = vsub.f32 %v4149_v18, %v4330_v49  ;;  %v164_v2 = vsub.f32 %v4151_v19, %v4332_v51  ;;  %v165_v8 = vsub.f32 %v4153_v20, %v4334_v54  ;;  %v166_v9 = vsub.f32 %v4163_v25, %v4336_v58 }
  0x34   :  { %v167_v10 = vsub.f32 %v4165_v26, %v4338_v59  ;;  %v168_v11 = vsub.f32 %v4167_v27, %v4340_v60  ;;  %v169_v17 = vsub.f32 %v4169_v28, %v4342_v43  ;;  %v170_v18 = vsub.f32 %v4177_v32, %v4344_v6 }
  0x35   :  { %v171_v29 = vmul.f32 %v155_v63, %v155_v63  ;;  %v172_v19 = vmul.f32 %v156_v16, %v156_v16  ;;  %v173_v24 = vmul.f32 %v157_v15, %v157_v15  ;;  %v174_v23 = vmul.f32 %v158_v21, %v158_v21 }
  0x36   :  { %v175_v20 = vmul.f32 %v159_v30, %v159_v30  ;;  %v176_v34 = vmul.f32 %v160_v31, %v160_v31  ;;  %v177_v48 = vmul.f32 %v161_v33, %v161_v33  ;;  %v178_v25 = vmul.f32 %v162_v0, %v162_v0  ;;  %v7114_v30 = vld [vmem:[#allocation9_spill] sm:$0xff] }
  0x37   :  { %v179_v36 = vmul.f32 %v163_v1, %v163_v1  ;;  %v180_v7 = vmul.f32 %v164_v2, %v164_v2  ;;  %v181_v26 = vmul.f32 %v165_v8, %v165_v8  ;;  %v182_v61 = vmul.f32 %v166_v9, %v166_v9 }
  0x38   :  { %v183_v56 = vmul.f32 %v167_v10, %v167_v10  ;;  %v184_v27 = vmul.f32 %v168_v11, %v168_v11  ;;  %v185_v57 = vmul.f32 %v169_v17, %v169_v17  ;;  %v186_v62 = vmul.f32 %v170_v18, %v170_v18  ;;  %v7121_v10 = vld [vmem:[#allocation16_spill] sm:$0xff]  ;;  %v7122_v17 = vld [vmem:[#allocation17_spill] sm:$0xff] }
  0x39   :  { %v187_v28 = vsub.f32 %v4123_v3, %v4314_v55  ;;  %v188_v32 = vsub.f32 %v4125_v4, %v4316_v46  ;;  %v189_v63 = vsub.f32 %v4127_v5, %v4318_v37  ;;  %v190_v16 = vsub.f32 %v4139_v12, %v4320_v38  ;;  %v7115_v3 = vld [vmem:[#allocation10_spill] sm:$0xff]  ;;  %v7116_v4 = vld [vmem:[#allocation11_spill] sm:$0xff]  ;;  %v7117_v5 = vld [vmem:[#allocation12_spill] sm:$0xff] }
  0x3a   :  { %v191_v15 = vsub.f32 %v4141_v13, %v4322_v39  ;;  %v192_v21 = vsub.f32 %v4143_v14, %v4324_v44  ;;  %v193_v31 = vsub.f32 %v7114_v30, %v4326_v47  ;;  %v194_v33 = vsub.f32 %v7115_v3, %v4328_v50  ;;  %v7118_v12 = vld [vmem:[#allocation13_spill] sm:$0xff]  ;;  %v7119_v13 = vld [vmem:[#allocation14_spill] sm:$0xff]  ;;  %v7120_v14 = vld [vmem:[#allocation15_spill] sm:$0xff] }
  0x3b   :  { %v195_v0 = vsub.f32 %v7116_v4, %v4330_v49  ;;  %v196_v1 = vsub.f32 %v7117_v5, %v4332_v51  ;;  %v197_v2 = vsub.f32 %v7118_v12, %v4334_v54  ;;  %v198_v8 = vsub.f32 %v7119_v13, %v4336_v58  ;;  %v7123_v30 = vld [vmem:[#allocation18_spill] sm:$0xff] }
  0x3c   :  { %v199_v9 = vsub.f32 %v7120_v14, %v4338_v59  ;;  %v200_v11 = vsub.f32 %v7121_v10, %v4340_v60  ;;  %v201_v18 = vsub.f32 %v7122_v17, %v4342_v43  ;;  %v202_v3 = vsub.f32 %v7123_v30, %v4344_v6 }
  0x3d   :  { %v203_v4 = vmul.f32 %v187_v28, %v187_v28  ;;  %v204_v5 = vmul.f32 %v188_v32, %v188_v32  ;;  %v205_v53 = vmul.f32 %v189_v63, %v189_v63  ;;  %v206_v52 = vmul.f32 %v190_v16, %v190_v16 }
  0x3e   :  { %v207_v12 = vmul.f32 %v191_v15, %v191_v15  ;;  %v208_v45 = vmul.f32 %v192_v21, %v192_v21  ;;  %v209_v42 = vmul.f32 %v193_v31, %v193_v31  ;;  %v210_v13 = vmul.f32 %v194_v33, %v194_v33 }
  0x3f   :  { %v211_v22 = vmul.f32 %v195_v0, %v195_v0  ;;  %v212_v58 = vmul.f32 %v196_v1, %v196_v1  ;;  %v213_v14 = vmul.f32 %v197_v2, %v197_v2  ;;  %v214_v59 = vmul.f32 %v198_v8, %v198_v8 }
  0x40   :  { %v215_v54 = vmul.f32 %v199_v9, %v199_v9  ;;  %v216_v10 = vmul.f32 %v200_v11, %v200_v11  ;;  %v217_v60 = vmul.f32 %v201_v18, %v201_v18  ;;  %v218_v51 = vmul.f32 %v202_v3, %v202_v3  ;;  %v7141_v18 = vld [vmem:[#allocation55_spill] sm:$0xff] }
  0x41   :  { %v219_v17 = vadd.f32 %v203_v4, %v171_v29  ;;  %v220_v43 = vadd.f32 %v204_v5, %v172_v19  ;;  %v221_v49 = vadd.f32 %v205_v53, %v173_v24  ;;  %v222_v30 = vadd.f32 %v206_v52, %v174_v23  ;;  %v7129_v53 = vld [vmem:[#allocation49_spill] sm:$0xff]  ;;  %v7135_v19 = vld [vmem:[#allocation52_spill] sm:$0xff]  ;;  %v7142_v3 = vld [vmem:[#allocation31_spill] sm:$0xff] }
  0x42   :  { %v223_v28 = vadd.f32 %v207_v12, %v175_v20  ;;  %v224_v32 = vadd.f32 %v208_v45, %v176_v34  ;;  %v225_v63 = vadd.f32 %v209_v42, %v177_v48  ;;  %v226_v16 = vadd.f32 %v210_v13, %v178_v25  ;;  %v7124_v42 = vld [vmem:[#allocation19_spill] sm:$0xff]  ;;  %v7136_v24 = vld [vmem:[#allocation28_spill] sm:$0xff]  ;;  %v7137_v20 = vld [vmem:[#allocation53_spill] sm:$0xff] }
  0x43   :  { %v227_v15 = vadd.f32 %v211_v22, %v179_v36  ;;  %v228_v21 = vadd.f32 %v212_v58, %v180_v7  ;;  %v229_v31 = vadd.f32 %v213_v14, %v181_v26  ;;  %v230_v33 = vadd.f32 %v214_v59, %v182_v61  ;;  %v7125_v7 = vld [vmem:[#allocation21_spill] sm:$0xff]  ;;  %v7126_v36 = vld [vmem:[#allocation22_spill] sm:$0xff]  ;;  %v7133_v58 = vld [vmem:[#allocation51_spill] sm:$0xff] }
  0x44   :  { %v231_v0 = vadd.f32 %v215_v54, %v183_v56  ;;  %v232_v1 = vadd.f32 %v216_v10, %v184_v27  ;;  %v233_v2 = vadd.f32 %v217_v60, %v185_v57  ;;  %v234_v8 = vadd.f32 %v218_v51, %v186_v62  ;;  %v7127_v57 = vld [vmem:[#allocation23_spill] sm:$0xff]  ;;  %v7131_v51 = vld [vmem:[#allocation50_spill] sm:$0xff]  ;;  %v7138_v34 = vld [vmem:[#allocation29_spill] sm:$0xff] }
  0x45   :  { %v235_v9 = vsub.f32 %v4183_v35, %v4314_v55  ;;  %v236_v29 = vsub.f32 %v4192_v40, %v4316_v46  ;;  %v237_v52 = vsub.f32 %v4194_v41, %v4318_v37  ;;  %v238_v48 = vsub.f32 %v7124_v42, %v4320_v38  ;;  %v7128_v35 = vld [vmem:[#allocation24_spill] sm:$0xff]  ;;  %v7130_v40 = vld [vmem:[#allocation25_spill] sm:$0xff]  ;;  %v7132_v41 = vld [vmem:[#allocation26_spill] sm:$0xff] }
  0x46   :  { %v239_v22 = vsub.f32 %v7125_v7, %v4322_v39  ;;  %v240_v56 = vsub.f32 %v7126_v36, %v4324_v44  ;;  %v241_v62 = vsub.f32 %v7127_v57, %v4326_v47  ;;  %v242_v45 = vsub.f32 %v7128_v35, %v4328_v50  ;;  %v7134_v59 = vld [vmem:[#allocation27_spill] sm:$0xff]  ;;  %v7139_v26 = vld [vmem:[#allocation54_spill] sm:$0xff]  ;;  %v7143_v5 = vld [vmem:[#allocation32_spill] sm:$0xff] }
  0x47   :  { %v243_v61 = vsub.f32 %v7130_v40, %v7129_v53  ;;  %v244_v54 = vsub.f32 %v7132_v41, %v7131_v51  ;;  %v245_v60 = vsub.f32 %v7134_v59, %v7133_v58  ;;  %v246_v23 = vsub.f32 %v7136_v24, %v7135_v19  ;;  %v7140_v27 = vld [vmem:[#allocation30_spill] sm:$0xff] }
  0x48   :  { %v247_v25 = vsub.f32 %v7138_v34, %v7137_v20  ;;  %v248_v11 = vsub.f32 %v7140_v27, %v7139_v26  ;;  %v249_v4 = vsub.f32 %v7142_v3, %v7141_v18  ;;  %v250_v12 = vsub.f32 %v7143_v5, %v4344_v6 }
  0x49   :  { %v251_v13 = vmul.f32 %v235_v9, %v235_v9  ;;  %v252_v14 = vmul.f32 %v236_v29, %v236_v29  ;;  %v253_v10 = vmul.f32 %v237_v52, %v237_v52  ;;  %v254_v42 = vmul.f32 %v238_v48, %v238_v48 }
  0x4a   :  { %v255_v7 = vmul.f32 %v239_v22, %v239_v22  ;;  %v256_v36 = vmul.f32 %v240_v56, %v240_v56  ;;  %v257_v57 = vmul.f32 %v241_v62, %v241_v62  ;;  %v258_v35 = vmul.f32 %v242_v45, %v242_v45  ;;  %v7144_v56 = vld [vmem:[#allocation33_spill] sm:$0xff]  ;;  %v7145_v45 = vld [vmem:[#allocation34_spill] sm:$0xff] }
  0x4b   :  { %v259_v40 = vmul.f32 %v243_v61, %v243_v61  ;;  %v260_v41 = vmul.f32 %v244_v54, %v244_v54  ;;  %v261_v59 = vmul.f32 %v245_v60, %v245_v60  ;;  %v262_v24 = vmul.f32 %v246_v23, %v246_v23 }
  0x4c   :  { %v263_v34 = vmul.f32 %v247_v25, %v247_v25  ;;  %v264_v27 = vmul.f32 %v248_v11, %v248_v11  ;;  %v265_v26 = vmul.f32 %v249_v4, %v249_v4  ;;  %v266_v20 = vmul.f32 %v250_v12, %v250_v12  ;;  %v7146_v25 = vld [vmem:[#allocation35_spill] sm:$0xff]  ;;  %v7156_v4 = vld [vmem:[#allocation44_spill] sm:$0xff] }
  0x4d   :  { %v267_v3 = vadd.f32 %v251_v13, %v219_v17  ;;  %v268_v18 = vadd.f32 %v252_v14, %v220_v43  ;;  %v269_v19 = vadd.f32 %v253_v10, %v221_v49  ;;  %v270_v5 = vadd.f32 %v254_v42, %v222_v30  ;;  %v7157_v13 = vld [vmem:[#allocation53_spill] sm:$0xff]  ;;  %v7159_v10 = vld [vmem:[#allocation54_spill] sm:$0xff] }
  0x4e   :  { %v271_v9 = vadd.f32 %v255_v7, %v223_v28  ;;  %v272_v29 = vadd.f32 %v256_v36, %v224_v32  ;;  %v273_v52 = vadd.f32 %v257_v57, %v225_v63  ;;  %v274_v48 = vadd.f32 %v258_v35, %v226_v16  ;;  %v7147_v32 = vld [vmem:[#allocation36_spill] sm:$0xff]  ;;  %v7148_v16 = vld [vmem:[#allocation37_spill] sm:$0xff]  ;;  %v7161_v7 = vld [vmem:[#allocation55_spill] sm:$0xff] }
  0x4f   :  { %v275_v22 = vadd.f32 %v259_v40, %v227_v15  ;;  %v283_v62 = vsub.f32 %v7144_v56, %v4314_v55  ;;  %v284_v61 = vsub.f32 %v7145_v45, %v4316_v46  ;;  %v276_v54 = vadd.f32 %v260_v41, %v228_v21  ;;  %v7149_v55 = vld [vmem:[#allocation38_spill] sm:$0xff]  ;;  %v7150_v46 = vld [vmem:[#allocation39_spill] sm:$0xff]  ;;  %v7163_v57 = vld [vmem:[#allocation48_spill] sm:$0xff] }
  0x50   :  { %v277_v60 = vadd.f32 %v261_v59, %v229_v31  ;;  %v278_v23 = vadd.f32 %v262_v24, %v230_v33  ;;  %v285_v17 = vsub.f32 %v7146_v25, %v4318_v37  ;;  %v279_v43 = vadd.f32 %v263_v34, %v231_v0  ;;  %v7151_v31 = vld [vmem:[#allocation40_spill] sm:$0xff]  ;;  %v7152_v37 = vld [vmem:[#allocation41_spill] sm:$0xff] }
  0x51   :  { %v280_v49 = vadd.f32 %v264_v27, %v232_v1  ;;  %v281_v30 = vadd.f32 %v265_v26, %v233_v2  ;;  %v282_v28 = vadd.f32 %v266_v20, %v234_v8  ;;  %v286_v63 = vsub.f32 %v7147_v32, %v4320_v38  ;;  %v7153_v8 = vld [vmem:[#allocation42_spill] sm:$0xff]  ;;  %v7154_v20 = vld [vmem:[#allocation43_spill] sm:$0xff]  ;;  %v7155_v26 = vld [vmem:[#allocation52_spill] sm:$0xff] }
  0x52   :  { %v287_v15 = vsub.f32 %v7148_v16, %v4322_v39  ;;  %v288_v11 = vsub.f32 %v7149_v55, %v4324_v44  ;;  %v289_v21 = vsub.f32 %v7150_v46, %v4326_v47  ;;  %v290_v33 = vsub.f32 %v7151_v31, %v4328_v50  ;;  %v7158_v47 = vld [vmem:[#allocation45_spill] sm:$0xff]  ;;  %v7160_v50 = vld [vmem:[#allocation46_spill] sm:$0xff] }
  0x53   :  { %v291_v0 = vsub.f32 %v7152_v37, %v7129_v53  ;;  %v299_v1 = vmul.f32 %v283_v62, %v283_v62  ;;  %v300_v2 = vmul.f32 %v284_v61, %v284_v61  ;;  %v292_v38 = vsub.f32 %v7153_v8, %v7131_v51  ;;  %v7162_v53 = vld [vmem:[#allocation47_spill] sm:$0xff] }
  0x54   :  { %v293_v39 = vsub.f32 %v7154_v20, %v7133_v58  ;;  %v294_v44 = vsub.f32 %v7156_v4, %v7155_v26  ;;  %v301_v12 = vmul.f32 %v285_v17, %v285_v17  ;;  %v295_v14 = vsub.f32 %v7158_v47, %v7157_v13 }
  0x55   :  { %v296_v42 = vsub.f32 %v7160_v50, %v7159_v10  ;;  %v297_v36 = vsub.f32 %v7162_v53, %v7161_v7  ;;  %v298_v35 = vsub.f32 %v7163_v57, %v4344_v6  ;;  %v302_v51 = vmul.f32 %v286_v63, %v286_v63  ;;  %v7164_v7 = vld [vmem:[#allocation20_spill] sm:$0xff] }
  0x56   :  { %v303_v40 = vmul.f32 %v287_v15, %v287_v15  ;;  %v304_v41 = vmul.f32 %v288_v11, %v288_v11  ;;  %v305_v58 = vmul.f32 %v289_v21, %v289_v21  ;;  %v306_v59 = vmul.f32 %v290_v33, %v290_v33  ;;  %v7165_v53 = vld [vmem:[#allocation8_spill] sm:$0xff] }
  0x57   :  { %v307_v24 = vmul.f32 %v291_v0, %v291_v0  ;;  %v315_v34 = vadd.f32 %v299_v1, %v267_v3  ;;  %v316_v27 = vadd.f32 %v300_v2, %v268_v18  ;;  %v308_v56 = vmul.f32 %v292_v38, %v292_v38 }
  0x58   :  { %v309_v62 = vmul.f32 %v293_v39, %v293_v39  ;;  %v310_v45 = vmul.f32 %v294_v44, %v294_v44  ;;  %v317_v61 = vadd.f32 %v301_v12, %v269_v19  ;;  %v311_v25 = vmul.f32 %v295_v14, %v295_v14 }
  0x59   :  { %v312_v17 = vmul.f32 %v296_v42, %v296_v42  ;;  %v313_v32 = vmul.f32 %v297_v36, %v297_v36  ;;  %v314_v16 = vmul.f32 %v298_v35, %v298_v35  ;;  %v318_v55 = vadd.f32 %v302_v51, %v270_v5 }
  0x5a   :  { %v319_v46 = vadd.f32 %v303_v40, %v271_v9  ;;  %v320_v31 = vadd.f32 %v304_v41, %v272_v29  ;;  %v321_v6 = vadd.f32 %v305_v58, %v273_v52  ;;  %v322_v63 = vadd.f32 %v306_v59, %v274_v48 }
  0x5b   :  { %v323_v15 = vadd.f32 %v307_v24, %v275_v22  ;;  %v331_v11 = vmul.f32 0.25, %v315_v34  ;;  %v332_v21 = vmul.f32 0.25, %v316_v27  ;;  %v324_v33 = vadd.f32 %v308_v56, %v276_v54 }
  0x5c   :  { %v325_v37 = vadd.f32 %v309_v62, %v277_v60  ;;  %v326_v3 = vadd.f32 %v310_v45, %v278_v23  ;;  %v333_v18 = vmul.f32 0.25, %v317_v61  ;;  %v327_v0 = vadd.f32 %v311_v25, %v279_v43 }
  0x5d   :  { %v328_v1 = vadd.f32 %v312_v17, %v280_v49  ;;  %v329_v2 = vadd.f32 %v313_v32, %v281_v30  ;;  %v330_v19 = vadd.f32 %v314_v16, %v282_v28  ;;  %v334_v8 = vmul.f32 0.25, %v318_v55 }
  0x5e   :  { %v335_v38 = vmul.f32 0.25, %v319_v46  ;;  %v336_v20 = vmul.f32 0.25, %v320_v31  ;;  %v337_v39 = vmul.f32 0.25, %v321_v6  ;;  %v338_v5 = vmul.f32 0.25, %v322_v63 }
  0x5f   :  { %v339_v9 = vmul.f32 0.25, %v323_v15  ;;  %v4474_v29 = vadd.f32 1e-14, %v331_v11  ;;  %v4476_v52 = vadd.f32 1e-14, %v332_v21  ;;  %v340_v48 = vmul.f32 0.25, %v324_v33 }
  0x60   :  { %v341_v22 = vmul.f32 0.25, %v325_v37  ;;  %v342_v54 = vmul.f32 0.25, %v326_v3  ;;  %v4478_v60 = vadd.f32 1e-14, %v333_v18  ;;  %v343_v23 = vmul.f32 0.25, %v327_v0 }
  0x61   :  { %v344_v43 = vmul.f32 0.25, %v328_v1  ;;  %v345_v49 = vmul.f32 0.25, %v329_v2  ;;  %3912 = vrsqrt.f32 %v4474_v29  ;;  %v346_v30 = vmul.f32 0.25, %v330_v19 }
  0x62   :  { %v4481_v28 = vadd.f32 1e-14, %v334_v8  ;;  %v4483_v26 = vadd.f32 1e-14, %v335_v38  ;;  %3914 = vrsqrt.f32 %v4476_v52  ;;  %v4486_v4 = vadd.f32 1e-14, %v336_v20 }
  0x63   :  { %v4488_v44 = vadd.f32 1e-14, %v337_v39  ;;  %v4490_v12 = vadd.f32 1e-14, %v338_v5  ;;  %3916 = vrsqrt.f32 %v4478_v60  ;;  %v4493_v13 = vadd.f32 1e-14, %v339_v9 }
  0x64   :  { %v4495_v47 = vadd.f32 1e-14, %v340_v48  ;;  %v4497_v14 = vadd.f32 1e-14, %v341_v22  ;;  %v4499_v10 = vadd.f32 1e-14, %v342_v54  ;;  %v7166_v36 = vunpack.c.0.s8 %v7165_v53 }
  0x65   :  { %v4501_v50 = vadd.f32 1e-14, %v343_v23  ;;  %v4503_v42 = vadd.f32 1e-14, %v344_v43  ;;  %v4510_v35 = vadd.f32 1e-14, %v345_v49  ;;  %3918 = vrsqrt.f32 %v4481_v28 }
  0x66   :  { %v4508_v57 = vsub.s32 %v7166_v36, %v7164_v7  ;;  %v4512_v51 = vadd.f32 1e-14, %v346_v30  ;;  %vm365_vm0 = vcmp.eq.f32.partialorder %v4474_v29, inf  ;;  %vm367_vm1 = vcmp.eq.f32.partialorder %v4474_v29, 0.0 }
  0x67   :  { %v368_v40 = vand.u32 2147483648, %v4474_v29  ;;  %vm372_vm2 = vcmp.eq.f32.partialorder %v4476_v52, inf  ;;  %3920 = vrsqrt.f32 %v4483_v26  ;;  %vm374_vm3 = vcmp.eq.f32.partialorder %v4476_v52, 0.0 }
  0x68   :  { %7167 = vst [vmem:[#allocation9_spill] sm:$0xff] %v4508_v57  ;;  %v375_v41 = vand.u32 2147483648, %v4476_v52  ;;  %vm379_vm4 = vcmp.eq.f32.partialorder %v4478_v60, inf  ;;  %3922 = vrsqrt.f32 %v4486_v4  ;;  %vm381_vm5 = vcmp.eq.f32.partialorder %v4478_v60, 0.0 }
  0x69   :  { %v382_v58 = vand.u32 2147483648, %v4478_v60  ;;  %vm386_vm6 = vcmp.eq.f32.partialorder %v4481_v28, inf  ;;  %3924 = vrsqrt.f32 %v4488_v44  ;;  %vm388_vm7 = vcmp.eq.f32.partialorder %v4481_v28, 0.0 }
  0x6a   :  { %v389_v59 = vand.u32 2147483648, %v4481_v28  ;;  %vm393_vm8 = vcmp.eq.f32.partialorder %v4483_v26, inf  ;;  %3926 = vrsqrt.f32 %v4490_v12  ;;  %vm395_vm9 = vcmp.eq.f32.partialorder %v4483_v26, 0.0 }
  0x6b   :  { %v3913_v24 = vpop.eup %3912  ;;  %v396_v34 = vand.u32 2147483648, %v4483_v26  ;;  %vm400_vm10 = vcmp.eq.f32.partialorder %v4486_v4, inf  ;;  %v403_v27 = vand.u32 2147483648, %v4486_v4  ;;  %3928 = vrsqrt.f32 %v4493_v13 }
  0x6c   :  { %v3915_v56 = vpop.eup %3914  ;;  %v364_v62 = vmul.f32 %v3913_v24, %v4474_v29  ;;  %vm407_vm12 = vcmp.eq.f32.partialorder %v4488_v44, inf  ;;  %v410_v45 = vand.u32 2147483648, %v4488_v44  ;;  %vm409_vm14 = vcmp.eq.f32.partialorder %v4488_v44, 0.0 }
  0x6d   :  { %v3917_v61 = vpop.eup %3916  ;;  %v371_v25 = vmul.f32 %v3915_v56, %v4476_v52  ;;  %v417_v17 = vand.u32 2147483648, %v4490_v12  ;;  %3930 = vrsqrt.f32 %v4495_v47  ;;  %vm416_vm11 = vcmp.eq.f32.partialorder %v4490_v12, 0.0 }
  0x6e   :  { %v366_v32 = vsel %vm365_vm0, %v4474_v29, %v364_v62  ;;  %v378_v16 = vmul.f32 %v3917_v61, %v4478_v60  ;;  %3932 = vrsqrt.f32 %v4497_v14  ;;  %v424_v46 = vand.u32 2147483648, %v4493_v13 }
  0x6f   :  { %v373_v55 = vsel %vm372_vm2, %v4476_v52, %v371_v25  ;;  %vm428_vm15 = vcmp.eq.f32.partialorder %v4495_v47, inf  ;;  %v431_v31 = vand.u32 2147483648, %v4495_v47  ;;  %v3919_v6 = vpop.eup %3918  ;;  %v4562_v63 = vsel %vm367_vm1, %v368_v40, %v366_v32 }
  0x70   :  { %v380_v15 = vsel %vm379_vm4, %v4478_v60, %v378_v16  ;;  %vm430_vm0 = vcmp.eq.f32.partialorder %v4495_v47, 0.0  ;;  %vm435_vm13 = vcmp.eq.f32.partialorder %v4497_v14, inf  ;;  %3934 = vrsqrt.f32 %v4499_v10 }
  0x71   :  { %v3921_v11 = vpop.eup %3920  ;;  %v4572_v21 = vsel %vm374_vm3, %v375_v41, %v373_v55  ;;  %v385_v33 = vmul.f32 %v3919_v6, %v4481_v28  ;;  %vm437_vm1 = vcmp.eq.f32.partialorder %v4497_v14, 0.0  ;;  %v438_v37 = vand.u32 2147483648, %v4497_v14 }
  0x72   :  { %vm6947_vm2 = vcmask 1043456   ;;  %v3923_v3 = vpop.eup %3922  ;;  %v4579_v18 = vsel %vm381_vm5, %v382_v58, %v380_v15  ;;  %v392_v0 = vmul.f32 %v3921_v11, %v4483_v26  ;;  %vm442_vm4 = vcmp.eq.f32.partialorder %v4499_v10, inf }
  0x73   :  { %3936 = vrsqrt.f32 %v4501_v50  ;;  %v3925_v1 = vpop.eup %3924  ;;  %v387_v2 = vsel %vm386_vm6, %v4481_v28, %v385_v33  ;;  %v399_v19 = vmul.f32 %v3923_v3, %v4486_v4  ;;  %vm444_vm3 = vcmp.eq.f32.partialorder %v4499_v10, 0.0 }
  0x74   :  { %v445_v8 = vand.u32 2147483648, %v4499_v10  ;;  %v3927_v38 = vpop.eup %3926  ;;  %v394_v20 = vsel %vm393_vm8, %v4483_v26, %v392_v0  ;;  %v406_v39 = vmul.f32 %v3925_v1, %v4488_v44  ;;  %vm449_vm5 = vcmp.eq.f32.partialorder %v4501_v50, inf }
  0x75   :  { %3938 = vrsqrt.f32 %v4503_v42  ;;  %v3929_v5 = vpop.eup %3928  ;;  %v4598_v9 = vsel %vm388_vm7, %v389_v59, %v387_v2  ;;  %v401_v29 = vsel %vm400_vm10, %v4486_v4, %v399_v19  ;;  %v413_v52 = vmul.f32 %v3927_v38, %v4490_v12 }
  0x76   :  { %vm451_vm6 = vcmp.eq.f32.partialorder %v4501_v50, 0.0  ;;  %v452_v48 = vand.u32 2147483648, %v4501_v50  ;;  %v4608_v22 = vsel %vm395_vm9, %v396_v34, %v394_v20  ;;  %v408_v54 = vsel %vm407_vm12, %v4488_v44, %v406_v39 }
  0x77   :  { %v420_v60 = vmul.f32 %v3929_v5, %v4493_v13  ;;  %vm456_vm7 = vcmp.eq.f32.partialorder %v4503_v42, inf  ;;  %v3931_v23 = vpop.eup %3930  ;;  %vm7168_vm8 = vcmp.eq.f32.partialorder %v4486_v4, 0.0  ;;  %vm7169_vm10 = vcmp.eq.f32.partialorder %v4490_v12, inf }
  0x78   :  { %v4617_v43 = vsel %vm7168_vm8, %v403_v27, %v401_v29  ;;  %v415_v49 = vsel %vm7169_vm10, %v4490_v12, %v413_v52  ;;  %vm458_vm9 = vcmp.eq.f32.partialorder %v4503_v42, 0.0  ;;  %3940 = vrsqrt.f32 %v4510_v35  ;;  %v3933_v30 = vpop.eup %3932 }
  0x79   :  { %v4626_v28 = vsel %vm409_vm14, %v410_v45, %v408_v54  ;;  %vm7170_vm12 = vcmp.eq.f32.partialorder %v4493_v13, inf  ;;  %v427_v4 = vmul.f32 %v3931_v23, %v4495_v47  ;;  %v459_v7 = vand.u32 2147483648, %v4503_v42 }
  0x7a   :  { %v422_v26 = vsel %vm7170_vm12, %v4493_v13, %v420_v60  ;;  %v4635_v53 = vsel %vm416_vm11, %v417_v17, %v415_v49  ;;  %vm7171_vm8 = vcmp.eq.f32.partialorder %v4493_v13, 0.0  ;;  %v434_v44 = vmul.f32 %v3933_v30, %v4497_v14  ;;  %v3935_v40 = vpop.eup %3934 }
  0x7b   :  { %v4639_v36 = vsel %vm7171_vm8, %v424_v46, %v422_v26  ;;  %vm463_vm14 = vcmp.eq.f32.partialorder %v4510_v35, inf  ;;  %v429_v41 = vsel %vm428_vm15, %v4495_v47, %v427_v4  ;;  %vm465_vm10 = vcmp.eq.f32.partialorder %v4510_v35, 0.0 }
  0x7c   :  { %v466_v58 = vand.u32 2147483648, %v4510_v35  ;;  %3942 = vrsqrt.f32 %v4512_v51  ;;  %v4651_v12 = vsel %vm430_vm0, %v431_v31, %v429_v41  ;;  %v436_v13 = vsel %vm435_vm13, %v4497_v14, %v434_v44 }
  0x7d   :  { %v441_v59 = vmul.f32 %v3935_v40, %v4499_v10  ;;  %v473_v24 = vand.u32 2147483648, %v4512_v51  ;;  %v3937_v34 = vpop.eup %3936  ;;  %v4660_v27 = vsel %vm437_vm1, %v438_v37, %v436_v13  ;;  %vm470_vm11 = vcmp.eq.f32.partialorder %v4512_v51, inf }
  0x7e   :  { %v476_v47 = vsel %vm6947_vm2, %v4562_v63, 0.0  ;;  %v483_v56 = vsel %vm6947_vm2, %v4572_v21, 0.0  ;;  %v490_v62 = vsel %vm6947_vm2, %v4579_v18, 0.0  ;;  %v448_v61 = vmul.f32 %v3937_v34, %v4501_v50 }
  0x7f   :  { %v443_v45 = vsel %vm442_vm4, %v4499_v10, %v441_v59  ;;  %vm472_vm13 = vcmp.eq.f32.partialorder %v4512_v51, 0.0  ;;  %v477_v14 = vrot.slane %v476_v47, 4  ;;  %v484_v25 = vrot.slane %v483_v56, 4  ;;  %v3939_v17 = vpop.eup %3938 }
  0x80   :  { %v4676_v32 = vsel %vm444_vm3, %v445_v8, %v443_v45  ;;  %v491_v16 = vrot.slane %v490_v62, 4  ;;  %v497_v55 = vsel %vm6947_vm2, %v4598_v9, 0.0  ;;  %v504_v46 = vsel %vm6947_vm2, %v4608_v22, 0.0 }
  0x81   :  { %v450_v31 = vsel %vm449_vm5, %v4501_v50, %v448_v61  ;;  %v455_v6 = vmul.f32 %v3939_v17, %v4503_v42  ;;  %v478_v15 = vadd.f32 %v477_v14, %v476_v47  ;;  %v485_v11 = vadd.f32 %v484_v25, %v483_v56 }
  0x82   :  { %v4688_v10 = vsel %vm451_vm6, %v452_v48, %v450_v31  ;;  %v492_v33 = vadd.f32 %v491_v16, %v490_v62  ;;  %v498_v37 = vrot.slane %v497_v55, 4  ;;  %v505_v3 = vrot.slane %v504_v46, 4  ;;  %v3941_v0 = vpop.eup %3940 }
  0x83   :  { %v457_v1 = vsel %vm456_vm7, %v4503_v42, %v455_v6  ;;  %v479_v2 = vrot.slane %v478_v15, 2  ;;  %v486_v19 = vrot.slane %v485_v11, 2  ;;  %v511_v8 = vsel %vm6947_vm2, %v4617_v43, 0.0 }
  0x84   :  { %v4697_v38 = vsel %vm458_vm9, %v459_v7, %v457_v1  ;;  %v462_v50 = vmul.f32 %v3941_v0, %v4510_v35  ;;  %v493_v20 = vrot.slane %v492_v33, 2  ;;  %v499_v39 = vadd.f32 %v498_v37, %v497_v55 }
  0x85   :  { %v480_v5 = vadd.f32 %v479_v2, %v478_v15  ;;  %v487_v29 = vadd.f32 %v486_v19, %v485_v11  ;;  %v506_v52 = vadd.f32 %v505_v3, %v504_v46  ;;  %v512_v48 = vrot.slane %v511_v8, 4 }
  0x86   :  { %v3943_v54 = vpop.eup %3942  ;;  %v464_v60 = vsel %vm463_vm14, %v4510_v35, %v462_v50  ;;  %v494_v23 = vadd.f32 %v493_v20, %v492_v33  ;;  %v500_v49 = vrot.slane %v499_v39, 2  ;;  %v518_v42 = vsel %vm6947_vm2, %v4626_v28, 0.0 }
  0x87   :  { %v4707_v30 = vsel %vm465_vm10, %v466_v58, %v464_v60  ;;  %v469_v26 = vmul.f32 %v3943_v54, %v4512_v51  ;;  %v481_v4 = vrot.slane %v480_v5, 1  ;;  %v488_v7 = vrot.slane %v487_v29, 1 }
  0x88   :  { %v495_v44 = vrot.slane %v494_v23, 1  ;;  %v501_v40 = vadd.f32 %v500_v49, %v499_v39  ;;  %v507_v41 = vrot.slane %v506_v52, 2  ;;  %v513_v13 = vadd.f32 %v512_v48, %v511_v8 }
  0x89   :  { %v471_v59 = vsel %vm470_vm11, %v4512_v51, %v469_v26  ;;  %v482_v34 = vadd.f32 %v481_v4, %v480_v5  ;;  %v489_v47 = vadd.f32 %v488_v7, %v487_v29  ;;  %v519_v56 = vrot.slane %v518_v42, 4 }
  0x8a   :  { %v4715_v35 = vsel %vm472_vm13, %v473_v24, %v471_v59  ;;  %v496_v58 = vadd.f32 %v495_v44, %v494_v23  ;;  %v502_v62 = vrot.slane %v501_v40, 1  ;;  %v508_v45 = vadd.f32 %v507_v41, %v506_v52 }
  0x8b   :  { %v514_v61 = vrot.slane %v513_v13, 2  ;;  %v520_v14 = vadd.f32 %v519_v56, %v518_v42  ;;  %v525_v25 = vsel %vm6947_vm2, %v4635_v53, 0.0  ;;  %v540_v17 = vcombine.low %v482_v34, %v489_v47 }
  0x8c   :  { %v503_v16 = vadd.f32 %v502_v62, %v501_v40  ;;  %v509_v55 = vrot.slane %v508_v45, 1  ;;  %v526_v46 = vrot.slane %v525_v25, 4  ;;  %v599_v31 = vrot.slane %v4562_v63, 4 }
  0x8d   :  { %v515_v6 = vadd.f32 %v514_v61, %v513_v13  ;;  %v521_v15 = vrot.slane %v520_v14, 2  ;;  %v550_v51 = vrot.slane %v540_v17, %v4508_v57  ;;  %v600_v24 = vrot.slane %v4572_v21, 4 }
  0x8e   :  { %v510_v11 = vadd.f32 %v509_v55, %v508_v45  ;;  %v527_v33 = vadd.f32 %v526_v46, %v525_v25  ;;  %v541_v37 = vcombine.low %v496_v58, %v503_v16  ;;  %v601_v3 = vrot.slane %v4579_v18, 4 }
  0x8f   :  { %v516_v0 = vrot.slane %v515_v6, 1  ;;  %v522_v1 = vadd.f32 %v521_v15, %v520_v14  ;;  %v602_v2 = vrot.slane %v4598_v9, 4  ;;  %v603_v19 = vrot.slane %v4608_v22, 4 }
  0x90   :  { %v528_v8 = vrot.slane %v527_v33, 2  ;;  %v557_v63 = vrot.slane %v541_v37, %v4508_v57  ;;  %v604_v50 = vrot.slane %v4617_v43, 4  ;;  %v605_v20 = vrot.slane %v4626_v28, 4 }
  0x91   :  { %v517_v39 = vadd.f32 %v516_v0, %v515_v6  ;;  %v523_v21 = vrot.slane %v522_v1, 1  ;;  %v606_v5 = vrot.slane %v4635_v53, 4  ;;  %v615_v29 = vsel %vm6947_vm2, %v599_v31, 0.0 }
  0x92   :  { %v529_v18 = vadd.f32 %v528_v8, %v527_v33  ;;  %v572_v52 = vcombine.low %v550_v51, %v557_v63  ;;  %v616_v48 = vrot.slane %v615_v29, 4  ;;  %v622_v9 = vsel %vm6947_vm2, %v600_v24, 0.0 }
  0x93   :  { %v524_v54 = vadd.f32 %v523_v21, %v522_v1  ;;  %v542_v22 = vcombine.low %v510_v11, %v517_v39  ;;  %v623_v60 = vrot.slane %v622_v9, 4  ;;  %v629_v23 = vsel %vm6947_vm2, %v601_v3, 0.0 }
  0x94   :  { %v530_v49 = vrot.slane %v529_v18, 1  ;;  %v580_v43 = vrot.slane %v572_v52, %v4508_v57  ;;  %v617_v28 = vadd.f32 %v616_v48, %v615_v29  ;;  %v630_v42 = vrot.slane %v629_v23, 4 }
  0x95   :  { %v564_v26 = vrot.slane %v542_v22, %v4508_v57  ;;  %v624_v53 = vadd.f32 %v623_v60, %v622_v9  ;;  %v636_v4 = vsel %vm6947_vm2, %v602_v2, 0.0  ;;  %v643_v7 = vsel %vm6947_vm2, %v603_v19, 0.0 }
  0x96   :  { %v531_v44 = vadd.f32 %v530_v49, %v529_v18  ;;  %v618_v40 = vrot.slane %v617_v28, 2  ;;  %v631_v41 = vadd.f32 %v630_v42, %v629_v23  ;;  %v637_v13 = vrot.slane %v636_v4, 4 }
  0x97   :  { %v625_v59 = vrot.slane %v624_v53, 2  ;;  %v644_v34 = vrot.slane %v643_v7, 4  ;;  %v650_v47 = vsel %vm6947_vm2, %v604_v50, 0.0  ;;  %v657_v56 = vsel %vm6947_vm2, %v605_v20, 0.0 }
  0x98   :  { %v543_v58 = vcombine.low %v524_v54, %v531_v44  ;;  %v619_v62 = vadd.f32 %v618_v40, %v617_v28  ;;  %v632_v45 = vrot.slane %v631_v41, 2  ;;  %v638_v61 = vadd.f32 %v637_v13, %v636_v4 }
  0x99   :  { %v626_v14 = vadd.f32 %v625_v59, %v624_v53  ;;  %v645_v25 = vadd.f32 %v644_v34, %v643_v7  ;;  %v651_v17 = vrot.slane %v650_v47, 4  ;;  %v658_v16 = vrot.slane %v657_v56, 4 }
  0x9a   :  { %v571_v55 = vrot.slane %v543_v58, %v4508_v57  ;;  %v620_v46 = vrot.slane %v619_v62, 1  ;;  %v633_v31 = vadd.f32 %v632_v45, %v631_v41  ;;  %v639_v6 = vrot.slane %v638_v61, 2 }
  0x9b   :  { %v627_v15 = vrot.slane %v626_v14, 1  ;;  %v646_v51 = vrot.slane %v645_v25, 2  ;;  %v652_v24 = vadd.f32 %v651_v17, %v650_v47  ;;  %v659_v11 = vadd.f32 %v658_v16, %v657_v56 }
  0x9c   :  { %v573_v33 = vcombine.low %v564_v26, %v571_v55  ;;  %v621_v37 = vadd.f32 %v620_v46, %v619_v62  ;;  %v634_v3 = vrot.slane %v633_v31, 1  ;;  %v640_v0 = vadd.f32 %v639_v6, %v638_v61 }
  0x9d   :  { %v628_v1 = vadd.f32 %v627_v15, %v626_v14  ;;  %v647_v2 = vadd.f32 %v646_v51, %v645_v25  ;;  %v653_v19 = vrot.slane %v652_v24, 2  ;;  %v660_v8 = vrot.slane %v659_v11, 2 }
  0x9e   :  { %v587_v63 = vrot.slane %v573_v33, %v4508_v57  ;;  %v635_v50 = vadd.f32 %v634_v3, %v633_v31  ;;  %v641_v20 = vrot.slane %v640_v0, 1  ;;  %v664_v39 = vsel %vm6947_vm2, %v606_v5, 0.0 }
  0x9f   :  { %v648_v21 = vrot.slane %v647_v2, 1  ;;  %v654_v29 = vadd.f32 %v653_v19, %v652_v24  ;;  %v661_v18 = vadd.f32 %v660_v8, %v659_v11  ;;  %v665_v52 = vrot.slane %v664_v39, 4 }
  0xa0   :  { %v588_v48 = vcombine.low %v580_v43, %v587_v63  ;;  %v642_v9 = vadd.f32 %v641_v20, %v640_v0  ;;  %v679_v54 = vcombine.low %v621_v37, %v628_v1  ;;  %v731_v22 = vsel %vm6947_vm2, %v4639_v36, 0.0 }
  0xa1   :  { %v649_v60 = vadd.f32 %v648_v21, %v647_v2  ;;  %v655_v23 = vrot.slane %v654_v29, 1  ;;  %v662_v49 = vrot.slane %v661_v18, 1  ;;  %v666_v28 = vadd.f32 %v665_v52, %v664_v39 }
  0xa2   :  { %590 = vst [vmem:[#allocation5] ss:$4 sm:$0xff] %v588_v48  ;;  %v680_v42 = vcombine.low %v635_v50, %v642_v9  ;;  %v689_v26 = vrot.slane %v679_v54, %v4508_v57  ;;  %v732_v53 = vrot.slane %v731_v22, 4  ;;  %v738_v5 = vsel %vm6947_vm2, %v4651_v12, 0.0 }
  0xa3   :  { %v656_v4 = vadd.f32 %v655_v23, %v654_v29  ;;  %v663_v7 = vadd.f32 %v662_v49, %v661_v18  ;;  %v667_v43 = vrot.slane %v666_v28, 2  ;;  %v739_v44 = vrot.slane %v738_v5, 4 }
  0xa4   :  { %v696_v40 = vrot.slane %v680_v42, %v4508_v57  ;;  %v733_v41 = vadd.f32 %v732_v53, %v731_v22  ;;  %v745_v13 = vsel %vm6947_vm2, %v4660_v27, 0.0  ;;  %v752_v59 = vsel %vm6947_vm2, %v4676_v32, 0.0 }
  0xa5   :  { %v668_v34 = vadd.f32 %v667_v43, %v666_v28  ;;  %v681_v47 = vcombine.low %v649_v60, %v656_v4  ;;  %v740_v56 = vadd.f32 %v739_v44, %v738_v5  ;;  %v746_v58 = vrot.slane %v745_v13, 4 }
  0xa6   :  { %v711_v62 = vcombine.low %v689_v26, %v696_v40  ;;  %v734_v45 = vrot.slane %v733_v41, 2  ;;  %v753_v61 = vrot.slane %v752_v59, 4  ;;  %v759_v14 = vsel %vm6947_vm2, %v4688_v10, 0.0 }
  0xa7   :  { %v669_v25 = vrot.slane %v668_v34, 1  ;;  %v703_v17 = vrot.slane %v681_v47, %v4508_v57  ;;  %v741_v16 = vrot.slane %v740_v56, 2  ;;  %v747_v55 = vadd.f32 %v746_v58, %v745_v13 }
  0xa8   :  { %v719_v46 = vrot.slane %v711_v62, %v4508_v57  ;;  %v735_v31 = vadd.f32 %v734_v45, %v733_v41  ;;  %v754_v6 = vadd.f32 %v753_v61, %v752_v59  ;;  %v760_v15 = vrot.slane %v759_v14, 4 }
  0xa9   :  { %v670_v51 = vadd.f32 %v669_v25, %v668_v34  ;;  %v742_v24 = vadd.f32 %v741_v16, %v740_v56  ;;  %v748_v11 = vrot.slane %v747_v55, 2  ;;  %v766_v33 = vsel %vm6947_vm2, %v4697_v38, 0.0 }
  0xaa   :  { %v736_v37 = vrot.slane %v735_v31, 1  ;;  %v755_v3 = vrot.slane %v754_v6, 2  ;;  %v761_v0 = vadd.f32 %v760_v15, %v759_v14  ;;  %v767_v1 = vrot.slane %v766_v33, 4 }
  0xab   :  { %v682_v2 = vcombine.low %v663_v7, %v670_v51  ;;  %v743_v19 = vrot.slane %v742_v24, 1  ;;  %v749_v8 = vadd.f32 %v748_v11, %v747_v55  ;;  %v773_v63 = vsel %vm6947_vm2, %v4707_v30, 0.0 }
  0xac   :  { %v737_v50 = vadd.f32 %v736_v37, %v735_v31  ;;  %v756_v20 = vadd.f32 %v755_v3, %v754_v6  ;;  %v762_v39 = vrot.slane %v761_v0, 2  ;;  %v768_v21 = vadd.f32 %v767_v1, %v766_v33 }
  0xad   :  { %v710_v29 = vrot.slane %v682_v2, %v4508_v57  ;;  %v744_v18 = vadd.f32 %v743_v19, %v742_v24  ;;  %v750_v52 = vrot.slane %v749_v8, 1  ;;  %v774_v48 = vrot.slane %v773_v63, 4 }
  0xae   :  { %v757_v9 = vrot.slane %v756_v20, 1  ;;  %v763_v54 = vadd.f32 %v762_v39, %v761_v0  ;;  %v769_v22 = vrot.slane %v768_v21, 2  ;;  %v780_v60 = vsel %vm6947_vm2, %v4715_v35, 0.0 }
  0xaf   :  { %v712_v23 = vcombine.low %v703_v17, %v710_v29  ;;  %v751_v49 = vadd.f32 %v750_v52, %v749_v8  ;;  %v775_v28 = vadd.f32 %v774_v48, %v773_v63  ;;  %v781_v42 = vrot.slane %v780_v60, 4 }
  0xb0   :  { %v758_v26 = vadd.f32 %v757_v9, %v756_v20  ;;  %v764_v53 = vrot.slane %v763_v54, 1  ;;  %v770_v5 = vadd.f32 %v769_v22, %v768_v21  ;;  %v795_v4 = vcombine.low %v737_v50, %v744_v18 }
  0xb1   :  { %v726_v7 = vrot.slane %v712_v23, %v4508_v57  ;;  %v776_v43 = vrot.slane %v775_v28, 2  ;;  %v782_v44 = vadd.f32 %v781_v42, %v780_v60  ;;  %v855_v40 = vrot.slane %v4639_v36, 4 }
  0xb2   :  { %v765_v41 = vadd.f32 %v764_v53, %v763_v54  ;;  %v771_v13 = vrot.slane %v770_v5, 1  ;;  %v796_v59 = vcombine.low %v751_v49, %v758_v26  ;;  %v805_v34 = vrot.slane %v795_v4, %v4508_v57 }
  0xb3   :  { %v727_v47 = vcombine.low %v719_v46, %v726_v7  ;;  %v777_v56 = vadd.f32 %v776_v43, %v775_v28  ;;  %v783_v58 = vrot.slane %v782_v44, 2  ;;  %v856_v62 = vrot.slane %v4651_v12, 4 }
  0xb4   :  { %v772_v45 = vadd.f32 %v771_v13, %v770_v5  ;;  %v812_v61 = vrot.slane %v796_v59, %v4508_v57  ;;  %v857_v14 = vrot.slane %v4660_v27, 4  ;;  %v858_v25 = vrot.slane %v4676_v32, 4 }
  0xb5   :  { %730 = vst [vmem:[#allocation5 + $0x1] ss:$4 sm:$0xff] %v727_v47  ;;  %v778_v17 = vrot.slane %v777_v56, 1  ;;  %v784_v36 = vadd.f32 %v783_v58, %v782_v44  ;;  %v859_v16 = vrot.slane %v4688_v10, 4  ;;  %v860_v55 = vrot.slane %v4697_v38, 4 }
  0xb6   :  { %v797_v31 = vcombine.low %v765_v41, %v772_v45  ;;  %v827_v46 = vcombine.low %v805_v34, %v812_v61  ;;  %v861_v6 = vrot.slane %v4707_v30, 4  ;;  %v862_v12 = vrot.slane %v4715_v35, 4 }
  0xb7   :  { %v779_v15 = vadd.f32 %v778_v17, %v777_v56  ;;  %v785_v51 = vrot.slane %v784_v36, 1  ;;  %v871_v24 = vsel %vm6947_vm2, %v855_v40, 0.0  ;;  %v878_v27 = vsel %vm6947_vm2, %v856_v62, 0.0 }
  0xb8   :  { %v819_v32 = vrot.slane %v797_v31, %v4508_v57  ;;  %v835_v11 = vrot.slane %v827_v46, %v4508_v57  ;;  %v872_v33 = vrot.slane %v871_v24, 4  ;;  %v879_v10 = vrot.slane %v878_v27, 4 }
  0xb9   :  { %v786_v37 = vadd.f32 %v785_v51, %v784_v36  ;;  %v885_v38 = vsel %vm6947_vm2, %v857_v14, 0.0  ;;  %v892_v3 = vsel %vm6947_vm2, %v858_v25, 0.0  ;;  %v899_v30 = vsel %vm6947_vm2, %v859_v16, 0.0  ;;  %v4785_v36 = vld [vmem:[#allocation2 + $0x200] sm:$0xff]  ;;  %v4787_v16 = vld [vmem:[#allocation2 + $0x208] sm:$0xff] }
  0xba   :  { %v873_v35 = vadd.f32 %v872_v33, %v871_v24  ;;  %v880_v0 = vadd.f32 %v879_v10, %v878_v27  ;;  %v886_v1 = vrot.slane %v885_v38, 4  ;;  %v893_v2 = vrot.slane %v892_v3, 4  ;;  %v4795_v51 = vld [vmem:[#allocation2 + $0x220] sm:$0xff]  ;;  %v4799_v27 = vld [vmem:[#allocation2 + $0x288] sm:$0xff] }
  0xbb   :  { %v798_v19 = vcombine.low %v779_v15, %v786_v37  ;;  %v900_v8 = vrot.slane %v899_v30, 4  ;;  %v906_v63 = vsel %vm6947_vm2, %v860_v55, 0.0  ;;  %v913_v50 = vsel %vm6947_vm2, %v861_v6, 0.0  ;;  %v4789_v55 = vld [vmem:[#allocation2 + $0x210] sm:$0xff]  ;;  %v4793_v15 = vld [vmem:[#allocation2 + $0x218] sm:$0xff]  ;;  %v4797_v24 = vld [vmem:[#allocation2 + $0x280] sm:$0xff] }
  0xbc   :  { %v874_v20 = vrot.slane %v873_v35, 2  ;;  %v881_v39 = vrot.slane %v880_v0, 2  ;;  %v887_v21 = vadd.f32 %v886_v1, %v885_v38  ;;  %v894_v29 = vadd.f32 %v893_v2, %v892_v3  ;;  %7172 = vst [vmem:[#allocation10_spill] sm:$0xff] %v4799_v27  ;;  %v4804_v10 = vld [vmem:[#allocation2 + $0x228] sm:$0xff]  ;;  %v4806_v37 = vld [vmem:[#allocation2 + $0x230] sm:$0xff]  ;;  %v4808_v38 = vld [vmem:[#allocation2 + $0x238] sm:$0xff] }
  0xbd   :  { %v826_v18 = vrot.slane %v798_v19, %v4508_v57  ;;  %v901_v52 = vadd.f32 %v900_v8, %v899_v30  ;;  %v907_v48 = vrot.slane %v906_v63, 4  ;;  %v914_v9 = vrot.slane %v913_v50, 4  ;;  %v4810_v3 = vld [vmem:[#allocation2 + $0x298] sm:$0xff]  ;;  %v4812_v30 = vld [vmem:[#allocation2 + $0x2a0] sm:$0xff]  ;;  %v4818_v19 = vld [vmem:[#allocation2 + $0x248] sm:$0xff] }
  0xbe   :  { %v875_v54 = vadd.f32 %v874_v20, %v873_v35  ;;  %v882_v22 = vadd.f32 %v881_v39, %v880_v0  ;;  %v888_v60 = vrot.slane %v887_v21, 2  ;;  %v895_v23 = vrot.slane %v894_v29, 2  ;;  %7174 = vst [vmem:[#allocation12_spill] sm:$0xff] %v4810_v3  ;;  %7175 = vst [vmem:[#allocation13_spill] sm:$0xff] %v4812_v30  ;;  %v4814_v35 = vld [vmem:[#allocation2 + $0x2a8] sm:$0xff]  ;;  %v4816_v2 = vld [vmem:[#allocation2 + $0x240] sm:$0xff] }
  0xbf   :  { %v828_v49 = vcombine.low %v819_v32, %v826_v18  ;;  %v902_v28 = vrot.slane %v901_v52, 2  ;;  %v908_v42 = vadd.f32 %v907_v48, %v906_v63  ;;  %v915_v26 = vadd.f32 %v914_v9, %v913_v50  ;;  %7176 = vst [vmem:[#allocation14_spill] sm:$0xff] %v4814_v35  ;;  %v4820_v8 = vld [vmem:[#allocation2 + $0x250] sm:$0xff]  ;;  %v4822_v63 = vld [vmem:[#allocation2 + $0x258] sm:$0xff]  ;;  %v4828_v39 = vld [vmem:[#allocation2 + $0x2c0] sm:$0xff] }
  0xc0   :  { %v876_v53 = vrot.slane %v875_v54, 1  ;;  %v883_v5 = vrot.slane %v882_v22, 1  ;;  %v889_v4 = vadd.f32 %v888_v60, %v887_v21  ;;  %v896_v7 = vadd.f32 %v895_v23, %v894_v29  ;;  %v4824_v50 = vld [vmem:[#allocation2 + $0x2b0] sm:$0xff]  ;;  %v4826_v20 = vld [vmem:[#allocation2 + $0x2b8] sm:$0xff]  ;;  %7179 = vst [vmem:[#allocation17_spill] sm:$0xff] %v4828_v39  ;;  %v4831_v29 = vld [vmem:[#allocation2 + $0x260] sm:$0xff] }
  0xc1   :  { %v842_v43 = vrot.slane %v828_v49, %v4508_v57  ;;  %v903_v44 = vadd.f32 %v902_v28, %v901_v52  ;;  %v909_v40 = vrot.slane %v908_v42, 2  ;;  %v916_v41 = vrot.slane %v915_v26, 2  ;;  %7177 = vst [vmem:[#allocation15_spill] sm:$0xff] %v4824_v50  ;;  %7178 = vst [vmem:[#allocation16_spill] sm:$0xff] %v4826_v20  ;;  %v4833_v18 = vld [vmem:[#allocation2 + $0x268] sm:$0xff]  ;;  %v4837_v48 = vld [vmem:[#allocation2 + $0x2d0] sm:$0xff] }
  0xc2   :  { %v877_v13 = vadd.f32 %v876_v53, %v875_v54  ;;  %v884_v59 = vadd.f32 %v883_v5, %v882_v22  ;;  %v890_v34 = vrot.slane %v889_v4, 1  ;;  %v897_v47 = vrot.slane %v896_v7, 1  ;;  %v4835_v52 = vld [vmem:[#allocation2 + $0x2c8] sm:$0xff]  ;;  %7181 = vst [vmem:[#allocation19_spill] sm:$0xff] %v4837_v48  ;;  %v4839_v9 = vld [vmem:[#allocation2 + $0x2d8] sm:$0xff]  ;;  %v4844_v23 = vld [vmem:[#allocation2 + $0x270] sm:$0xff] }
  0xc3   :  { %v843_v56 = vcombine.low %v835_v11, %v842_v43  ;;  %v904_v58 = vrot.slane %v903_v44, 1  ;;  %v910_v62 = vadd.f32 %v909_v40, %v908_v42  ;;  %v917_v45 = vadd.f32 %v916_v41, %v915_v26  ;;  %7180 = vst [vmem:[#allocation18_spill] sm:$0xff] %v4835_v52  ;;  %7182 = vst [vmem:[#allocation21_spill] sm:$0xff] %v4839_v9  ;;  %v4846_v49 = vld [vmem:[#allocation2 + $0x278] sm:$0xff]  ;;  %v4848_v28 = vld [vmem:[#allocation2 + $0x2e0] sm:$0xff] }
  0xc4   :  { %v891_v61 = vadd.f32 %v890_v34, %v889_v4  ;;  %v898_v14 = vadd.f32 %v897_v47, %v896_v7  ;;  %v920_v25 = vsel %vm6947_vm2, %v862_v12, 0.0  ;;  %v935_v17 = vcombine.low %v877_v13, %v884_v59  ;;  %v4801_v12 = vld [vmem:[#allocation2 + $0x290] sm:$0xff]  ;;  %7183 = vst [vmem:[#allocation22_spill] sm:$0xff] %v4848_v28  ;;  %v4850_v42 = vld [vmem:[#allocation2 + $0x2e8] sm:$0xff]  ;;  %v4860_v43 = vld [vmem:[#allocation2 + $0x2f8] sm:$0xff] }
  0xc5   :  { %846 = vst [vmem:[#allocation5 + $0x2] ss:$4 sm:$0xff] %v843_v56  ;;  %v4791_v31 = vadd.f32 %v904_v58, %v903_v44  ;;  %v911_v46 = vrot.slane %v910_v62, 1  ;;  %v921_v6 = vrot.slane %v920_v25, 4  ;;  %7173 = vst [vmem:[#allocation11_spill] sm:$0xff] %v4801_v12  ;;  %v918_v32 = vrot.slane %v917_v45, 1 }
  0xc6   :  { %v936_v11 = vcombine.low %v891_v61, %v898_v14  ;;  %v945_v33 = vrot.slane %v935_v17, %v4508_v57  ;;  %v1021_v54 = vadd.f32 %v4797_v24, %v4785_v36  ;;  %7184 = vst [vmem:[#allocation23_spill] sm:$0xff] %v4850_v42  ;;  %v4852_v26 = vld [vmem:[#allocation2 + $0x2f0] sm:$0xff]  ;;  %v1022_v53 = vadd.f32 %v4799_v27, %v4787_v16  ;;  %v4866_v41 = vld [vmem:[#allocation2 + $0x300] sm:$0xff]  ;;  %v4868_v13 = vld [vmem:[#allocation2 + $0x308] sm:$0xff] }
  0xc7   :  { %v912_v0 = vadd.f32 %v911_v46, %v910_v62  ;;  %v922_v1 = vadd.f32 %v921_v6, %v920_v25  ;;  %7185 = vst [vmem:[#allocation24_spill] sm:$0xff] %v4852_v26  ;;  %v1023_v5 = vadd.f32 %v4801_v12, %v4789_v55  ;;  %v4858_v4 = vadd.f32 %v918_v32, %v917_v45  ;;  %v4876_v58 = vld [vmem:[#allocation2 + $0x310] sm:$0xff]  ;;  %v4878_v62 = vld [vmem:[#allocation2 + $0x318] sm:$0xff]  ;;  %v4880_v45 = vld [vmem:[#allocation2 + $0x320] sm:$0xff] }
  0xc8   :  { %v952_v21 = vrot.slane %v936_v11, %v4508_v57  ;;  %7186 = vst [vmem:[#allocation49_spill] sm:$0xff] %v4860_v43  ;;  %v1024_v44 = vadd.f32 %v4810_v3, %v4793_v15  ;;  %v1025_v40 = vadd.f32 %v4812_v30, %v4795_v51  ;;  %7187 = vst [vmem:[#allocation25_spill] sm:$0xff] %v4866_v41  ;;  %v4892_v46 = vld [vmem:[#allocation2 + $0x330] sm:$0xff]  ;;  %v4894_v6 = vld [vmem:[#allocation2 + $0x338] sm:$0xff] }
  0xc9   :  { %v923_v22 = vrot.slane %v922_v1, 2  ;;  %v937_v60 = vcombine.low %v4791_v31, %v912_v0  ;;  %v1026_v34 = vadd.f32 %v4814_v35, %v4804_v10  ;;  %v1027_v47 = vadd.f32 %v4824_v50, %v4806_v37  ;;  %7188 = vst [vmem:[#allocation50_spill] sm:$0xff] %v4880_v45  ;;  %v4890_v31 = vld [vmem:[#allocation2 + $0x328] sm:$0xff]  ;;  %7190 = vst [vmem:[#allocation51_spill] sm:$0xff] %v4892_v46  ;;  %v4923_v50 = vld [vmem:[#allocation2 + $0x370] sm:$0xff] }
  0xca   :  { %v967_v7 = vcombine.low %v945_v33, %v952_v21  ;;  %v1028_v56 = vadd.f32 %v4826_v20, %v4808_v38  ;;  %v1029_v61 = vadd.f32 %v4828_v39, %v4816_v2  ;;  %v1030_v14 = vadd.f32 %v4835_v52, %v4818_v19  ;;  %7189 = vst [vmem:[#allocation26_spill] sm:$0xff] %v4890_v31  ;;  %v4905_v21 = vld [vmem:[#allocation2 + $0x348] sm:$0xff]  ;;  %v4916_v52 = vld [vmem:[#allocation2 + $0x358] sm:$0xff] }
  0xcb   :  { %v924_v59 = vadd.f32 %v923_v22, %v922_v1  ;;  %v1031_v25 = vadd.f32 %v4837_v48, %v4820_v8  ;;  %v1032_v17 = vadd.f32 %v4839_v9, %v4822_v63  ;;  %7191 = vst [vmem:[#allocation27_spill] sm:$0xff] %v4894_v6  ;;  %v4897_v11 = vrot.slane %v937_v60, %v4508_v57  ;;  %v4903_v1 = vld [vmem:[#allocation2 + $0x340] sm:$0xff]  ;;  %v4907_v22 = vld [vmem:[#allocation2 + $0x350] sm:$0xff]  ;;  %v4925_v35 = vld [vmem:[#allocation2 + $0x378] sm:$0xff] }
  0xcc   :  { %v1033_v33 = vadd.f32 %v4848_v28, %v4831_v29  ;;  %v1034_v0 = vadd.f32 %v4850_v42, %v4833_v18  ;;  %7192 = vst [vmem:[#allocation28_spill] sm:$0xff] %v4903_v1  ;;  %7193 = vst [vmem:[#allocation29_spill] sm:$0xff] %v4905_v21  ;;  %v4910_v9 = vrot.slane %v967_v7, %v4508_v57  ;;  %v4918_v28 = vld [vmem:[#allocation2 + $0x360] sm:$0xff]  ;;  %v4920_v42 = vld [vmem:[#allocation2 + $0x368] sm:$0xff] }
  0xcd   :  { %v925_v32 = vrot.slane %v924_v59, 1  ;;  %7194 = vst [vmem:[#allocation30_spill] sm:$0xff] %v4907_v22  ;;  %v1035_v48 = vadd.f32 %v4852_v26, %v4844_v23  ;;  %v1036_v60 = vadd.f32 %v4860_v43, %v4846_v49  ;;  %7195 = vst [vmem:[#allocation31_spill] sm:$0xff] %v4916_v52  ;;  %v1054_v39 = vadd.f32 %v4866_v41, %v1021_v54  ;;  %v4930_v43 = vld [vmem:[#allocation2 + $0x380] sm:$0xff]  ;;  %v4940_v41 = vld [vmem:[#allocation2 + $0x398] sm:$0xff] }
  0xce   :  { %7196 = vst [vmem:[#allocation32_spill] sm:$0xff] %v4918_v28  ;;  %7197 = vst [vmem:[#allocation33_spill] sm:$0xff] %v4920_v42  ;;  %v1055_v7 = vadd.f32 %v4868_v13, %v1022_v53  ;;  %v1056_v26 = vadd.f32 %v4876_v58, %v1023_v5  ;;  %v1057_v30 = vadd.f32 %v4878_v62, %v1024_v44 }
  0xcf   :  { %v926_v20 = vadd.f32 %v925_v32, %v924_v59  ;;  %7198 = vst [vmem:[#allocation34_spill] sm:$0xff] %v4923_v50  ;;  %7199 = vst [vmem:[#allocation35_spill] sm:$0xff] %v4925_v35  ;;  %v1058_v3 = vadd.f32 %v4880_v45, %v1025_v40  ;;  %v1059_v12 = vadd.f32 %v4890_v31, %v1026_v34  ;;  %v4936_v59 = vld [vmem:[#allocation2 + $0x388] sm:$0xff]  ;;  %v4938_v32 = vld [vmem:[#allocation2 + $0x390] sm:$0xff] }
  0xd0   :  { %7200 = vst [vmem:[#allocation36_spill] sm:$0xff] %v4930_v43  ;;  %v1060_v27 = vadd.f32 %v4892_v46, %v1027_v47  ;;  %v1061_v54 = vadd.f32 %v4894_v6, %v1028_v56  ;;  %7201 = vst [vmem:[#allocation37_spill] sm:$0xff] %v4936_v59  ;;  %v1062_v5 = vadd.f32 %v4903_v1, %v1029_v61  ;;  %v4946_v45 = vld [vmem:[#allocation2 + $0x3a0] sm:$0xff]  ;;  %v4948_v34 = vld [vmem:[#allocation2 + $0x3a8] sm:$0xff] }
  0xd1   :  { %7202 = vst [vmem:[#allocation38_spill] sm:$0xff] %v4938_v32  ;;  %7203 = vst [vmem:[#allocation39_spill] sm:$0xff] %v4940_v41  ;;  %v938_v53 = vcombine.low %v4858_v4, %v926_v20  ;;  %v1063_v44 = vadd.f32 %v4905_v21, %v1030_v14  ;;  %v1064_v40 = vadd.f32 %v4907_v22, %v1031_v25  ;;  %v4950_v47 = vld [vmem:[#allocation2 + $0x3b0] sm:$0xff]  ;;  %v4956_v4 = vld [vmem:[#allocation2 + $0x3b8] sm:$0xff] }
  0xd2   :  { %7204 = vst [vmem:[#allocation40_spill] sm:$0xff] %v4946_v45  ;;  %7205 = vst [vmem:[#allocation41_spill] sm:$0xff] %v4948_v34  ;;  %v1065_v56 = vadd.f32 %v4916_v52, %v1032_v17  ;;  %v1066_v6 = vadd.f32 %v4918_v28, %v1033_v33  ;;  %v1067_v46 = vadd.f32 %v4920_v42, %v1034_v0  ;;  %v4958_v61 = vld [vmem:[#allocation2 + $0x3c0] sm:$0xff]  ;;  %v4960_v14 = vld [vmem:[#allocation2 + $0x3c8] sm:$0xff] }
  0xd3   :  { %7206 = vst [vmem:[#allocation42_spill] sm:$0xff] %v4950_v47  ;;  %v1068_v20 = vadd.f32 %v4923_v50, %v1035_v48  ;;  %7207 = vst [vmem:[#allocation43_spill] sm:$0xff] %v4956_v4  ;;  %v966_v25 = vrot.slane %v938_v53, %v4508_v57  ;;  %v1069_v22 = vadd.f32 %v4925_v35, %v1036_v60  ;;  %v4964_v21 = vld [vmem:[#allocation2 + $0x3d0] sm:$0xff]  ;;  %v4966_v1 = vld [vmem:[#allocation2 + $0x3d8] sm:$0xff] }
  0xd4   :  { %7208 = vst [vmem:[#allocation52_spill] sm:$0xff] %v4958_v61  ;;  %7209 = vst [vmem:[#allocation44_spill] sm:$0xff] %v4960_v14  ;;  %v4968_v17 = vld [vmem:[#allocation2 + $0x3e0] sm:$0xff]  ;;  %v1087_v33 = vadd.f32 %v4930_v43, %v1054_v39  ;;  %v1088_v48 = vadd.f32 %v4936_v59, %v1055_v7  ;;  %v4972_v0 = vld [vmem:[#allocation2 + $0x3e8] sm:$0xff]  ;;  %v1089_v53 = vadd.f32 %v4938_v32, %v1056_v26 }
  0xd5   :  { %7210 = vst [vmem:[#allocation53_spill] sm:$0xff] %v4964_v21  ;;  %7211 = vst [vmem:[#allocation45_spill] sm:$0xff] %v4966_v1  ;;  %v4974_v50 = vld [vmem:[#allocation2 + $0x3f0] sm:$0xff]  ;;  %v4976_v42 = vld [vmem:[#allocation2 + $0x3f8] sm:$0xff]  ;;  %v1090_v60 = vadd.f32 %v4940_v41, %v1057_v30  ;;  %v1091_v35 = vadd.f32 %v4946_v45, %v1058_v3  ;;  %v1092_v28 = vadd.f32 %v4948_v34, %v1059_v12 }
  0xd6   :  { %7212 = vst [vmem:[#allocation54_spill] sm:$0xff] %v4968_v17  ;;  %7213 = vst [vmem:[#allocation46_spill] sm:$0xff] %v4972_v0  ;;  %v968_v52 = vcombine.low %v4897_v11, %v966_v25  ;;  %v1093_v39 = vadd.f32 %v4950_v47, %v1060_v27  ;;  %v1094_v7 = vadd.f32 %v4956_v4, %v1061_v54  ;;  %v4994_v25 = vmul.f32 0.25, %v1087_v33 }
  0xd7   :  { %7214 = vst [vmem:[#allocation55_spill] sm:$0xff] %v4974_v50  ;;  %7215 = vst [vmem:[#allocation47_spill] sm:$0xff] %v4976_v42  ;;  %v1095_v59 = vadd.f32 %v4958_v61, %v1062_v5  ;;  %v1096_v43 = vadd.f32 %v4960_v14, %v1063_v44  ;;  %v1097_v31 = vadd.f32 %v4964_v21, %v1064_v40  ;;  %v4996_v54 = vmul.f32 0.25, %v1088_v48 }
  0xd8   :  { %v1098_v26 = vadd.f32 %v4966_v1, %v1065_v56  ;;  %v1099_v30 = vadd.f32 %v4968_v17, %v1066_v6  ;;  %v982_v3 = vrot.slane %v968_v52, %v4508_v57  ;;  %v1100_v12 = vadd.f32 %v4972_v0, %v1067_v46 }
  0xd9   :  { %v1101_v11 = vadd.f32 %v4974_v50, %v1068_v20  ;;  %v1102_v27 = vadd.f32 %v4976_v42, %v1069_v22  ;;  %v4998_v5 = vmul.f32 0.25, %v1089_v53  ;;  %v5000_v44 = vmul.f32 0.25, %v1090_v60 }
  0xda   :  { %v983_v40 = vcombine.low %v4910_v9, %v982_v3  ;;  %v5003_v56 = vmul.f32 0.25, %v1091_v35  ;;  %v5005_v6 = vmul.f32 0.25, %v1092_v28  ;;  %v5007_v52 = vmul.f32 0.25, %v1093_v39 }
  0xdb   :  { %v5009_v46 = vmul.f32 0.25, %v1094_v7  ;;  %v5011_v20 = vmul.f32 0.25, %v1095_v59  ;;  %v5013_v22 = vmul.f32 0.25, %v1096_v43  ;;  %v5015_v33 = vmul.f32 0.25, %v1097_v31 }
  0xdc   :  { %986 = vst [vmem:[#allocation5 + $0x3] ss:$4 sm:$0xff] %v983_v40  ;;  %v5017_v48 = vmul.f32 0.25, %v1098_v26  ;;  %v5019_v53 = vmul.f32 0.25, %v1099_v30  ;;  %v5021_v9 = vmul.f32 0.25, %v1100_v12  ;;  %v5023_v35 = vmul.f32 0.25, %v1101_v11 }
  0xdd   :  { %7216 = vst [vmem:[#allocation48_spill] sm:$0xff] %v5011_v20  ;;  %7217 = vst [vmem:[#allocation20_spill] sm:$0xff] %v5013_v22  ;;  %v5025_v28 = vmul.f32 0.25, %v1102_v27  ;;  %v1119_v60 = vsub.f32 %v4785_v36, %v4994_v25  ;;  %v1120_v43 = vsub.f32 %v4787_v16, %v4996_v54  ;;  %v1121_v31 = vsub.f32 %v4789_v55, %v4998_v5 }
  0xde   :  { %7218 = vst [vmem:[#allocation8_spill] sm:$0xff] %v5015_v33  ;;  %7219 = vst [vmem:[#allocation56_spill] sm:$0xff] %v5017_v48  ;;  %v1122_v59 = vsub.f32 %v4793_v15, %v5000_v44  ;;  %v1123_v39 = vsub.f32 %v4795_v51, %v5003_v56  ;;  %v1124_v7 = vsub.f32 %v4804_v10, %v5005_v6 }
  0xdf   :  { %7220 = vst [vmem:[#allocation57_spill] sm:$0xff] %v5019_v53  ;;  %7221 = vst [vmem:[#allocation58_spill] sm:$0xff] %v5021_v9  ;;  %v1125_v26 = vsub.f32 %v4806_v37, %v5007_v52  ;;  %v1126_v36 = vsub.f32 %v4808_v38, %v5009_v46  ;;  %v1127_v16 = vsub.f32 %v4816_v2, %v5011_v20 }
  0xe0   :  { %7222 = vst [vmem:[#allocation59_spill] sm:$0xff] %v5023_v35  ;;  %v1128_v55 = vsub.f32 %v4818_v19, %v5013_v22  ;;  %v1129_v15 = vsub.f32 %v4820_v8, %v5015_v33  ;;  %v1130_v51 = vsub.f32 %v4822_v63, %v5017_v48  ;;  %v1131_v10 = vsub.f32 %v4831_v29, %v5019_v53 }
  0xe1   :  { %v1132_v37 = vsub.f32 %v4833_v18, %v5021_v9  ;;  %v1133_v38 = vsub.f32 %v4844_v23, %v5023_v35  ;;  %v1134_v2 = vsub.f32 %v4846_v49, %v5025_v28  ;;  %v1135_v30 = vmul.f32 %v1119_v60, %v1119_v60  ;;  %v7223_v49 = vld [vmem:[#allocation10_spill] sm:$0xff] }
  0xe2   :  { %v1136_v19 = vmul.f32 %v1120_v43, %v1120_v43  ;;  %v1137_v3 = vmul.f32 %v1121_v31, %v1121_v31  ;;  %v1138_v12 = vmul.f32 %v1122_v59, %v1122_v59  ;;  %v1139_v8 = vmul.f32 %v1123_v39, %v1123_v39  ;;  %v7224_v43 = vld [vmem:[#allocation11_spill] sm:$0xff]  ;;  %v7225_v59 = vld [vmem:[#allocation12_spill] sm:$0xff] }
  0xe3   :  { %v1140_v11 = vmul.f32 %v1124_v7, %v1124_v7  ;;  %v1141_v27 = vmul.f32 %v1125_v26, %v1125_v26  ;;  %v1142_v63 = vmul.f32 %v1126_v36, %v1126_v36  ;;  %v1143_v40 = vmul.f32 %v1127_v16, %v1127_v16  ;;  %v7226_v7 = vld [vmem:[#allocation13_spill] sm:$0xff]  ;;  %v7227_v36 = vld [vmem:[#allocation14_spill] sm:$0xff] }
  0xe4   :  { %v1144_v57 = vmul.f32 %v1128_v55, %v1128_v55  ;;  %v1145_v29 = vmul.f32 %v1129_v15, %v1129_v15  ;;  %v1146_v42 = vmul.f32 %v1130_v51, %v1130_v51  ;;  %v1147_v50 = vmul.f32 %v1131_v10, %v1131_v10  ;;  %v7228_v55 = vld [vmem:[#allocation15_spill] sm:$0xff]  ;;  %v7230_v10 = vld [vmem:[#allocation17_spill] sm:$0xff] }
  0xe5   :  { %v1148_v18 = vmul.f32 %v1132_v37, %v1132_v37  ;;  %v1149_v0 = vmul.f32 %v1133_v38, %v1133_v38  ;;  %v1150_v17 = vmul.f32 %v1134_v2, %v1134_v2  ;;  %v1151_v23 = vsub.f32 %v4797_v24, %v4994_v25  ;;  %v7229_v24 = vld [vmem:[#allocation16_spill] sm:$0xff]  ;;  %v7231_v38 = vld [vmem:[#allocation18_spill] sm:$0xff] }
  0xe6   :  { %v1152_v60 = vsub.f32 %v7223_v49, %v4996_v54  ;;  %v1153_v31 = vsub.f32 %v7224_v43, %v4998_v5  ;;  %v1154_v39 = vsub.f32 %v7225_v59, %v5000_v44  ;;  %v1155_v26 = vsub.f32 %v7226_v7, %v5003_v56  ;;  %v7232_v49 = vld [vmem:[#allocation19_spill] sm:$0xff]  ;;  %v7233_v59 = vld [vmem:[#allocation21_spill] sm:$0xff] }
  0xe7   :  { %v1156_v16 = vsub.f32 %v7227_v36, %v5005_v6  ;;  %v1157_v15 = vsub.f32 %v7228_v55, %v5007_v52  ;;  %v1158_v51 = vsub.f32 %v7229_v24, %v5009_v46  ;;  %v1159_v37 = vsub.f32 %v7230_v10, %v5011_v20  ;;  %v7234_v36 = vld [vmem:[#allocation22_spill] sm:$0xff]  ;;  %v7235_v55 = vld [vmem:[#allocation23_spill] sm:$0xff]  ;;  %v7236_v24 = vld [vmem:[#allocation24_spill] sm:$0xff] }
  0xe8   :  { %v1160_v2 = vsub.f32 %v7231_v38, %v5013_v22  ;;  %v1161_v43 = vsub.f32 %v7232_v49, %v5015_v33  ;;  %v1162_v7 = vsub.f32 %v7233_v59, %v5017_v48  ;;  %v1163_v1 = vsub.f32 %v7234_v36, %v5019_v53  ;;  %v7237_v10 = vld [vmem:[#allocation49_spill] sm:$0xff] }
  0xe9   :  { %v1164_v21 = vsub.f32 %v7235_v55, %v5021_v9  ;;  %v1165_v14 = vsub.f32 %v7236_v24, %v5023_v35  ;;  %v1166_v61 = vsub.f32 %v7237_v10, %v5025_v28  ;;  %v1167_v4 = vmul.f32 %v1151_v23, %v1151_v23 }
  0xea   :  { %v1168_v38 = vmul.f32 %v1152_v60, %v1152_v60  ;;  %v1169_v47 = vmul.f32 %v1153_v31, %v1153_v31  ;;  %v1170_v34 = vmul.f32 %v1154_v39, %v1154_v39  ;;  %v1171_v49 = vmul.f32 %v1155_v26, %v1155_v26 }
  0xeb   :  { %v1172_v45 = vmul.f32 %v1156_v16, %v1156_v16  ;;  %v1173_v41 = vmul.f32 %v1157_v15, %v1157_v15  ;;  %v1174_v59 = vmul.f32 %v1158_v51, %v1158_v51  ;;  %v1175_v32 = vmul.f32 %v1159_v37, %v1159_v37 }
  0xec   :  { %v1176_v48 = vmul.f32 %v1160_v2, %v1160_v2  ;;  %v1177_v36 = vmul.f32 %v1161_v43, %v1161_v43  ;;  %v1178_v53 = vmul.f32 %v1162_v7, %v1162_v7  ;;  %v1179_v33 = vmul.f32 %v1163_v1, %v1163_v1  ;;  %v7238_v1 = vld [vmem:[#allocation25_spill] sm:$0xff] }
  0xed   :  { %v1180_v55 = vmul.f32 %v1164_v21, %v1164_v21  ;;  %v1181_v9 = vmul.f32 %v1165_v14, %v1165_v14  ;;  %v1182_v22 = vmul.f32 %v1166_v61, %v1166_v61  ;;  %v1183_v24 = vadd.f32 %v1167_v4, %v1135_v30  ;;  %v7242_v61 = vld [vmem:[#allocation27_spill] sm:$0xff] }
  0xee   :  { %v1184_v35 = vadd.f32 %v1168_v38, %v1136_v19  ;;  %v1185_v20 = vadd.f32 %v1169_v47, %v1137_v3  ;;  %v1186_v10 = vadd.f32 %v1170_v34, %v1138_v12  ;;  %v1187_v23 = vadd.f32 %v1171_v49, %v1139_v8  ;;  %v7250_v30 = vld [vmem:[#allocation31_spill] sm:$0xff]  ;;  %v7251_v3 = vld [vmem:[#allocation57_spill] sm:$0xff]  ;;  %v7252_v12 = vld [vmem:[#allocation32_spill] sm:$0xff] }
  0xef   :  { %v1188_v60 = vadd.f32 %v1172_v45, %v1140_v11  ;;  %v1189_v31 = vadd.f32 %v1173_v41, %v1141_v27  ;;  %v1190_v39 = vadd.f32 %v1174_v59, %v1142_v63  ;;  %v1191_v26 = vadd.f32 %v1175_v32, %v1143_v40  ;;  %v7241_v32 = vld [vmem:[#allocation51_spill] sm:$0xff]  ;;  %v7253_v11 = vld [vmem:[#allocation58_spill] sm:$0xff]  ;;  %v7254_v27 = vld [vmem:[#allocation33_spill] sm:$0xff] }
  0xf0   :  { %v1192_v16 = vadd.f32 %v1176_v48, %v1144_v57  ;;  %v1193_v15 = vadd.f32 %v1177_v36, %v1145_v29  ;;  %v1194_v51 = vadd.f32 %v1178_v53, %v1146_v42  ;;  %v1195_v37 = vadd.f32 %v1179_v33, %v1147_v50  ;;  %v7239_v57 = vld [vmem:[#allocation50_spill] sm:$0xff]  ;;  %v7247_v48 = vld [vmem:[#allocation8_spill] sm:$0xff]  ;;  %v7255_v40 = vld [vmem:[#allocation59_spill] sm:$0xff] }
  0xf1   :  { %v1196_v2 = vadd.f32 %v1180_v55, %v1148_v18  ;;  %v1197_v43 = vadd.f32 %v1181_v9, %v1149_v0  ;;  %v1198_v7 = vadd.f32 %v1182_v22, %v1150_v17  ;;  %v1199_v21 = vsub.f32 %v7238_v1, %v4994_v25  ;;  %v7240_v50 = vld [vmem:[#allocation26_spill] sm:$0xff]  ;;  %v7243_v17 = vld [vmem:[#allocation48_spill] sm:$0xff]  ;;  %v7257_v38 = vld [vmem:[#allocation35_spill] sm:$0xff] }
  0xf2   :  { %v1200_v4 = vsub.f32 %v4868_v13, %v4996_v54  ;;  %v1201_v34 = vsub.f32 %v4876_v58, %v4998_v5  ;;  %v1202_v41 = vsub.f32 %v4878_v62, %v5000_v44  ;;  %v1203_v45 = vsub.f32 %v7239_v57, %v5003_v56  ;;  %v7244_v13 = vld [vmem:[#allocation28_spill] sm:$0xff]  ;;  %v7246_v58 = vld [vmem:[#allocation29_spill] sm:$0xff]  ;;  %v7248_v62 = vld [vmem:[#allocation30_spill] sm:$0xff] }
  0xf3   :  { %v1204_v42 = vsub.f32 %v7240_v50, %v5005_v6  ;;  %v1205_v47 = vsub.f32 %v7241_v32, %v5007_v52  ;;  %v1206_v14 = vsub.f32 %v7242_v61, %v5009_v46  ;;  %v1207_v0 = vsub.f32 %v7244_v13, %v7243_v17  ;;  %v7245_v22 = vld [vmem:[#allocation20_spill] sm:$0xff]  ;;  %v7256_v29 = vld [vmem:[#allocation34_spill] sm:$0xff] }
  0xf4   :  { %v1208_v33 = vsub.f32 %v7246_v58, %v7245_v22  ;;  %v1209_v53 = vsub.f32 %v7248_v62, %v7247_v48  ;;  %v7249_v9 = vld [vmem:[#allocation56_spill] sm:$0xff]  ;;  %v1211_v8 = vsub.f32 %v7252_v12, %v7251_v3  ;;  %v1212_v63 = vsub.f32 %v7254_v27, %v7253_v11 }
  0xf5   :  { %v1210_v19 = vsub.f32 %v7250_v30, %v7249_v9  ;;  %v1213_v18 = vsub.f32 %v7256_v29, %v7255_v40  ;;  %v1214_v49 = vsub.f32 %v7257_v38, %v5025_v28  ;;  %v1215_v59 = vmul.f32 %v1199_v21, %v1199_v21 }
  0xf6   :  { %v1216_v36 = vmul.f32 %v1200_v4, %v1200_v4  ;;  %v1217_v55 = vmul.f32 %v1201_v34, %v1201_v34  ;;  %v1218_v1 = vmul.f32 %v1202_v41, %v1202_v41  ;;  %v1219_v57 = vmul.f32 %v1203_v45, %v1203_v45 }
  0xf7   :  { %v1220_v50 = vmul.f32 %v1204_v42, %v1204_v42  ;;  %v1221_v32 = vmul.f32 %v1205_v47, %v1205_v47  ;;  %v1222_v61 = vmul.f32 %v1206_v14, %v1206_v14  ;;  %v1223_v13 = vmul.f32 %v1207_v0, %v1207_v0  ;;  %v7258_v42 = vld [vmem:[#allocation36_spill] sm:$0xff]  ;;  %v7259_v14 = vld [vmem:[#allocation37_spill] sm:$0xff] }
  0xf8   :  { %v1224_v58 = vmul.f32 %v1208_v33, %v1208_v33  ;;  %v1225_v62 = vmul.f32 %v1209_v53, %v1209_v53  ;;  %v1226_v30 = vmul.f32 %v1210_v19, %v1210_v19  ;;  %v1227_v12 = vmul.f32 %v1211_v8, %v1211_v8  ;;  %v7260_v8 = vld [vmem:[#allocation38_spill] sm:$0xff] }
  0xf9   :  { %v1228_v27 = vmul.f32 %v1212_v63, %v1212_v63  ;;  %v1229_v11 = vmul.f32 %v1213_v18, %v1213_v18  ;;  %v1230_v3 = vmul.f32 %v1214_v49, %v1214_v49  ;;  %v1231_v29 = vadd.f32 %v1215_v59, %v1183_v24  ;;  %v7270_v18 = vld [vmem:[#allocation45_spill] sm:$0xff] }
  0xfa   :  { %v1232_v40 = vadd.f32 %v1216_v36, %v1184_v35  ;;  %v1233_v9 = vadd.f32 %v1217_v55, %v1185_v20  ;;  %v1234_v38 = vadd.f32 %v1218_v1, %v1186_v10  ;;  %v1235_v21 = vadd.f32 %v1219_v57, %v1187_v23  ;;  %v7271_v59 = vld [vmem:[#allocation57_spill] sm:$0xff]  ;;  %v7273_v55 = vld [vmem:[#allocation58_spill] sm:$0xff]  ;;  %v7275_v57 = vld [vmem:[#allocation59_spill] sm:$0xff] }
  0xfb   :  { %v1236_v4 = vadd.f32 %v1220_v50, %v1188_v60  ;;  %v1237_v34 = vadd.f32 %v1221_v32, %v1189_v31  ;;  %v1238_v41 = vadd.f32 %v1222_v61, %v1190_v39  ;;  %v1239_v45 = vadd.f32 %v1223_v13, %v1191_v26  ;;  %v7261_v60 = vld [vmem:[#allocation39_spill] sm:$0xff]  ;;  %v7262_v39 = vld [vmem:[#allocation40_spill] sm:$0xff] }
  0xfc   :  { %v1247_v47 = vsub.f32 %v7258_v42, %v4994_v25  ;;  %v1248_v0 = vsub.f32 %v7259_v14, %v4996_v54  ;;  %v1240_v33 = vadd.f32 %v1224_v58, %v1192_v16  ;;  %v1241_v53 = vadd.f32 %v1225_v62, %v1193_v15  ;;  %v7263_v25 = vld [vmem:[#allocation41_spill] sm:$0xff]  ;;  %v7264_v54 = vld [vmem:[#allocation42_spill] sm:$0xff]  ;;  %v7265_v15 = vld [vmem:[#allocation43_spill] sm:$0xff] }
  0xfd   :  { %v1242_v19 = vadd.f32 %v1226_v30, %v1194_v51  ;;  %v1249_v24 = vsub.f32 %v7260_v8, %v4998_v5  ;;  %v1243_v35 = vadd.f32 %v1227_v12, %v1195_v37  ;;  %v1244_v20 = vadd.f32 %v1228_v27, %v1196_v2  ;;  %v7266_v5 = vld [vmem:[#allocation52_spill] sm:$0xff]  ;;  %v7277_v32 = vld [vmem:[#allocation47_spill] sm:$0xff] }
  0xfe   :  { %v1245_v10 = vadd.f32 %v1229_v11, %v1197_v43  ;;  %v1246_v23 = vadd.f32 %v1230_v3, %v1198_v7  ;;  %v1250_v31 = vsub.f32 %v7261_v60, %v5000_v44  ;;  %v1251_v26 = vsub.f32 %v7262_v39, %v5003_v56  ;;  %v7267_v7 = vld [vmem:[#allocation44_spill] sm:$0xff]  ;;  %v7268_v3 = vld [vmem:[#allocation53_spill] sm:$0xff] }
  0xff   :  { %v1252_v63 = vsub.f32 %v7263_v25, %v5005_v6  ;;  %v1253_v16 = vsub.f32 %v7264_v54, %v5007_v52  ;;  %v1254_v51 = vsub.f32 %v7265_v15, %v5009_v46  ;;  %v1255_v37 = vsub.f32 %v7266_v5, %v7243_v17  ;;  %v7269_v11 = vld [vmem:[#allocation56_spill] sm:$0xff]  ;;  %v7272_v52 = vld [vmem:[#allocation54_spill] sm:$0xff]  ;;  %v7276_v17 = vld [vmem:[#allocation55_spill] sm:$0xff] }
 0x100   :  { %v1263_v2 = vmul.f32 %v1247_v47, %v1247_v47  ;;  %v1264_v43 = vmul.f32 %v1248_v0, %v1248_v0  ;;  %v1256_v44 = vsub.f32 %v7267_v7, %v7245_v22  ;;  %v1257_v56 = vsub.f32 %v7268_v3, %v7247_v48  ;;  %v7274_v46 = vld [vmem:[#allocation46_spill] sm:$0xff] }
 0x101   :  { %v1258_v6 = vsub.f32 %v7270_v18, %v7269_v11  ;;  %v1265_v49 = vmul.f32 %v1249_v24, %v1249_v24  ;;  %v1259_v36 = vsub.f32 %v7272_v52, %v7271_v59  ;;  %v1260_v1 = vsub.f32 %v7274_v46, %v7273_v55 }
 0x102   :  { %v1261_v50 = vsub.f32 %v7276_v17, %v7275_v57  ;;  %v1262_v61 = vsub.f32 %v7277_v32, %v5025_v28  ;;  %v1266_v22 = vmul.f32 %v1250_v31, %v1250_v31  ;;  %v1267_v13 = vmul.f32 %v1251_v26, %v1251_v26 }
 0x103   :  { %v1268_v58 = vmul.f32 %v1252_v63, %v1252_v63  ;;  %v1269_v48 = vmul.f32 %v1253_v16, %v1253_v16  ;;  %v1270_v62 = vmul.f32 %v1254_v51, %v1254_v51  ;;  %v1271_v30 = vmul.f32 %v1255_v37, %v1255_v37 }
 0x104   :  { %v1279_v12 = vadd.f32 %v1263_v2, %v1231_v29  ;;  %v1280_v27 = vadd.f32 %v1264_v43, %v1232_v40  ;;  %v1272_v42 = vmul.f32 %v1256_v44, %v1256_v44  ;;  %v1273_v47 = vmul.f32 %v1257_v56, %v1257_v56 }
 0x105   :  { %v1274_v14 = vmul.f32 %v1258_v6, %v1258_v6  ;;  %v1281_v0 = vadd.f32 %v1265_v49, %v1233_v9  ;;  %v1275_v8 = vmul.f32 %v1259_v36, %v1259_v36  ;;  %v1276_v24 = vmul.f32 %v1260_v1, %v1260_v1 }
 0x106   :  { %v1277_v60 = vmul.f32 %v1261_v50, %v1261_v50  ;;  %v1278_v39 = vmul.f32 %v1262_v61, %v1262_v61  ;;  %v1282_v25 = vadd.f32 %v1266_v22, %v1234_v38  ;;  %v1283_v54 = vadd.f32 %v1267_v13, %v1235_v21 }
 0x107   :  { %v1284_v15 = vadd.f32 %v1268_v58, %v1236_v4  ;;  %v1285_v28 = vadd.f32 %v1269_v48, %v1237_v34  ;;  %v1286_v31 = vadd.f32 %v1270_v62, %v1238_v41  ;;  %v1287_v26 = vadd.f32 %v1271_v30, %v1239_v45 }
 0x108   :  { %v1295_v63 = vmul.f32 0.25, %v1279_v12  ;;  %v1296_v16 = vmul.f32 0.25, %v1280_v27  ;;  %v1288_v51 = vadd.f32 %v1272_v42, %v1240_v33  ;;  %v1289_v5 = vadd.f32 %v1273_v47, %v1241_v53 }
 0x109   :  { %v1290_v29 = vadd.f32 %v1274_v14, %v1242_v19  ;;  %v1297_v40 = vmul.f32 0.25, %v1281_v0  ;;  %v1291_v37 = vadd.f32 %v1275_v8, %v1243_v35  ;;  %v1292_v2 = vadd.f32 %v1276_v24, %v1244_v20 }
 0x10a   :  { %v1293_v43 = vadd.f32 %v1277_v60, %v1245_v10  ;;  %v1294_v9 = vadd.f32 %v1278_v39, %v1246_v23  ;;  %v1298_v7 = vmul.f32 0.25, %v1282_v25  ;;  %v1299_v44 = vmul.f32 0.25, %v1283_v54 }
 0x10b   :  { %v1300_v3 = vmul.f32 0.25, %v1284_v15  ;;  %v1301_v56 = vmul.f32 0.25, %v1285_v28  ;;  %v1302_v38 = vmul.f32 0.25, %v1286_v31  ;;  %v1303_v21 = vmul.f32 0.25, %v1287_v26 }
 0x10c   :  { %v5155_v4 = vadd.f32 1e-14, %v1295_v63  ;;  %v5157_v34 = vadd.f32 1e-14, %v1296_v16  ;;  %v1304_v41 = vmul.f32 0.25, %v1288_v51  ;;  %v1305_v45 = vmul.f32 0.25, %v1289_v5 }
 0x10d   :  { %v1306_v33 = vmul.f32 0.25, %v1290_v29  ;;  %v5159_v53 = vadd.f32 1e-14, %v1297_v40  ;;  %v1307_v19 = vmul.f32 0.25, %v1291_v37  ;;  %v1308_v35 = vmul.f32 0.25, %v1292_v2 }
 0x10e   :  { %v1309_v20 = vmul.f32 0.25, %v1293_v43  ;;  %3944 = vrsqrt.f32 %v5155_v4  ;;  %v1310_v10 = vmul.f32 0.25, %v1294_v9  ;;  %v5162_v23 = vadd.f32 1e-14, %v1298_v7 }
 0x10f   :  { %v5164_v11 = vadd.f32 1e-14, %v1299_v44  ;;  %3946 = vrsqrt.f32 %v5157_v34  ;;  %v5167_v18 = vadd.f32 1e-14, %v1300_v3  ;;  %v5169_v6 = vadd.f32 1e-14, %v1301_v56 }
 0x110   :  { %v5171_v49 = vadd.f32 1e-14, %v1302_v38  ;;  %3948 = vrsqrt.f32 %v5159_v53  ;;  %v5174_v59 = vadd.f32 1e-14, %v1303_v21  ;;  %v5176_v52 = vadd.f32 1e-14, %v1304_v41 }
 0x111   :  { %v5178_v36 = vadd.f32 1e-14, %v1305_v45  ;;  %v5180_v55 = vadd.f32 1e-14, %v1306_v33  ;;  %v5182_v46 = vadd.f32 1e-14, %v1307_v19  ;;  %3950 = vrsqrt.f32 %v5162_v23 }
 0x112   :  { %v5184_v1 = vadd.f32 1e-14, %v1308_v35  ;;  %v5186_v57 = vadd.f32 1e-14, %v1309_v20  ;;  %v5188_v17 = vadd.f32 1e-14, %v1310_v10  ;;  %3952 = vrsqrt.f32 %v5164_v11 }
 0x113   :  { %vm1329_vm15 = vcmp.eq.f32.partialorder %v5155_v4, inf  ;;  %vm1331_vm0 = vcmp.eq.f32.partialorder %v5155_v4, 0.0  ;;  %v1332_v50 = vand.u32 2147483648, %v5155_v4  ;;  %vm1336_vm1 = vcmp.eq.f32.partialorder %v5157_v34, inf }
 0x114   :  { %vm1338_vm4 = vcmp.eq.f32.partialorder %v5157_v34, 0.0  ;;  %v1339_v32 = vand.u32 2147483648, %v5157_v34  ;;  %vm1343_vm3 = vcmp.eq.f32.partialorder %v5159_v53, inf  ;;  %3954 = vrsqrt.f32 %v5167_v18 }
 0x115   :  { %vm1345_vm5 = vcmp.eq.f32.partialorder %v5159_v53, 0.0  ;;  %v1346_v61 = vand.u32 2147483648, %v5159_v53  ;;  %vm1350_vm6 = vcmp.eq.f32.partialorder %v5162_v23, inf  ;;  %3956 = vrsqrt.f32 %v5169_v6 }
 0x116   :  { %vm1352_vm7 = vcmp.eq.f32.partialorder %v5162_v23, 0.0  ;;  %v1353_v22 = vand.u32 2147483648, %v5162_v23  ;;  %vm1357_vm9 = vcmp.eq.f32.partialorder %v5164_v11, inf  ;;  %3958 = vrsqrt.f32 %v5171_v49 }
 0x117   :  { %vm1359_vm12 = vcmp.eq.f32.partialorder %v5164_v11, 0.0  ;;  %v1360_v58 = vand.u32 2147483648, %v5164_v11  ;;  %vm1364_vm8 = vcmp.eq.f32.partialorder %v5167_v18, inf  ;;  %v1367_v48 = vand.u32 2147483648, %v5167_v18 }
 0x118   :  { %v3945_v13 = vpop.eup %3944  ;;  %3960 = vrsqrt.f32 %v5174_v59  ;;  %vm1371_vm10 = vcmp.eq.f32.partialorder %v5169_v6, inf  ;;  %v1374_v12 = vand.u32 2147483648, %v5169_v6  ;;  %vm1373_vm13 = vcmp.eq.f32.partialorder %v5169_v6, 0.0 }
 0x119   :  { %v3947_v62 = vpop.eup %3946  ;;  %v1328_v30 = vmul.f32 %v3945_v13, %v5155_v4  ;;  %v1381_v47 = vand.u32 2147483648, %v5171_v49  ;;  %3962 = vrsqrt.f32 %v5176_v52  ;;  %vm1380_vm14 = vcmp.eq.f32.partialorder %v5171_v49, 0.0 }
 0x11a   :  { %v3949_v27 = vpop.eup %3948  ;;  %v1335_v42 = vmul.f32 %v3947_v62, %v5157_v34  ;;  %3964 = vrsqrt.f32 %v5178_v36  ;;  %v1388_v24 = vand.u32 2147483648, %v5174_v59  ;;  %vm1392_vm2 = vcmp.eq.f32.partialorder %v5176_v52, inf }
 0x11b   :  { %v1330_v14 = vsel %vm1329_vm15, %v5155_v4, %v1328_v30  ;;  %v1342_v0 = vmul.f32 %v3949_v27, %v5159_v53  ;;  %v1395_v60 = vand.u32 2147483648, %v5176_v52  ;;  %v3951_v39 = vpop.eup %3950  ;;  %vm1394_vm15 = vcmp.eq.f32.partialorder %v5176_v52, 0.0 }
 0x11c   :  { %v1337_v8 = vsel %vm1336_vm1, %v5157_v34, %v1335_v42  ;;  %v5238_v25 = vsel %vm1331_vm0, %v1332_v50, %v1330_v14  ;;  %vm1399_vm11 = vcmp.eq.f32.partialorder %v5178_v36, inf  ;;  %3966 = vrsqrt.f32 %v5180_v55  ;;  %v3953_v15 = vpop.eup %3952 }
 0x11d   :  { %v1344_v54 = vsel %vm1343_vm3, %v5159_v53, %v1342_v0  ;;  %v5248_v28 = vsel %vm1338_vm4, %v1339_v32, %v1337_v8  ;;  %v1349_v31 = vmul.f32 %v3951_v39, %v5162_v23  ;;  %vm1401_vm0 = vcmp.eq.f32.partialorder %v5178_v36, 0.0 }
 0x11e   :  { %v1402_v26 = vand.u32 2147483648, %v5178_v36  ;;  %v3955_v63 = vpop.eup %3954  ;;  %v5255_v16 = vsel %vm1345_vm5, %v1346_v61, %v1344_v54  ;;  %v1356_v51 = vmul.f32 %v3953_v15, %v5164_v11  ;;  %vm1406_vm1 = vcmp.eq.f32.partialorder %v5180_v55, inf }
 0x11f   :  { %3968 = vrsqrt.f32 %v5182_v46  ;;  %v3957_v5 = vpop.eup %3956  ;;  %v1351_v29 = vsel %vm1350_vm6, %v5162_v23, %v1349_v31  ;;  %v1363_v40 = vmul.f32 %v3955_v63, %v5167_v18  ;;  %vm1408_vm4 = vcmp.eq.f32.partialorder %v5180_v55, 0.0 }
 0x120   :  { %v1409_v37 = vand.u32 2147483648, %v5180_v55  ;;  %v3959_v2 = vpop.eup %3958  ;;  %v1358_v43 = vsel %vm1357_vm9, %v5164_v11, %v1356_v51  ;;  %v1370_v9 = vmul.f32 %v3957_v5, %v5169_v6  ;;  %vm1413_vm3 = vcmp.eq.f32.partialorder %v5182_v46, inf }
 0x121   :  { %3970 = vrsqrt.f32 %v5184_v1  ;;  %v5274_v44 = vsel %vm1352_vm7, %v1353_v22, %v1351_v29  ;;  %v1365_v3 = vsel %vm1364_vm8, %v5167_v18, %v1363_v40  ;;  %v1377_v56 = vmul.f32 %v3959_v2, %v5171_v49 }
 0x122   :  { %v3961_v7 = vpop.eup %3960  ;;  %vm1415_vm5 = vcmp.eq.f32.partialorder %v5182_v46, 0.0  ;;  %v1416_v38 = vand.u32 2147483648, %v5182_v46  ;;  %v5284_v21 = vsel %vm1359_vm12, %v1360_v58, %v1358_v43  ;;  %v1372_v4 = vsel %vm1371_vm10, %v5169_v6, %v1370_v9 }
 0x123   :  { %v1384_v34 = vmul.f32 %v3961_v7, %v5174_v59  ;;  %vm1420_vm6 = vcmp.eq.f32.partialorder %v5184_v1, inf  ;;  %v3963_v41 = vpop.eup %3962  ;;  %vm7278_vm7 = vcmp.eq.f32.partialorder %v5167_v18, 0.0  ;;  %vm7279_vm9 = vcmp.eq.f32.partialorder %v5171_v49, inf }
 0x124   :  { %v5293_v45 = vsel %vm7278_vm7, %v1367_v48, %v1365_v3  ;;  %v1379_v33 = vsel %vm7279_vm9, %v5171_v49, %v1377_v56  ;;  %vm1422_vm12 = vcmp.eq.f32.partialorder %v5184_v1, 0.0  ;;  %3972 = vrsqrt.f32 %v5186_v57  ;;  %v3965_v53 = vpop.eup %3964 }
 0x125   :  { %v5302_v19 = vsel %vm1373_vm13, %v1374_v12, %v1372_v4  ;;  %vm7280_vm8 = vcmp.eq.f32.partialorder %v5174_v59, inf  ;;  %v1391_v20 = vmul.f32 %v3963_v41, %v5176_v52  ;;  %v1423_v10 = vand.u32 2147483648, %v5184_v1 }
 0x126   :  { %v1386_v35 = vsel %vm7280_vm8, %v5174_v59, %v1384_v34  ;;  %v5311_v23 = vsel %vm1380_vm14, %v1381_v47, %v1379_v33  ;;  %vm7281_vm10 = vcmp.eq.f32.partialorder %v5174_v59, 0.0  ;;  %v1398_v18 = vmul.f32 %v3965_v53, %v5178_v36  ;;  %v3967_v6 = vpop.eup %3966 }
 0x127   :  { %v5315_v11 = vsel %vm7281_vm10, %v1388_v24, %v1386_v35  ;;  %vm1427_vm13 = vcmp.eq.f32.partialorder %v5186_v57, inf  ;;  %v1393_v50 = vsel %vm1392_vm2, %v5176_v52, %v1391_v20  ;;  %vm1429_vm7 = vcmp.eq.f32.partialorder %v5186_v57, 0.0 }
 0x128   :  { %v1430_v32 = vand.u32 2147483648, %v5186_v57  ;;  %3974 = vrsqrt.f32 %v5188_v17  ;;  %v5327_v49 = vsel %vm1394_vm15, %v1395_v60, %v1393_v50  ;;  %v1400_v59 = vsel %vm1399_vm11, %v5178_v36, %v1398_v18 }
 0x129   :  { %v1405_v61 = vmul.f32 %v3967_v6, %v5180_v55  ;;  %v1437_v22 = vand.u32 2147483648, %v5188_v17  ;;  %v3969_v13 = vpop.eup %3968  ;;  %v5336_v58 = vsel %vm1401_vm0, %v1402_v26, %v1400_v59  ;;  %vm1434_vm2 = vcmp.eq.f32.partialorder %v5188_v17, inf }
 0x12a   :  { %vm7282_vm14 = vcmask 1043456   ;;  %v1412_v12 = vmul.f32 %v3969_v13, %v5182_v46  ;;  %vm1436_vm11 = vcmp.eq.f32.partialorder %v5188_v17, 0.0 }
 0x12b   :  { %v1439_v52 = vsel %vm7282_vm14, %v5238_v25, 0.0  ;;  %vm7283_vm15 = vmmov %vm7282_vm14  ;;  %v1407_v30 = vsel %vm1406_vm1, %v5180_v55, %v1405_v61  ;;  %v3971_v42 = vpop.eup %3970 }
 0x12c   :  { %v1446_v48 = vsel %vm7283_vm15, %v5248_v28, 0.0  ;;  %vm7284_vm9 = vmmov %vm7282_vm14  ;;  %v1440_v36 = vrot.slane %v1439_v52, 4  ;;  %v5352_v47 = vsel %vm1408_vm4, %v1409_v37, %v1407_v30  ;;  %v1414_v24 = vsel %vm1413_vm3, %v5182_v46, %v1412_v12 }
 0x12d   :  { %v1453_v62 = vsel %vm7284_vm9, %v5255_v16, 0.0  ;;  %v1447_v27 = vrot.slane %v1446_v48, 4  ;;  %vm7285_vm0 = vmmov %vm7284_vm9  ;;  %v1419_v60 = vmul.f32 %v3971_v42, %v5184_v1  ;;  %v5364_v55 = vsel %vm1415_vm5, %v1416_v38, %v1414_v24 }
 0x12e   :  { %v1454_v14 = vrot.slane %v1453_v62, 4  ;;  %v1460_v0 = vsel %vm7285_vm0, %v5274_v44, 0.0  ;;  %vm7286_vm8 = vmmov %vm7285_vm0  ;;  %v1441_v39 = vadd.f32 %v1440_v36, %v1439_v52  ;;  %v3973_v63 = vpop.eup %3972 }
 0x12f   :  { %v1467_v8 = vsel %vm7286_vm8, %v5284_v21, 0.0  ;;  %v1448_v54 = vadd.f32 %v1447_v27, %v1446_v48  ;;  %v1461_v31 = vrot.slane %v1460_v0, 4  ;;  %v1421_v51 = vsel %vm1420_vm6, %v5184_v1, %v1419_v60  ;;  %vm7287_vm1 = vmmov %vm7285_vm0 }
 0x130   :  { %v1455_v15 = vadd.f32 %v1454_v14, %v1453_v62  ;;  %v1468_v26 = vrot.slane %v1467_v8, 4  ;;  %v1442_v5 = vrot.slane %v1441_v39, 2  ;;  %v1474_v40 = vsel %vm7287_vm1, %v5293_v45, 0.0  ;;  %vm7288_vm4 = vmmov %vm7285_vm0 }
 0x131   :  { %v1449_v29 = vrot.slane %v1448_v54, 2  ;;  %v5373_v37 = vsel %vm1422_vm12, %v1423_v10, %v1421_v51  ;;  %v1426_v46 = vmul.f32 %v3973_v63, %v5186_v57  ;;  %v1462_v43 = vadd.f32 %v1461_v31, %v1460_v0  ;;  %vm7289_vm3 = vmmov %vm7285_vm0 }
 0x132   :  { %v1456_v2 = vrot.slane %v1455_v15, 2  ;;  %v1443_v9 = vadd.f32 %v1442_v5, %v1441_v39  ;;  %v1469_v3 = vadd.f32 %v1468_v26, %v1467_v8  ;;  %v1475_v56 = vrot.slane %v1474_v40, 4  ;;  %v3975_v38 = vpop.eup %3974  ;;  %v7290_v39 = vld [vmem:[#allocation9_spill] sm:$0xff]  ;;  %vm7291_vm5 = vmmov %vm7285_vm0 }
 0x133   :  { %v1450_v7 = vadd.f32 %v1449_v29, %v1448_v54  ;;  %v1428_v4 = vsel %vm1427_vm13, %v5186_v57, %v1426_v46  ;;  %v1463_v41 = vrot.slane %v1462_v43, 2  ;;  %v1481_v1 = vsel %vm7288_vm4, %v5302_v19, 0.0  ;;  %vm7292_vm6 = vmmov %vm7285_vm0 }
 0x134   :  { %v1457_v34 = vadd.f32 %v1456_v2, %v1455_v15  ;;  %v5383_v33 = vsel %vm1429_vm7, %v1430_v32, %v1428_v4  ;;  %v1433_v53 = vmul.f32 %v3975_v38, %v5188_v17  ;;  %v1444_v35 = vrot.slane %v1443_v9, 1  ;;  %vm7293_vm12 = vmmov %vm7285_vm0 }
 0x135   :  { %v1451_v20 = vrot.slane %v1450_v7, 1  ;;  %v1464_v18 = vadd.f32 %v1463_v41, %v1462_v43  ;;  %v1470_v6 = vrot.slane %v1469_v3, 2  ;;  %v1476_v50 = vadd.f32 %v1475_v56, %v1474_v40  ;;  %vm7294_vm10 = vmmov %vm7285_vm0 }
 0x136   :  { %v1458_v10 = vrot.slane %v1457_v34, 1  ;;  %v1435_v59 = vsel %vm1434_vm2, %v5188_v17, %v1433_v53  ;;  %v1445_v61 = vadd.f32 %v1444_v35, %v1443_v9  ;;  %v1482_v52 = vrot.slane %v1481_v1, 4  ;;  %vm7295_vm13 = vmmov %vm7285_vm0 }
 0x137   :  { %v1452_v13 = vadd.f32 %v1451_v20, %v1450_v7  ;;  %v5391_v57 = vsel %vm1436_vm11, %v1437_v22, %v1435_v59  ;;  %v1465_v48 = vrot.slane %v1464_v18, 1  ;;  %v1471_v62 = vadd.f32 %v1470_v6, %v1469_v3  ;;  %vm7296_vm7 = vmmov %vm7285_vm0 }
 0x138   :  { %v1459_v32 = vadd.f32 %v1458_v10, %v1457_v34  ;;  %v1477_v30 = vrot.slane %v1476_v50, 2  ;;  %v1483_v12 = vadd.f32 %v1482_v52, %v1481_v1  ;;  %v1488_v36 = vsel %vm7289_vm3, %v5311_v23, 0.0  ;;  %vm7297_vm2 = vmmov %vm7285_vm0 }
 0x139   :  { %v1503_v27 = vcombine.low %v1445_v61, %v1452_v13  ;;  %v1466_v42 = vadd.f32 %v1465_v48, %v1464_v18  ;;  %v1472_v14 = vrot.slane %v1471_v62, 1  ;;  %v1489_v0 = vrot.slane %v1488_v36, 4  ;;  %vm7298_vm14 = vmmov %vm7285_vm0 }
 0x13a   :  { %v1563_v8 = vrot.slane %v5238_v25, 4  ;;  %v1478_v24 = vadd.f32 %v1477_v30, %v1476_v50  ;;  %v1484_v60 = vrot.slane %v1483_v12, 2  ;;  %v1564_v22 = vrot.slane %v5248_v28, 4  ;;  %vm7299_vm15 = vmmov %vm7285_vm0 }
 0x13b   :  { %v1513_v17 = vrot.slane %v1503_v27, %v7290_v39  ;;  %v1473_v54 = vadd.f32 %v1472_v14, %v1471_v62  ;;  %v1490_v15 = vadd.f32 %v1489_v0, %v1488_v36  ;;  %v1504_v31 = vcombine.low %v1459_v32, %v1466_v42  ;;  %vm7300_vm9 = vmmov %vm7285_vm0 }
 0x13c   :  { %v1565_v26 = vrot.slane %v5255_v16, 4  ;;  %v1479_v63 = vrot.slane %v1478_v24, 1  ;;  %v1485_v51 = vadd.f32 %v1484_v60, %v1483_v12  ;;  %v1566_v5 = vrot.slane %v5274_v44, 4  ;;  %vm7301_vm11 = vmmov %vm7285_vm0 }
 0x13d   :  { %v1567_v29 = vrot.slane %v5284_v21, 4  ;;  %v1491_v40 = vrot.slane %v1490_v15, 2  ;;  %v1520_v25 = vrot.slane %v1504_v31, %v7290_v39  ;;  %v1568_v46 = vrot.slane %v5293_v45, 4  ;;  %vm7302_vm8 = vmmov %vm7285_vm0 }
 0x13e   :  { %v1569_v2 = vrot.slane %v5302_v19, 4  ;;  %v1480_v43 = vadd.f32 %v1479_v63, %v1478_v24  ;;  %v1486_v28 = vrot.slane %v1485_v51, 1  ;;  %v1570_v9 = vrot.slane %v5311_v23, 4  ;;  %vm7303_vm1 = vmmov %vm7285_vm0 }
 0x13f   :  { %v1579_v7 = vsel %vm7291_vm5, %v1563_v8, 0.0  ;;  %v1492_v16 = vadd.f32 %v1491_v40, %v1490_v15  ;;  %v1535_v3 = vcombine.low %v1513_v17, %v1520_v25  ;;  %v1586_v44 = vsel %vm7292_vm6, %v1564_v22, 0.0  ;;  %vm7304_vm4 = vmmov %vm7285_vm0 }
 0x140   :  { %v1580_v56 = vrot.slane %v1579_v7, 4  ;;  %v1487_v38 = vadd.f32 %v1486_v28, %v1485_v51  ;;  %v1505_v21 = vcombine.low %v1473_v54, %v1480_v43  ;;  %v1587_v4 = vrot.slane %v1586_v44, 4  ;;  %vm7305_vm3 = vmmov %vm7285_vm0 }
 0x141   :  { %v1593_v34 = vsel %vm7293_vm12, %v1565_v26, 0.0  ;;  %v1493_v41 = vrot.slane %v1492_v16, 1  ;;  %v1543_v45 = vrot.slane %v1535_v3, %v7290_v39  ;;  %v1600_v35 = vsel %vm7294_vm10, %v1566_v5, 0.0  ;;  %vm7306_vm5 = vmmov %vm7285_vm0 }
 0x142   :  { %v1581_v19 = vadd.f32 %v1580_v56, %v1579_v7  ;;  %v1594_v1 = vrot.slane %v1593_v34, 4  ;;  %v1527_v53 = vrot.slane %v1505_v21, %v7290_v39  ;;  %v1588_v23 = vadd.f32 %v1587_v4, %v1586_v44  ;;  %vm7307_vm6 = vmmov %vm7285_vm0 }
 0x143   :  { %v1607_v20 = vsel %vm7295_vm13, %v1567_v29, 0.0  ;;  %v1494_v10 = vadd.f32 %v1493_v41, %v1492_v16  ;;  %v1601_v50 = vrot.slane %v1600_v35, 4  ;;  %v1614_v13 = vsel %vm7296_vm7, %v1568_v46, 0.0  ;;  %vm7308_vm12 = vmmov %vm7285_vm0 }
 0x144   :  { %v1582_v18 = vrot.slane %v1581_v19, 2  ;;  %v1595_v6 = vadd.f32 %v1594_v1, %v1593_v34  ;;  %v1589_v59 = vrot.slane %v1588_v23, 2  ;;  %v1608_v61 = vrot.slane %v1607_v20, 4  ;;  %vm7309_vm10 = vmmov %vm7285_vm0 }
 0x145   :  { %v1621_v52 = vsel %vm7297_vm2, %v1569_v2, 0.0  ;;  %v1506_v32 = vcombine.low %v1487_v38, %v1494_v10  ;;  %v1602_v30 = vadd.f32 %v1601_v50, %v1600_v35  ;;  %v1615_v27 = vrot.slane %v1614_v13, 4  ;;  %vm7310_vm13 = vmmov %vm7285_vm0 }
 0x146   :  { %v1583_v48 = vadd.f32 %v1582_v18, %v1581_v19  ;;  %v1596_v62 = vrot.slane %v1595_v6, 2  ;;  %v1590_v12 = vadd.f32 %v1589_v59, %v1588_v23  ;;  %v1609_v36 = vadd.f32 %v1608_v61, %v1607_v20  ;;  %vm7311_vm7 = vmmov %vm7285_vm0 }
 0x147   :  { %v1622_v42 = vrot.slane %v1621_v52, 4  ;;  %v1534_v14 = vrot.slane %v1506_v32, %v7290_v39  ;;  %v1603_v24 = vrot.slane %v1602_v30, 2  ;;  %v1616_v22 = vadd.f32 %v1615_v27, %v1614_v13  ;;  %vm7312_vm2 = vmmov %vm7285_vm0 }
 0x148   :  { %v1584_v0 = vrot.slane %v1583_v48, 1  ;;  %v1597_v8 = vadd.f32 %v1596_v62, %v1595_v6  ;;  %v1591_v60 = vrot.slane %v1590_v12, 1  ;;  %v1610_v17 = vrot.slane %v1609_v36, 2 }
 0x149   :  { %v1623_v54 = vadd.f32 %v1622_v42, %v1621_v52  ;;  %v1536_v15 = vcombine.low %v1527_v53, %v1534_v14  ;;  %v1604_v63 = vadd.f32 %v1603_v24, %v1602_v30  ;;  %v1617_v29 = vrot.slane %v1616_v22, 2 }
 0x14a   :  { %v1585_v31 = vadd.f32 %v1584_v0, %v1583_v48  ;;  %v1598_v26 = vrot.slane %v1597_v8, 1  ;;  %v1592_v51 = vadd.f32 %v1591_v60, %v1590_v12  ;;  %v1611_v5 = vadd.f32 %v1610_v17, %v1609_v36 }
 0x14b   :  { %v1624_v40 = vrot.slane %v1623_v54, 2  ;;  %v1550_v25 = vrot.slane %v1536_v15, %v7290_v39  ;;  %v1605_v2 = vrot.slane %v1604_v63, 1  ;;  %v1628_v43 = vsel %vm7298_vm14, %v1570_v9, 0.0  ;;  %vm7313_vm14 = vmmov %vm7285_vm0 }
 0x14c   :  { %v1599_v46 = vadd.f32 %v1598_v26, %v1597_v8  ;;  %v1612_v28 = vrot.slane %v1611_v5, 1  ;;  %v1618_v7 = vadd.f32 %v1617_v29, %v1616_v22  ;;  %v1629_v3 = vrot.slane %v1628_v43, 4 }
 0x14d   :  { %v1625_v16 = vadd.f32 %v1624_v40, %v1623_v54  ;;  %v1551_v56 = vcombine.low %v1543_v45, %v1550_v25  ;;  %v1606_v44 = vadd.f32 %v1605_v2, %v1604_v63  ;;  %v1643_v38 = vcombine.low %v1585_v31, %v1592_v51 }
 0x14e   :  { %v1695_v21 = vsel %vm7299_vm15, %v5315_v11, 0.0  ;;  %v1613_v4 = vadd.f32 %v1612_v28, %v1611_v5  ;;  %v1619_v34 = vrot.slane %v1618_v7, 1  ;;  %v1630_v19 = vadd.f32 %v1629_v3, %v1628_v43 }
 0x14f   :  { %v1626_v41 = vrot.slane %v1625_v16, 1  ;;  %1554 = vst [vmem:[#allocation5 + $0x20] ss:$4 sm:$0xff] %v1551_v56  ;;  %v1644_v1 = vcombine.low %v1599_v46, %v1606_v44  ;;  %v1653_v53 = vrot.slane %v1643_v38, %v7290_v39  ;;  %v1696_v23 = vrot.slane %v1695_v21, 4 }
 0x150   :  { %v1702_v9 = vsel %vm7300_vm9, %v5327_v49, 0.0  ;;  %v1620_v35 = vadd.f32 %v1619_v34, %v1618_v7  ;;  %v1631_v45 = vrot.slane %v1630_v19, 2  ;;  %v1709_v50 = vsel %vm7301_vm11, %v5336_v58, 0.0 }
 0x151   :  { %v1627_v20 = vadd.f32 %v1626_v41, %v1625_v16  ;;  %v1703_v10 = vrot.slane %v1702_v9, 4  ;;  %v1660_v18 = vrot.slane %v1644_v1, %v7290_v39  ;;  %v1697_v6 = vadd.f32 %v1696_v23, %v1695_v21 }
 0x152   :  { %v1716_v59 = vsel %vm7285_vm0, %v5352_v47, 0.0  ;;  %v1632_v61 = vadd.f32 %v1631_v45, %v1630_v19  ;;  %v1645_v13 = vcombine.low %v1613_v4, %v1620_v35  ;;  %v1710_v32 = vrot.slane %v1709_v50, 4 }
 0x153   :  { %v1704_v52 = vadd.f32 %v1703_v10, %v1702_v9  ;;  %v1675_v48 = vcombine.low %v1653_v53, %v1660_v18  ;;  %v1698_v62 = vrot.slane %v1697_v6, 2  ;;  %v1717_v30 = vrot.slane %v1716_v59, 4 }
 0x154   :  { %v1723_v12 = vsel %vm7302_vm8, %v5364_v55, 0.0  ;;  %v1633_v36 = vrot.slane %v1632_v61, 1  ;;  %v1667_v27 = vrot.slane %v1645_v13, %v7290_v39  ;;  %v1711_v14 = vadd.f32 %v1710_v32, %v1709_v50 }
 0x155   :  { %v1705_v42 = vrot.slane %v1704_v52, 2  ;;  %v1683_v0 = vrot.slane %v1675_v48, %v7290_v39  ;;  %v1699_v8 = vadd.f32 %v1698_v62, %v1697_v6  ;;  %v1718_v24 = vadd.f32 %v1717_v30, %v1716_v59 }
 0x156   :  { %v1724_v60 = vrot.slane %v1723_v12, 4  ;;  %v1634_v17 = vadd.f32 %v1633_v36, %v1632_v61  ;;  %v1712_v54 = vrot.slane %v1711_v14, 2  ;;  %v1730_v15 = vsel %vm7303_vm1, %v5373_v37, 0.0 }
 0x157   :  { %v1706_v22 = vadd.f32 %v1705_v42, %v1704_v52  ;;  %v1700_v31 = vrot.slane %v1699_v8, 1  ;;  %v1719_v26 = vrot.slane %v1718_v24, 2  ;;  %v1731_v51 = vrot.slane %v1730_v15, 4 }
 0x158   :  { %v1725_v63 = vadd.f32 %v1724_v60, %v1723_v12  ;;  %v1646_v5 = vcombine.low %v1627_v20, %v1634_v17  ;;  %v1713_v40 = vadd.f32 %v1712_v54, %v1711_v14  ;;  %v1737_v25 = vsel %vm7304_vm4, %v5383_v33, 0.0 }
 0x159   :  { %v1707_v29 = vrot.slane %v1706_v22, 1  ;;  %v1701_v46 = vadd.f32 %v1700_v31, %v1699_v8  ;;  %v1720_v2 = vadd.f32 %v1719_v26, %v1718_v24  ;;  %v1732_v28 = vadd.f32 %v1731_v51, %v1730_v15 }
 0x15a   :  { %v1726_v43 = vrot.slane %v1725_v63, 2  ;;  %v1674_v7 = vrot.slane %v1646_v5, %v7290_v39  ;;  %v1714_v3 = vrot.slane %v1713_v40, 1  ;;  %v1738_v56 = vrot.slane %v1737_v25, 4 }
 0x15b   :  { %v1708_v16 = vadd.f32 %v1707_v29, %v1706_v22  ;;  %v1721_v44 = vrot.slane %v1720_v2, 1  ;;  %v1733_v21 = vrot.slane %v1732_v28, 2  ;;  %v1744_v4 = vsel %vm7305_vm3, %v5391_v57, 0.0 }
 0x15c   :  { %v1727_v38 = vadd.f32 %v1726_v43, %v1725_v63  ;;  %v1676_v34 = vcombine.low %v1667_v27, %v1674_v7  ;;  %v1715_v41 = vadd.f32 %v1714_v3, %v1713_v40  ;;  %v1739_v19 = vadd.f32 %v1738_v56, %v1737_v25 }
 0x15d   :  { %v1745_v1 = vrot.slane %v1744_v4, 4  ;;  %v1722_v53 = vadd.f32 %v1721_v44, %v1720_v2  ;;  %v1734_v9 = vadd.f32 %v1733_v21, %v1732_v28  ;;  %v1759_v35 = vcombine.low %v1701_v46, %v1708_v16 }
 0x15e   :  { %v1728_v23 = vrot.slane %v1727_v38, 1  ;;  %v1690_v20 = vrot.slane %v1676_v34, %v7290_v39  ;;  %v1740_v45 = vrot.slane %v1739_v19, 2  ;;  %v1819_v18 = vrot.slane %v5315_v11, 4 }
 0x15f   :  { %v1746_v10 = vadd.f32 %v1745_v1, %v1744_v4  ;;  %v1735_v50 = vrot.slane %v1734_v9, 1  ;;  %v1760_v59 = vcombine.low %v1715_v41, %v1722_v53  ;;  %v1769_v61 = vrot.slane %v1759_v35, %v7290_v39 }
 0x160   :  { %v1729_v6 = vadd.f32 %v1728_v23, %v1727_v38  ;;  %v1691_v13 = vcombine.low %v1683_v0, %v1690_v20  ;;  %v1741_v52 = vadd.f32 %v1740_v45, %v1739_v19  ;;  %v1820_v48 = vrot.slane %v5327_v49, 4 }
 0x161   :  { %v1747_v32 = vrot.slane %v1746_v10, 2  ;;  %v1736_v62 = vadd.f32 %v1735_v50, %v1734_v9  ;;  %v1776_v30 = vrot.slane %v1760_v59, %v7290_v39  ;;  %v1821_v12 = vrot.slane %v5336_v58, 4 }
 0x162   :  { %v1822_v36 = vrot.slane %v5352_v47, 4  ;;  %1694 = vst [vmem:[#allocation5 + $0x21] ss:$4 sm:$0xff] %v1691_v13  ;;  %v1742_v27 = vrot.slane %v1741_v52, 1  ;;  %v1823_v42 = vrot.slane %v5364_v55, 4  ;;  %v1824_v14 = vrot.slane %v5373_v37, 4 }
 0x163   :  { %v1748_v11 = vadd.f32 %v1747_v32, %v1746_v10  ;;  %v1761_v8 = vcombine.low %v1729_v6, %v1736_v62  ;;  %v1791_v0 = vcombine.low %v1769_v61, %v1776_v30  ;;  %v1825_v24 = vrot.slane %v5383_v33, 4 }
 0x164   :  { %v1826_v49 = vrot.slane %v5391_v57, 4  ;;  %v1743_v60 = vadd.f32 %v1742_v27, %v1741_v52  ;;  %v1835_v22 = vsel %vm7306_vm5, %v1819_v18, 0.0  ;;  %v1842_v58 = vsel %vm7307_vm6, %v1820_v48, 0.0 }
 0x165   :  { %v1749_v17 = vrot.slane %v1748_v11, 1  ;;  %v1783_v47 = vrot.slane %v1761_v8, %v7290_v39  ;;  %v1799_v54 = vrot.slane %v1791_v0, %v7290_v39  ;;  %v1836_v15 = vrot.slane %v1835_v22, 4 }
 0x166   :  { %v1843_v55 = vrot.slane %v1842_v58, 4  ;;  %v1849_v37 = vsel %vm7308_vm12, %v1821_v12, 0.0  ;;  %v1856_v26 = vsel %vm7309_vm10, %v1822_v36, 0.0  ;;  %v1863_v33 = vsel %vm7310_vm13, %v1823_v42, 0.0  ;;  %v5463_v42 = vld [vmem:[#allocation2 + $0x408] sm:$0xff] }
 0x167   :  { %v1750_v31 = vadd.f32 %v1749_v17, %v1748_v11  ;;  %v1837_v57 = vadd.f32 %v1836_v15, %v1835_v22  ;;  %v1850_v51 = vrot.slane %v1849_v37, 4  ;;  %v1857_v5 = vrot.slane %v1856_v26, 4  ;;  %v5461_v11 = vld [vmem:[#allocation2 + $0x400] sm:$0xff] }
 0x168   :  { %v1844_v63 = vadd.f32 %v1843_v55, %v1842_v58  ;;  %v1864_v40 = vrot.slane %v1863_v33, 4  ;;  %v1870_v25 = vsel %vm7311_vm7, %v1824_v14, 0.0  ;;  %v1877_v46 = vsel %vm7312_vm2, %v1825_v24, 0.0  ;;  %v5465_v14 = vld [vmem:[#allocation2 + $0x410] sm:$0xff]  ;;  %v5471_v17 = vld [vmem:[#allocation2 + $0x420] sm:$0xff]  ;;  %v5475_v58 = vld [vmem:[#allocation2 + $0x488] sm:$0xff] }
 0x169   :  { %v1762_v29 = vcombine.low %v1743_v60, %v1750_v31  ;;  %v1838_v2 = vrot.slane %v1837_v57, 2  ;;  %v1851_v28 = vadd.f32 %v1850_v51, %v1849_v37  ;;  %v1858_v7 = vadd.f32 %v1857_v5, %v1856_v26  ;;  %v5469_v60 = vld [vmem:[#allocation2 + $0x418] sm:$0xff]  ;;  %v5473_v22 = vld [vmem:[#allocation2 + $0x480] sm:$0xff]  ;;  %7314 = vst [vmem:[#allocation10_spill] sm:$0xff] %v5475_v58  ;;  %v5480_v55 = vld [vmem:[#allocation2 + $0x428] sm:$0xff] }
 0x16a   :  { %v1845_v43 = vrot.slane %v1844_v63, 2  ;;  %v1865_v3 = vadd.f32 %v1864_v40, %v1863_v33  ;;  %v1871_v56 = vrot.slane %v1870_v25, 4  ;;  %v1878_v44 = vrot.slane %v1877_v46, 4  ;;  %v5482_v31 = vld [vmem:[#allocation2 + $0x430] sm:$0xff]  ;;  %v5484_v37 = vld [vmem:[#allocation2 + $0x438] sm:$0xff]  ;;  %v5488_v33 = vld [vmem:[#allocation2 + $0x4a0] sm:$0xff] }
 0x16b   :  { %v1790_v16 = vrot.slane %v1762_v29, %v7290_v39  ;;  %v1839_v38 = vadd.f32 %v1838_v2, %v1837_v57  ;;  %v1852_v4 = vrot.slane %v1851_v28, 2  ;;  %v1859_v34 = vrot.slane %v1858_v7, 2  ;;  %v5486_v26 = vld [vmem:[#allocation2 + $0x498] sm:$0xff]  ;;  %7317 = vst [vmem:[#allocation13_spill] sm:$0xff] %v5488_v33  ;;  %v5490_v57 = vld [vmem:[#allocation2 + $0x4a8] sm:$0xff]  ;;  %v5492_v5 = vld [vmem:[#allocation2 + $0x440] sm:$0xff] }
 0x16c   :  { %v1846_v21 = vadd.f32 %v1845_v43, %v1844_v63  ;;  %v1866_v19 = vrot.slane %v1865_v3, 2  ;;  %v1872_v1 = vadd.f32 %v1871_v56, %v1870_v25  ;;  %v1879_v53 = vadd.f32 %v1878_v44, %v1877_v46  ;;  %7316 = vst [vmem:[#allocation12_spill] sm:$0xff] %v5486_v26  ;;  %7318 = vst [vmem:[#allocation14_spill] sm:$0xff] %v5490_v57  ;;  %v5494_v29 = vld [vmem:[#allocation2 + $0x448] sm:$0xff]  ;;  %v5496_v40 = vld [vmem:[#allocation2 + $0x450] sm:$0xff] }
 0x16d   :  { %v1792_v41 = vcombine.low %v1783_v47, %v1790_v16  ;;  %v1840_v23 = vrot.slane %v1839_v38, 1  ;;  %v1853_v35 = vadd.f32 %v1852_v4, %v1851_v28  ;;  %v1860_v20 = vadd.f32 %v1859_v34, %v1858_v7  ;;  %v5498_v25 = vld [vmem:[#allocation2 + $0x458] sm:$0xff]  ;;  %v5500_v46 = vld [vmem:[#allocation2 + $0x4b0] sm:$0xff]  ;;  %v5504_v43 = vld [vmem:[#allocation2 + $0x4c0] sm:$0xff] }
 0x16e   :  { %v1847_v9 = vrot.slane %v1846_v21, 1  ;;  %v1867_v10 = vadd.f32 %v1866_v19, %v1865_v3  ;;  %v1873_v18 = vrot.slane %v1872_v1, 2  ;;  %v1880_v6 = vrot.slane %v1879_v53, 2  ;;  %7319 = vst [vmem:[#allocation15_spill] sm:$0xff] %v5500_v46  ;;  %v5502_v2 = vld [vmem:[#allocation2 + $0x4b8] sm:$0xff]  ;;  %7321 = vst [vmem:[#allocation17_spill] sm:$0xff] %v5504_v43 }
 0x16f   :  { %v1806_v45 = vrot.slane %v1792_v41, %v7290_v39  ;;  %v1841_v50 = vadd.f32 %v1840_v23, %v1839_v38  ;;  %v1854_v61 = vrot.slane %v1853_v35, 1  ;;  %v1861_v13 = vrot.slane %v1860_v20, 1  ;;  %7320 = vst [vmem:[#allocation16_spill] sm:$0xff] %v5502_v2  ;;  %v5507_v7 = vld [vmem:[#allocation2 + $0x460] sm:$0xff]  ;;  %v5509_v16 = vld [vmem:[#allocation2 + $0x468] sm:$0xff]  ;;  %v5513_v56 = vld [vmem:[#allocation2 + $0x4d0] sm:$0xff] }
 0x170   :  { %v1848_v59 = vadd.f32 %v1847_v9, %v1846_v21  ;;  %v1868_v32 = vrot.slane %v1867_v10, 1  ;;  %v1874_v48 = vadd.f32 %v1873_v18, %v1872_v1  ;;  %v1881_v62 = vadd.f32 %v1880_v6, %v1879_v53  ;;  %v5511_v3 = vld [vmem:[#allocation2 + $0x4c8] sm:$0xff]  ;;  %7323 = vst [vmem:[#allocation19_spill] sm:$0xff] %v5513_v56  ;;  %v5515_v44 = vld [vmem:[#allocation2 + $0x4d8] sm:$0xff]  ;;  %v5520_v34 = vld [vmem:[#allocation2 + $0x470] sm:$0xff] }
 0x171   :  { %v1807_v52 = vcombine.low %v1799_v54, %v1806_v45  ;;  %v1855_v30 = vadd.f32 %v1854_v61, %v1853_v35  ;;  %v1862_v12 = vadd.f32 %v1861_v13, %v1860_v20  ;;  %v1884_v36 = vsel %vm7313_vm14, %v1826_v49, 0.0  ;;  %v5477_v49 = vld [vmem:[#allocation2 + $0x490] sm:$0xff]  ;;  %7322 = vst [vmem:[#allocation18_spill] sm:$0xff] %v5511_v3  ;;  %7324 = vst [vmem:[#allocation21_spill] sm:$0xff] %v5515_v44  ;;  %v5522_v41 = vld [vmem:[#allocation2 + $0x478] sm:$0xff] }
 0x172   :  { %v1899_v27 = vcombine.low %v1841_v50, %v1848_v59  ;;  %v5467_v8 = vadd.f32 %v1868_v32, %v1867_v10  ;;  %v1875_v0 = vrot.slane %v1874_v48, 1  ;;  %v1885_v24 = vrot.slane %v1884_v36, 4  ;;  %7315 = vst [vmem:[#allocation11_spill] sm:$0xff] %v5477_v49  ;;  %v5524_v19 = vld [vmem:[#allocation2 + $0x4e0] sm:$0xff]  ;;  %v5526_v1 = vld [vmem:[#allocation2 + $0x4e8] sm:$0xff]  ;;  %v5528_v53 = vld [vmem:[#allocation2 + $0x4f0] sm:$0xff] }
 0x173   :  { %1810 = vst [vmem:[#allocation5 + $0x22] ss:$4 sm:$0xff] %v1807_v52  ;;  %v1882_v47 = vrot.slane %v1881_v62, 1  ;;  %v1900_v54 = vcombine.low %v1855_v30, %v1862_v12  ;;  %v1985_v38 = vadd.f32 %v5473_v22, %v5461_v11  ;;  %7325 = vst [vmem:[#allocation22_spill] sm:$0xff] %v5524_v19  ;;  %v1986_v23 = vadd.f32 %v5475_v58, %v5463_v42  ;;  %v5536_v45 = vld [vmem:[#allocation2 + $0x4f8] sm:$0xff]  ;;  %v5542_v6 = vld [vmem:[#allocation2 + $0x500] sm:$0xff] }
 0x174   :  { %v1909_v15 = vrot.slane %v1899_v27, %v7290_v39  ;;  %v1876_v63 = vadd.f32 %v1875_v0, %v1874_v48  ;;  %v1886_v51 = vadd.f32 %v1885_v24, %v1884_v36  ;;  %7326 = vst [vmem:[#allocation23_spill] sm:$0xff] %v5526_v1  ;;  %7327 = vst [vmem:[#allocation24_spill] sm:$0xff] %v5528_v53  ;;  %v5544_v50 = vld [vmem:[#allocation2 + $0x508] sm:$0xff]  ;;  %v5552_v32 = vld [vmem:[#allocation2 + $0x510] sm:$0xff] }
 0x175   :  { %v1916_v28 = vrot.slane %v1900_v54, %v7290_v39  ;;  %v1987_v9 = vadd.f32 %v5477_v49, %v5465_v14  ;;  %v5534_v35 = vadd.f32 %v1882_v47, %v1881_v62  ;;  %7328 = vst [vmem:[#allocation49_spill] sm:$0xff] %v5536_v45  ;;  %v1988_v10 = vadd.f32 %v5486_v26, %v5469_v60  ;;  %v5554_v48 = vld [vmem:[#allocation2 + $0x518] sm:$0xff]  ;;  %v5556_v62 = vld [vmem:[#allocation2 + $0x520] sm:$0xff]  ;;  %v5568_v0 = vld [vmem:[#allocation2 + $0x530] sm:$0xff] }
 0x176   :  { %v1887_v21 = vrot.slane %v1886_v51, 2  ;;  %v1901_v4 = vcombine.low %v5467_v8, %v1876_v63  ;;  %v1989_v18 = vadd.f32 %v5488_v33, %v5471_v17  ;;  %7329 = vst [vmem:[#allocation25_spill] sm:$0xff] %v5542_v6  ;;  %v1990_v61 = vadd.f32 %v5490_v57, %v5480_v55  ;;  %7330 = vst [vmem:[#allocation50_spill] sm:$0xff] %v5556_v62  ;;  %v5566_v8 = vld [vmem:[#allocation2 + $0x528] sm:$0xff]  ;;  %v5570_v24 = vld [vmem:[#allocation2 + $0x538] sm:$0xff] }
 0x177   :  { %v1931_v20 = vcombine.low %v1909_v15, %v1916_v28  ;;  %v1991_v13 = vadd.f32 %v5500_v46, %v5482_v31  ;;  %v1992_v52 = vadd.f32 %v5502_v2, %v5484_v37  ;;  %v1993_v30 = vadd.f32 %v5504_v43, %v5492_v5  ;;  %7331 = vst [vmem:[#allocation26_spill] sm:$0xff] %v5566_v8  ;;  %v5581_v28 = vld [vmem:[#allocation2 + $0x548] sm:$0xff]  ;;  %v5599_v46 = vld [vmem:[#allocation2 + $0x570] sm:$0xff]  ;;  %v5601_v57 = vld [vmem:[#allocation2 + $0x578] sm:$0xff] }
 0x178   :  { %v1888_v59 = vadd.f32 %v1887_v21, %v1886_v51  ;;  %v1994_v12 = vadd.f32 %v5511_v3, %v5494_v29  ;;  %v1995_v36 = vadd.f32 %v5513_v56, %v5496_v40  ;;  %v1996_v27 = vadd.f32 %v5515_v44, %v5498_v25  ;;  %7332 = vst [vmem:[#allocation51_spill] sm:$0xff] %v5568_v0  ;;  %v5579_v51 = vld [vmem:[#allocation2 + $0x540] sm:$0xff]  ;;  %v5583_v21 = vld [vmem:[#allocation2 + $0x550] sm:$0xff]  ;;  %v5592_v3 = vld [vmem:[#allocation2 + $0x558] sm:$0xff] }
 0x179   :  { %7333 = vst [vmem:[#allocation27_spill] sm:$0xff] %v5570_v24  ;;  %v5573_v54 = vrot.slane %v1901_v4, %v7290_v39  ;;  %v1997_v15 = vadd.f32 %v5524_v19, %v5507_v7  ;;  %v1998_v63 = vadd.f32 %v5526_v1, %v5509_v16  ;;  %7334 = vst [vmem:[#allocation48_spill] sm:$0xff] %v5579_v51  ;;  %v5594_v19 = vld [vmem:[#allocation2 + $0x560] sm:$0xff]  ;;  %v5596_v1 = vld [vmem:[#allocation2 + $0x568] sm:$0xff] }
 0x17a   :  { %v1889_v47 = vrot.slane %v1888_v59, 1  ;;  %7335 = vst [vmem:[#allocation28_spill] sm:$0xff] %v5581_v28  ;;  %7336 = vst [vmem:[#allocation20_spill] sm:$0xff] %v5583_v21  ;;  %v5586_v44 = vrot.slane %v1931_v20, %v7290_v39  ;;  %v1999_v56 = vadd.f32 %v5528_v53, %v5520_v34  ;;  %v2000_v4 = vadd.f32 %v5536_v45, %v5522_v41  ;;  %v5606_v45 = vld [vmem:[#allocation2 + $0x580] sm:$0xff] }
 0x17b   :  { %7337 = vst [vmem:[#allocation29_spill] sm:$0xff] %v5592_v3  ;;  %7338 = vst [vmem:[#allocation8_spill] sm:$0xff] %v5594_v19  ;;  %v2018_v43 = vadd.f32 %v5542_v6, %v1985_v38  ;;  %v2019_v20 = vadd.f32 %v5544_v50, %v1986_v23  ;;  %v2020_v53 = vadd.f32 %v5552_v32, %v1987_v9  ;;  %v5616_v6 = vld [vmem:[#allocation2 + $0x598] sm:$0xff] }
 0x17c   :  { %7339 = vst [vmem:[#allocation30_spill] sm:$0xff] %v5596_v1  ;;  %v1890_v2 = vadd.f32 %v1889_v47, %v1888_v59  ;;  %7340 = vst [vmem:[#allocation31_spill] sm:$0xff] %v5599_v46  ;;  %v2021_v33 = vadd.f32 %v5554_v48, %v1988_v10  ;;  %v2022_v26 = vadd.f32 %v5556_v62, %v1989_v18  ;;  %v5612_v59 = vld [vmem:[#allocation2 + $0x588] sm:$0xff]  ;;  %v5614_v47 = vld [vmem:[#allocation2 + $0x590] sm:$0xff] }
 0x17d   :  { %7341 = vst [vmem:[#allocation32_spill] sm:$0xff] %v5601_v57  ;;  %7342 = vst [vmem:[#allocation33_spill] sm:$0xff] %v5606_v45  ;;  %v2023_v49 = vadd.f32 %v5566_v8, %v1990_v61  ;;  %v2024_v58 = vadd.f32 %v5568_v0, %v1991_v13  ;;  %v2025_v38 = vadd.f32 %v5570_v24, %v1992_v52  ;;  %v5622_v62 = vld [vmem:[#allocation2 + $0x5a0] sm:$0xff]  ;;  %v5624_v61 = vld [vmem:[#allocation2 + $0x5a8] sm:$0xff] }
 0x17e   :  { %7343 = vst [vmem:[#allocation34_spill] sm:$0xff] %v5612_v59  ;;  %7344 = vst [vmem:[#allocation35_spill] sm:$0xff] %v5614_v47  ;;  %v1902_v23 = vcombine.low %v5534_v35, %v1890_v2  ;;  %v2026_v9 = vadd.f32 %v5579_v51, %v1993_v30  ;;  %v2027_v10 = vadd.f32 %v5581_v28, %v1994_v12  ;;  %v5626_v13 = vld [vmem:[#allocation2 + $0x5b0] sm:$0xff]  ;;  %v5632_v35 = vld [vmem:[#allocation2 + $0x5b8] sm:$0xff] }
 0x17f   :  { %7345 = vst [vmem:[#allocation36_spill] sm:$0xff] %v5616_v6  ;;  %v2028_v18 = vadd.f32 %v5583_v21, %v1995_v36  ;;  %7346 = vst [vmem:[#allocation37_spill] sm:$0xff] %v5622_v62  ;;  %v2029_v52 = vadd.f32 %v5592_v3, %v1996_v27  ;;  %v2030_v24 = vadd.f32 %v5594_v19, %v1997_v15  ;;  %v5634_v30 = vld [vmem:[#allocation2 + $0x5c0] sm:$0xff]  ;;  %v5636_v12 = vld [vmem:[#allocation2 + $0x5c8] sm:$0xff] }
 0x180   :  { %7347 = vst [vmem:[#allocation38_spill] sm:$0xff] %v5624_v61  ;;  %7348 = vst [vmem:[#allocation39_spill] sm:$0xff] %v5626_v13  ;;  %v2031_v0 = vadd.f32 %v5596_v1, %v1998_v63  ;;  %v2032_v2 = vadd.f32 %v5599_v46, %v1999_v56  ;;  %v1930_v36 = vrot.slane %v1902_v23, %v7290_v39  ;;  %v5640_v28 = vld [vmem:[#allocation2 + $0x5d0] sm:$0xff]  ;;  %v5642_v51 = vld [vmem:[#allocation2 + $0x5d8] sm:$0xff] }
 0x181   :  { %7349 = vst [vmem:[#allocation40_spill] sm:$0xff] %v5632_v35  ;;  %7350 = vst [vmem:[#allocation41_spill] sm:$0xff] %v5634_v30  ;;  %v2033_v21 = vadd.f32 %v5601_v57, %v2000_v4  ;;  %v5644_v27 = vld [vmem:[#allocation2 + $0x5e0] sm:$0xff]  ;;  %v2051_v15 = vadd.f32 %v5606_v45, %v2018_v43  ;;  %v2052_v56 = vadd.f32 %v5612_v59, %v2019_v20  ;;  %v5648_v63 = vld [vmem:[#allocation2 + $0x5e8] sm:$0xff] }
 0x182   :  { %7351 = vst [vmem:[#allocation42_spill] sm:$0xff] %v5636_v12  ;;  %7352 = vst [vmem:[#allocation43_spill] sm:$0xff] %v5640_v28  ;;  %v5650_v46 = vld [vmem:[#allocation2 + $0x5f0] sm:$0xff]  ;;  %v5652_v1 = vld [vmem:[#allocation2 + $0x5f8] sm:$0xff]  ;;  %v2053_v23 = vadd.f32 %v5614_v47, %v2020_v53  ;;  %v2054_v4 = vadd.f32 %v5616_v6, %v2021_v33  ;;  %v2055_v57 = vadd.f32 %v5622_v62, %v2022_v26 }
 0x183   :  { %7353 = vst [vmem:[#allocation52_spill] sm:$0xff] %v5642_v51  ;;  %7354 = vst [vmem:[#allocation44_spill] sm:$0xff] %v5644_v27  ;;  %v2056_v19 = vadd.f32 %v5624_v61, %v2023_v49  ;;  %v1932_v3 = vcombine.low %v5573_v54, %v1930_v36  ;;  %v2057_v43 = vadd.f32 %v5626_v13, %v2024_v58  ;;  %v5670_v36 = vmul.f32 0.25, %v2051_v15 }
 0x184   :  { %7355 = vst [vmem:[#allocation53_spill] sm:$0xff] %v5648_v63  ;;  %7356 = vst [vmem:[#allocation56_spill] sm:$0xff] %v5650_v46  ;;  %v2058_v20 = vadd.f32 %v5632_v35, %v2025_v38  ;;  %v2059_v59 = vadd.f32 %v5634_v30, %v2026_v9  ;;  %v2060_v45 = vadd.f32 %v5636_v12, %v2027_v10  ;;  %v5672_v38 = vmul.f32 0.25, %v2052_v56 }
 0x185   :  { %7357 = vst [vmem:[#allocation45_spill] sm:$0xff] %v5652_v1  ;;  %v2061_v8 = vadd.f32 %v5640_v28, %v2028_v18  ;;  %v2062_v53 = vadd.f32 %v5642_v51, %v2029_v52  ;;  %v2063_v33 = vadd.f32 %v5644_v27, %v2030_v24  ;;  %v1946_v26 = vrot.slane %v1932_v3, %v7290_v39 }
 0x186   :  { %v2064_v49 = vadd.f32 %v5648_v63, %v2031_v0  ;;  %v2065_v54 = vadd.f32 %v5650_v46, %v2032_v2  ;;  %v2066_v58 = vadd.f32 %v5652_v1, %v2033_v21  ;;  %v5674_v9 = vmul.f32 0.25, %v2053_v23 }
 0x187   :  { %v5676_v10 = vmul.f32 0.25, %v2054_v4  ;;  %v1947_v18 = vcombine.low %v5586_v44, %v1946_v26  ;;  %v5679_v52 = vmul.f32 0.25, %v2055_v57  ;;  %v5681_v24 = vmul.f32 0.25, %v2056_v19 }
 0x188   :  { %v5683_v3 = vmul.f32 0.25, %v2057_v43  ;;  %v5685_v0 = vmul.f32 0.25, %v2058_v20  ;;  %v5687_v2 = vmul.f32 0.25, %v2059_v59  ;;  %v5689_v21 = vmul.f32 0.25, %v2060_v45 }
 0x189   :  { %v5691_v15 = vmul.f32 0.25, %v2061_v8  ;;  %1950 = vst [vmem:[#allocation5 + $0x23] ss:$4 sm:$0xff] %v1947_v18  ;;  %v5693_v56 = vmul.f32 0.25, %v2062_v53  ;;  %v5695_v23 = vmul.f32 0.25, %v2063_v33  ;;  %v5697_v44 = vmul.f32 0.25, %v2064_v49 }
 0x18a   :  { %7358 = vst [vmem:[#allocation57_spill] sm:$0xff] %v5687_v2  ;;  %7359 = vst [vmem:[#allocation54_spill] sm:$0xff] %v5689_v21  ;;  %v5699_v57 = vmul.f32 0.25, %v2065_v54  ;;  %v5701_v19 = vmul.f32 0.25, %v2066_v58  ;;  %v2083_v4 = vsub.f32 %v5461_v11, %v5670_v36  ;;  %v2084_v45 = vsub.f32 %v5463_v42, %v5672_v38 }
 0x18b   :  { %7360 = vst [vmem:[#allocation58_spill] sm:$0xff] %v5691_v15  ;;  %7361 = vst [vmem:[#allocation46_spill] sm:$0xff] %v5693_v56  ;;  %v2085_v8 = vsub.f32 %v5465_v14, %v5674_v9  ;;  %v2086_v59 = vsub.f32 %v5469_v60, %v5676_v10  ;;  %v2087_v43 = vsub.f32 %v5471_v17, %v5679_v52 }
 0x18c   :  { %7362 = vst [vmem:[#allocation59_spill] sm:$0xff] %v5695_v23  ;;  %7363 = vst [vmem:[#allocation55_spill] sm:$0xff] %v5697_v44  ;;  %v2088_v20 = vsub.f32 %v5480_v55, %v5681_v24  ;;  %v2089_v53 = vsub.f32 %v5482_v31, %v5683_v3  ;;  %v2090_v11 = vsub.f32 %v5484_v37, %v5685_v0 }
 0x18d   :  { %7364 = vst [vmem:[#allocation47_spill] sm:$0xff] %v5699_v57  ;;  %v2091_v42 = vsub.f32 %v5492_v5, %v5687_v2  ;;  %v2092_v14 = vsub.f32 %v5494_v29, %v5689_v21  ;;  %v2093_v60 = vsub.f32 %v5496_v40, %v5691_v15  ;;  %v2094_v17 = vsub.f32 %v5498_v25, %v5693_v56 }
 0x18e   :  { %v2095_v55 = vsub.f32 %v5507_v7, %v5695_v23  ;;  %v2096_v31 = vsub.f32 %v5509_v16, %v5697_v44  ;;  %v2097_v37 = vsub.f32 %v5520_v34, %v5699_v57  ;;  %v2098_v5 = vsub.f32 %v5522_v41, %v5701_v19  ;;  %v7365_v41 = vld [vmem:[#allocation10_spill] sm:$0xff] }
 0x18f   :  { %v2099_v33 = vmul.f32 %v2083_v4, %v2083_v4  ;;  %v2100_v29 = vmul.f32 %v2084_v45, %v2084_v45  ;;  %v2101_v26 = vmul.f32 %v2085_v8, %v2085_v8  ;;  %v2102_v49 = vmul.f32 %v2086_v59, %v2086_v59  ;;  %v7366_v45 = vld [vmem:[#allocation11_spill] sm:$0xff]  ;;  %v7367_v59 = vld [vmem:[#allocation12_spill] sm:$0xff] }
 0x190   :  { %v2103_v40 = vmul.f32 %v2087_v43, %v2087_v43  ;;  %v2104_v54 = vmul.f32 %v2088_v20, %v2088_v20  ;;  %v2105_v58 = vmul.f32 %v2089_v53, %v2089_v53  ;;  %v2106_v25 = vmul.f32 %v2090_v11, %v2090_v11  ;;  %v7368_v20 = vld [vmem:[#allocation13_spill] sm:$0xff]  ;;  %v7369_v11 = vld [vmem:[#allocation14_spill] sm:$0xff] }
 0x191   :  { %v2107_v18 = vmul.f32 %v2091_v42, %v2091_v42  ;;  %v2108_v39 = vmul.f32 %v2092_v14, %v2092_v14  ;;  %v2109_v7 = vmul.f32 %v2093_v60, %v2093_v60  ;;  %v2110_v1 = vmul.f32 %v2094_v17, %v2094_v17  ;;  %v7370_v14 = vld [vmem:[#allocation15_spill] sm:$0xff] }
 0x192   :  { %v2111_v46 = vmul.f32 %v2095_v55, %v2095_v55  ;;  %v2112_v16 = vmul.f32 %v2096_v31, %v2096_v31  ;;  %v2113_v63 = vmul.f32 %v2097_v37, %v2097_v37  ;;  %v2114_v27 = vmul.f32 %v2098_v5, %v2098_v5  ;;  %v7372_v55 = vld [vmem:[#allocation17_spill] sm:$0xff]  ;;  %v7373_v37 = vld [vmem:[#allocation18_spill] sm:$0xff] }
 0x193   :  { %v2115_v34 = vsub.f32 %v5473_v22, %v5670_v36  ;;  %v2116_v4 = vsub.f32 %v7365_v41, %v5672_v38  ;;  %v2117_v8 = vsub.f32 %v7366_v45, %v5674_v9  ;;  %v2118_v43 = vsub.f32 %v7367_v59, %v5676_v10  ;;  %v7371_v22 = vld [vmem:[#allocation16_spill] sm:$0xff]  ;;  %v7374_v41 = vld [vmem:[#allocation19_spill] sm:$0xff]  ;;  %v7375_v59 = vld [vmem:[#allocation21_spill] sm:$0xff] }
 0x194   :  { %v2119_v53 = vsub.f32 %v7368_v20, %v5679_v52  ;;  %v2120_v42 = vsub.f32 %v7369_v11, %v5681_v24  ;;  %v2121_v60 = vsub.f32 %v7370_v14, %v5683_v3  ;;  %v2122_v17 = vsub.f32 %v7371_v22, %v5685_v0  ;;  %v7376_v11 = vld [vmem:[#allocation22_spill] sm:$0xff]  ;;  %v7377_v14 = vld [vmem:[#allocation23_spill] sm:$0xff]  ;;  %v7378_v22 = vld [vmem:[#allocation24_spill] sm:$0xff] }
 0x195   :  { %v2123_v31 = vsub.f32 %v7372_v55, %v5687_v2  ;;  %v2124_v5 = vsub.f32 %v7373_v37, %v5689_v21  ;;  %v2125_v45 = vsub.f32 %v7374_v41, %v5691_v15  ;;  %v2126_v20 = vsub.f32 %v7375_v59, %v5693_v56  ;;  %v7379_v55 = vld [vmem:[#allocation49_spill] sm:$0xff] }
 0x196   :  { %v2127_v51 = vsub.f32 %v7376_v11, %v5695_v23  ;;  %v2128_v28 = vsub.f32 %v7377_v14, %v5697_v44  ;;  %v2129_v12 = vsub.f32 %v7378_v22, %v5699_v57  ;;  %v2130_v30 = vsub.f32 %v7379_v55, %v5701_v19 }
 0x197   :  { %v2131_v35 = vmul.f32 %v2115_v34, %v2115_v34  ;;  %v2132_v37 = vmul.f32 %v2116_v4, %v2116_v4  ;;  %v2133_v13 = vmul.f32 %v2117_v8, %v2117_v8  ;;  %v2134_v61 = vmul.f32 %v2118_v43, %v2118_v43 }
 0x198   :  { %v2135_v41 = vmul.f32 %v2119_v53, %v2119_v53  ;;  %v2136_v62 = vmul.f32 %v2120_v42, %v2120_v42  ;;  %v2137_v6 = vmul.f32 %v2121_v60, %v2121_v60  ;;  %v2138_v59 = vmul.f32 %v2122_v17, %v2122_v17 }
 0x199   :  { %v2139_v47 = vmul.f32 %v2123_v31, %v2123_v31  ;;  %v2140_v56 = vmul.f32 %v2124_v5, %v2124_v5  ;;  %v2141_v11 = vmul.f32 %v2125_v45, %v2125_v45  ;;  %v2142_v23 = vmul.f32 %v2126_v20, %v2126_v20 }
 0x19a   :  { %v2143_v15 = vmul.f32 %v2127_v51, %v2127_v51  ;;  %v2144_v14 = vmul.f32 %v2128_v28, %v2128_v28  ;;  %v2145_v44 = vmul.f32 %v2129_v12, %v2129_v12  ;;  %v2146_v21 = vmul.f32 %v2130_v30, %v2130_v30  ;;  %v7380_v51 = vld [vmem:[#allocation25_spill] sm:$0xff]  ;;  %v7384_v30 = vld [vmem:[#allocation27_spill] sm:$0xff] }
 0x19b   :  { %v2147_v22 = vadd.f32 %v2131_v35, %v2099_v33  ;;  %v2148_v57 = vadd.f32 %v2132_v37, %v2100_v29  ;;  %v2149_v2 = vadd.f32 %v2133_v13, %v2101_v26  ;;  %v2150_v55 = vadd.f32 %v2134_v61, %v2102_v49  ;;  %v7392_v33 = vld [vmem:[#allocation29_spill] sm:$0xff]  ;;  %v7393_v26 = vld [vmem:[#allocation59_spill] sm:$0xff]  ;;  %v7394_v49 = vld [vmem:[#allocation8_spill] sm:$0xff] }
 0x19c   :  { %v2151_v34 = vadd.f32 %v2135_v41, %v2103_v40  ;;  %v2152_v4 = vadd.f32 %v2136_v62, %v2104_v54  ;;  %v2153_v8 = vadd.f32 %v2137_v6, %v2105_v58  ;;  %v2154_v43 = vadd.f32 %v2138_v59, %v2106_v25  ;;  %v7395_v54 = vld [vmem:[#allocation55_spill] sm:$0xff]  ;;  %v7396_v58 = vld [vmem:[#allocation30_spill] sm:$0xff]  ;;  %v7399_v37 = vld [vmem:[#allocation32_spill] sm:$0xff] }
 0x19d   :  { %v2155_v53 = vadd.f32 %v2139_v47, %v2107_v18  ;;  %v2156_v42 = vadd.f32 %v2140_v56, %v2108_v39  ;;  %v2157_v60 = vadd.f32 %v2141_v11, %v2109_v7  ;;  %v2158_v17 = vadd.f32 %v2142_v23, %v2110_v1  ;;  %v7381_v39 = vld [vmem:[#allocation50_spill] sm:$0xff]  ;;  %v7383_v47 = vld [vmem:[#allocation51_spill] sm:$0xff] }
 0x19e   :  { %v2159_v31 = vadd.f32 %v2143_v15, %v2111_v46  ;;  %v2160_v5 = vadd.f32 %v2144_v14, %v2112_v16  ;;  %v2161_v45 = vadd.f32 %v2145_v44, %v2113_v63  ;;  %v2162_v20 = vadd.f32 %v2146_v21, %v2114_v27  ;;  %v7382_v46 = vld [vmem:[#allocation26_spill] sm:$0xff]  ;;  %v7385_v27 = vld [vmem:[#allocation57_spill] sm:$0xff]  ;;  %v7397_v18 = vld [vmem:[#allocation47_spill] sm:$0xff] }
 0x19f   :  { %v2163_v28 = vsub.f32 %v7380_v51, %v5670_v36  ;;  %v2164_v35 = vsub.f32 %v5544_v50, %v5672_v38  ;;  %v2165_v61 = vsub.f32 %v5552_v32, %v5674_v9  ;;  %v2166_v6 = vsub.f32 %v5554_v48, %v5676_v10  ;;  %v7386_v50 = vld [vmem:[#allocation48_spill] sm:$0xff]  ;;  %v7387_v21 = vld [vmem:[#allocation54_spill] sm:$0xff]  ;;  %v7398_v7 = vld [vmem:[#allocation31_spill] sm:$0xff] }
 0x1a0   :  { %v2167_v62 = vsub.f32 %v7381_v39, %v5679_v52  ;;  %v2168_v1 = vsub.f32 %v7382_v46, %v5681_v24  ;;  %v2169_v13 = vsub.f32 %v7383_v47, %v5683_v3  ;;  %v2170_v12 = vsub.f32 %v7384_v30, %v5685_v0  ;;  %v7388_v32 = vld [vmem:[#allocation28_spill] sm:$0xff]  ;;  %v7389_v56 = vld [vmem:[#allocation58_spill] sm:$0xff] }
 0x1a1   :  { %v2171_v63 = vsub.f32 %v7386_v50, %v7385_v27  ;;  %v2172_v15 = vsub.f32 %v7388_v32, %v7387_v21  ;;  %v7390_v48 = vld [vmem:[#allocation20_spill] sm:$0xff]  ;;  %v7391_v44 = vld [vmem:[#allocation46_spill] sm:$0xff]  ;;  %v2175_v40 = vsub.f32 %v7394_v49, %v7393_v26  ;;  %v2176_v25 = vsub.f32 %v7396_v58, %v7395_v54 }
 0x1a2   :  { %v2173_v23 = vsub.f32 %v7390_v48, %v7389_v56  ;;  %v2174_v29 = vsub.f32 %v7392_v33, %v7391_v44  ;;  %v2177_v16 = vsub.f32 %v7398_v7, %v7397_v18  ;;  %v2178_v41 = vsub.f32 %v7399_v37, %v5701_v19 }
 0x1a3   :  { %v2179_v59 = vmul.f32 %v2163_v28, %v2163_v28  ;;  %v2180_v11 = vmul.f32 %v2164_v35, %v2164_v35  ;;  %v2181_v14 = vmul.f32 %v2165_v61, %v2165_v61  ;;  %v2182_v51 = vmul.f32 %v2166_v6, %v2166_v6 }
 0x1a4   :  { %v2183_v39 = vmul.f32 %v2167_v62, %v2167_v62  ;;  %v2184_v46 = vmul.f32 %v2168_v1, %v2168_v1  ;;  %v2185_v47 = vmul.f32 %v2169_v13, %v2169_v13  ;;  %v2186_v30 = vmul.f32 %v2170_v12, %v2170_v12  ;;  %v7400_v1 = vld [vmem:[#allocation33_spill] sm:$0xff]  ;;  %v7401_v12 = vld [vmem:[#allocation34_spill] sm:$0xff] }
 0x1a5   :  { %v2187_v50 = vmul.f32 %v2171_v63, %v2171_v63  ;;  %v2188_v32 = vmul.f32 %v2172_v15, %v2172_v15  ;;  %v2189_v48 = vmul.f32 %v2173_v23, %v2173_v23  ;;  %v2190_v33 = vmul.f32 %v2174_v29, %v2174_v29 }
 0x1a6   :  { %v2191_v49 = vmul.f32 %v2175_v40, %v2175_v40  ;;  %v2192_v58 = vmul.f32 %v2176_v25, %v2176_v25  ;;  %v2193_v54 = vmul.f32 %v2177_v16, %v2177_v16  ;;  %v2194_v26 = vmul.f32 %v2178_v41, %v2178_v41  ;;  %v7402_v40 = vld [vmem:[#allocation35_spill] sm:$0xff]  ;;  %v7412_v16 = vld [vmem:[#allocation52_spill] sm:$0xff] }
 0x1a7   :  { %v2195_v7 = vadd.f32 %v2179_v59, %v2147_v22  ;;  %v2196_v18 = vadd.f32 %v2180_v11, %v2148_v57  ;;  %v2197_v44 = vadd.f32 %v2181_v14, %v2149_v2  ;;  %v2198_v37 = vadd.f32 %v2182_v51, %v2150_v55  ;;  %v7413_v59 = vld [vmem:[#allocation59_spill] sm:$0xff] }
 0x1a8   :  { %v2199_v28 = vadd.f32 %v2183_v39, %v2151_v34  ;;  %v2200_v35 = vadd.f32 %v2184_v46, %v2152_v4  ;;  %v2201_v61 = vadd.f32 %v2185_v47, %v2153_v8  ;;  %v2202_v6 = vadd.f32 %v2186_v30, %v2154_v43  ;;  %v7403_v4 = vld [vmem:[#allocation36_spill] sm:$0xff]  ;;  %v7404_v43 = vld [vmem:[#allocation37_spill] sm:$0xff]  ;;  %v7415_v14 = vld [vmem:[#allocation55_spill] sm:$0xff] }
 0x1a9   :  { %v2203_v62 = vadd.f32 %v2187_v50, %v2155_v53  ;;  %v2211_v13 = vsub.f32 %v7400_v1, %v5670_v36  ;;  %v2212_v63 = vsub.f32 %v7401_v12, %v5672_v38  ;;  %v2204_v15 = vadd.f32 %v2188_v32, %v2156_v42  ;;  %v7405_v36 = vld [vmem:[#allocation38_spill] sm:$0xff]  ;;  %v7406_v38 = vld [vmem:[#allocation39_spill] sm:$0xff]  ;;  %v7419_v47 = vld [vmem:[#allocation45_spill] sm:$0xff] }
 0x1aa   :  { %v2205_v23 = vadd.f32 %v2189_v48, %v2157_v60  ;;  %v2206_v29 = vadd.f32 %v2190_v33, %v2158_v17  ;;  %v2213_v22 = vsub.f32 %v7402_v40, %v5674_v9  ;;  %v2207_v57 = vadd.f32 %v2191_v49, %v2159_v31  ;;  %v7407_v60 = vld [vmem:[#allocation40_spill] sm:$0xff]  ;;  %v7408_v9 = vld [vmem:[#allocation41_spill] sm:$0xff]  ;;  %v7417_v39 = vld [vmem:[#allocation47_spill] sm:$0xff] }
 0x1ab   :  { %v2208_v2 = vadd.f32 %v2192_v58, %v2160_v5  ;;  %v2209_v55 = vadd.f32 %v2193_v54, %v2161_v45  ;;  %v2210_v34 = vadd.f32 %v2194_v26, %v2162_v20  ;;  %v2214_v8 = vsub.f32 %v7403_v4, %v5676_v10  ;;  %v7409_v20 = vld [vmem:[#allocation42_spill] sm:$0xff]  ;;  %v7410_v26 = vld [vmem:[#allocation43_spill] sm:$0xff] }
 0x1ac   :  { %v2215_v53 = vsub.f32 %v7404_v43, %v5679_v52  ;;  %v2216_v25 = vsub.f32 %v7405_v36, %v5681_v24  ;;  %v2217_v42 = vsub.f32 %v7406_v38, %v5683_v3  ;;  %v2218_v17 = vsub.f32 %v7407_v60, %v5685_v0  ;;  %v7411_v54 = vld [vmem:[#allocation46_spill] sm:$0xff]  ;;  %v7414_v3 = vld [vmem:[#allocation44_spill] sm:$0xff]  ;;  %v7416_v0 = vld [vmem:[#allocation53_spill] sm:$0xff] }
 0x1ad   :  { %v2219_v31 = vsub.f32 %v7408_v9, %v7385_v27  ;;  %v2227_v5 = vmul.f32 %v2211_v13, %v2211_v13  ;;  %v2228_v45 = vmul.f32 %v2212_v63, %v2212_v63  ;;  %v2220_v10 = vsub.f32 %v7409_v20, %v7387_v21  ;;  %v7418_v27 = vld [vmem:[#allocation56_spill] sm:$0xff] }
 0x1ae   :  { %v2221_v52 = vsub.f32 %v7410_v26, %v7389_v56  ;;  %v2222_v24 = vsub.f32 %v7412_v16, %v7411_v54  ;;  %v2229_v41 = vmul.f32 %v2213_v22, %v2213_v22  ;;  %v2223_v11 = vsub.f32 %v7414_v3, %v7413_v59 }
 0x1af   :  { %v2224_v51 = vsub.f32 %v7416_v0, %v7415_v14  ;;  %v2225_v46 = vsub.f32 %v7418_v27, %v7417_v39  ;;  %v2226_v30 = vsub.f32 %v7419_v47, %v5701_v19  ;;  %v2230_v21 = vmul.f32 %v2214_v8, %v2214_v8 }
 0x1b0   :  { %v2231_v50 = vmul.f32 %v2215_v53, %v2215_v53  ;;  %v2232_v32 = vmul.f32 %v2216_v25, %v2216_v25  ;;  %v2233_v56 = vmul.f32 %v2217_v42, %v2217_v42  ;;  %v2234_v48 = vmul.f32 %v2218_v17, %v2218_v17 }
 0x1b1   :  { %v2235_v33 = vmul.f32 %v2219_v31, %v2219_v31  ;;  %v2243_v49 = vadd.f32 %v2227_v5, %v2195_v7  ;;  %v2244_v58 = vadd.f32 %v2228_v45, %v2196_v18  ;;  %v2236_v1 = vmul.f32 %v2220_v10, %v2220_v10 }
 0x1b2   :  { %v2237_v13 = vmul.f32 %v2221_v52, %v2221_v52  ;;  %v2238_v12 = vmul.f32 %v2222_v24, %v2222_v24  ;;  %v2245_v63 = vadd.f32 %v2229_v41, %v2197_v44  ;;  %v2239_v40 = vmul.f32 %v2223_v11, %v2223_v11 }
 0x1b3   :  { %v2240_v22 = vmul.f32 %v2224_v51, %v2224_v51  ;;  %v2241_v4 = vmul.f32 %v2225_v46, %v2225_v46  ;;  %v2242_v43 = vmul.f32 %v2226_v30, %v2226_v30  ;;  %v2246_v36 = vadd.f32 %v2230_v21, %v2198_v37 }
 0x1b4   :  { %v2247_v38 = vadd.f32 %v2231_v50, %v2199_v28  ;;  %v2248_v60 = vadd.f32 %v2232_v32, %v2200_v35  ;;  %v2249_v19 = vadd.f32 %v2233_v56, %v2201_v61  ;;  %v2250_v8 = vadd.f32 %v2234_v48, %v2202_v6 }
 0x1b5   :  { %v2251_v53 = vadd.f32 %v2235_v33, %v2203_v62  ;;  %v2259_v25 = vmul.f32 0.25, %v2243_v49  ;;  %v2260_v42 = vmul.f32 0.25, %v2244_v58  ;;  %v2252_v17 = vadd.f32 %v2236_v1, %v2204_v15 }
 0x1b6   :  { %v2253_v9 = vadd.f32 %v2237_v13, %v2205_v23  ;;  %v2254_v7 = vadd.f32 %v2238_v12, %v2206_v29  ;;  %v2261_v18 = vmul.f32 0.25, %v2245_v63  ;;  %v2255_v31 = vadd.f32 %v2239_v40, %v2207_v57 }
 0x1b7   :  { %v2256_v5 = vadd.f32 %v2240_v22, %v2208_v2  ;;  %v2257_v45 = vadd.f32 %v2241_v4, %v2209_v55  ;;  %v2258_v44 = vadd.f32 %v2242_v43, %v2210_v34  ;;  %v2262_v20 = vmul.f32 0.25, %v2246_v36 }
 0x1b8   :  { %v2263_v10 = vmul.f32 0.25, %v2247_v38  ;;  %v2264_v26 = vmul.f32 0.25, %v2248_v60  ;;  %v2265_v52 = vmul.f32 0.25, %v2249_v19  ;;  %v2266_v37 = vmul.f32 0.25, %v2250_v8 }
 0x1b9   :  { %v2267_v28 = vmul.f32 0.25, %v2251_v53  ;;  %v5831_v35 = vadd.f32 1e-14, %v2259_v25  ;;  %v5833_v61 = vadd.f32 1e-14, %v2260_v42  ;;  %v2268_v6 = vmul.f32 0.25, %v2252_v17 }
 0x1ba   :  { %v2269_v62 = vmul.f32 0.25, %v2253_v9  ;;  %v2270_v15 = vmul.f32 0.25, %v2254_v7  ;;  %v5835_v23 = vadd.f32 1e-14, %v2261_v18  ;;  %v2271_v29 = vmul.f32 0.25, %v2255_v31 }
 0x1bb   :  { %v2272_v57 = vmul.f32 0.25, %v2256_v5  ;;  %v2273_v2 = vmul.f32 0.25, %v2257_v45  ;;  %3976 = vrsqrt.f32 %v5831_v35  ;;  %v2274_v55 = vmul.f32 0.25, %v2258_v44 }
 0x1bc   :  { %v5838_v34 = vadd.f32 1e-14, %v2262_v20  ;;  %v5840_v54 = vadd.f32 1e-14, %v2263_v10  ;;  %3978 = vrsqrt.f32 %v5833_v61  ;;  %v5843_v16 = vadd.f32 1e-14, %v2264_v26 }
 0x1bd   :  { %v5845_v24 = vadd.f32 1e-14, %v2265_v52  ;;  %v5847_v41 = vadd.f32 1e-14, %v2266_v37  ;;  %3980 = vrsqrt.f32 %v5835_v23  ;;  %v5850_v59 = vadd.f32 1e-14, %v2267_v28 }
 0x1be   :  { %v5852_v3 = vadd.f32 1e-14, %v2268_v6  ;;  %v5854_v11 = vadd.f32 1e-14, %v2269_v62  ;;  %v5856_v14 = vadd.f32 1e-14, %v2270_v15  ;;  %3982 = vrsqrt.f32 %v5838_v34 }
 0x1bf   :  { %v5858_v0 = vadd.f32 1e-14, %v2271_v29  ;;  %v5860_v51 = vadd.f32 1e-14, %v2272_v57  ;;  %v5862_v39 = vadd.f32 1e-14, %v2273_v2  ;;  %3984 = vrsqrt.f32 %v5840_v54 }
 0x1c0   :  { %v5864_v27 = vadd.f32 1e-14, %v2274_v55  ;;  %vm2293_vm15 = vcmp.eq.f32.partialorder %v5831_v35, inf  ;;  %vm2295_vm9 = vcmp.eq.f32.partialorder %v5831_v35, 0.0  ;;  %v2296_v46 = vand.u32 2147483648, %v5831_v35 }
 0x1c1   :  { %vm2300_vm11 = vcmp.eq.f32.partialorder %v5833_v61, inf  ;;  %vm2302_vm0 = vcmp.eq.f32.partialorder %v5833_v61, 0.0  ;;  %v2303_v47 = vand.u32 2147483648, %v5833_v61  ;;  %vm2307_vm8 = vcmp.eq.f32.partialorder %v5835_v23, inf }
 0x1c2   :  { %3986 = vrsqrt.f32 %v5843_v16  ;;  %vm2309_vm1 = vcmp.eq.f32.partialorder %v5835_v23, 0.0  ;;  %v2310_v30 = vand.u32 2147483648, %v5835_v23  ;;  %vm2314_vm4 = vcmp.eq.f32.partialorder %v5838_v34, inf }
 0x1c3   :  { %3988 = vrsqrt.f32 %v5845_v24  ;;  %vm2316_vm3 = vcmp.eq.f32.partialorder %v5838_v34, 0.0  ;;  %v2317_v21 = vand.u32 2147483648, %v5838_v34  ;;  %vm2321_vm5 = vcmp.eq.f32.partialorder %v5840_v54, inf }
 0x1c4   :  { %3990 = vrsqrt.f32 %v5847_v41  ;;  %vm2323_vm6 = vcmp.eq.f32.partialorder %v5840_v54, 0.0  ;;  %v2324_v32 = vand.u32 2147483648, %v5840_v54  ;;  %vm2328_vm12 = vcmp.eq.f32.partialorder %v5843_v16, inf }
 0x1c5   :  { %v3977_v50 = vpop.eup %3976  ;;  %v2331_v56 = vand.u32 2147483648, %v5843_v16  ;;  %3992 = vrsqrt.f32 %v5850_v59  ;;  %vm2335_vm13 = vcmp.eq.f32.partialorder %v5845_v24, inf  ;;  %v2338_v49 = vand.u32 2147483648, %v5845_v24 }
 0x1c6   :  { %v3979_v48 = vpop.eup %3978  ;;  %v2292_v33 = vmul.f32 %v3977_v50, %v5831_v35  ;;  %vm2337_vm2 = vcmp.eq.f32.partialorder %v5845_v24, 0.0  ;;  %v2345_v13 = vand.u32 2147483648, %v5847_v41  ;;  %3994 = vrsqrt.f32 %v5852_v3 }
 0x1c7   :  { %v3981_v58 = vpop.eup %3980  ;;  %v2299_v1 = vmul.f32 %v3979_v48, %v5833_v61  ;;  %vm2344_vm10 = vcmp.eq.f32.partialorder %v5847_v41, 0.0  ;;  %3996 = vrsqrt.f32 %v5854_v11  ;;  %v2352_v22 = vand.u32 2147483648, %v5850_v59 }
 0x1c8   :  { %v2294_v12 = vsel %vm2293_vm15, %v5831_v35, %v2292_v33  ;;  %v2306_v63 = vmul.f32 %v3981_v58, %v5835_v23  ;;  %vm2356_vm14 = vcmp.eq.f32.partialorder %v5852_v3, inf  ;;  %v2359_v4 = vand.u32 2147483648, %v5852_v3  ;;  %v3983_v43 = vpop.eup %3982 }
 0x1c9   :  { %v2301_v40 = vsel %vm2300_vm11, %v5833_v61, %v2299_v1  ;;  %v5914_v36 = vsel %vm2295_vm9, %v2296_v46, %v2294_v12  ;;  %vm2358_vm15 = vcmp.eq.f32.partialorder %v5852_v3, 0.0  ;;  %vm2363_vm7 = vcmp.eq.f32.partialorder %v5854_v11, inf  ;;  %v3985_v60 = vpop.eup %3984 }
 0x1ca   :  { %v2308_v38 = vsel %vm2307_vm8, %v5835_v23, %v2306_v63  ;;  %3998 = vrsqrt.f32 %v5856_v14  ;;  %v5924_v19 = vsel %vm2302_vm0, %v2303_v47, %v2301_v40  ;;  %v2313_v8 = vmul.f32 %v3983_v43, %v5838_v34 }
 0x1cb   :  { %vm2365_vm9 = vcmp.eq.f32.partialorder %v5854_v11, 0.0  ;;  %v2366_v53 = vand.u32 2147483648, %v5854_v11  ;;  %v5931_v42 = vsel %vm2309_vm1, %v2310_v30, %v2308_v38  ;;  %v2320_v17 = vmul.f32 %v3985_v60, %v5840_v54 }
 0x1cc   :  { %v3987_v25 = vpop.eup %3986  ;;  %vm2370_vm11 = vcmp.eq.f32.partialorder %v5856_v14, inf  ;;  %4000 = vrsqrt.f32 %v5858_v0  ;;  %v2315_v7 = vsel %vm2314_vm4, %v5838_v34, %v2313_v8  ;;  %vm2372_vm0 = vcmp.eq.f32.partialorder %v5856_v14, 0.0 }
 0x1cd   :  { %v3989_v9 = vpop.eup %3988  ;;  %v2327_v18 = vmul.f32 %v3987_v25, %v5843_v16  ;;  %v2373_v31 = vand.u32 2147483648, %v5856_v14  ;;  %v2322_v45 = vsel %vm2321_vm5, %v5840_v54, %v2320_v17  ;;  %vm2377_vm8 = vcmp.eq.f32.partialorder %v5858_v0, inf }
 0x1ce   :  { %v3991_v5 = vpop.eup %3990  ;;  %v2334_v44 = vmul.f32 %v3989_v9, %v5845_v24  ;;  %4002 = vrsqrt.f32 %v5860_v51  ;;  %v5950_v10 = vsel %vm2316_vm3, %v2317_v21, %v2315_v7  ;;  %vm2379_vm1 = vcmp.eq.f32.partialorder %v5858_v0, 0.0 }
 0x1cf   :  { %v3993_v20 = vpop.eup %3992  ;;  %v2329_v26 = vsel %vm2328_vm12, %v5843_v16, %v2327_v18  ;;  %v2341_v52 = vmul.f32 %v3991_v5, %v5847_v41  ;;  %v2380_v37 = vand.u32 2147483648, %v5858_v0  ;;  %v5960_v28 = vsel %vm2323_vm6, %v2324_v32, %v2322_v45 }
 0x1d0   :  { %v2336_v35 = vsel %vm2335_vm13, %v5845_v24, %v2334_v44  ;;  %v2348_v61 = vmul.f32 %v3993_v20, %v5850_v59  ;;  %vm2384_vm4 = vcmp.eq.f32.partialorder %v5860_v51, inf  ;;  %v3995_v6 = vpop.eup %3994  ;;  %vm7420_vm3 = vcmp.eq.f32.partialorder %v5843_v16, 0.0 }
 0x1d1   :  { %v5969_v62 = vsel %vm7420_vm3, %v2331_v56, %v2329_v26  ;;  %vm7421_vm5 = vcmp.eq.f32.partialorder %v5847_v41, inf  ;;  %vm2386_vm6 = vcmp.eq.f32.partialorder %v5860_v51, 0.0  ;;  %4004 = vrsqrt.f32 %v5862_v39  ;;  %v3997_v23 = vpop.eup %3996 }
 0x1d2   :  { %v2343_v15 = vsel %vm7421_vm5, %v5847_v41, %v2341_v52  ;;  %v5978_v29 = vsel %vm2337_vm2, %v2338_v49, %v2336_v35  ;;  %vm7422_vm12 = vcmp.eq.f32.partialorder %v5850_v59, inf  ;;  %v2355_v2 = vmul.f32 %v3995_v6, %v5852_v3 }
 0x1d3   :  { %v2350_v57 = vsel %vm7422_vm12, %v5850_v59, %v2348_v61  ;;  %v2387_v55 = vand.u32 2147483648, %v5860_v51  ;;  %v5987_v34 = vsel %vm2344_vm10, %v2345_v13, %v2343_v15  ;;  %vm7423_vm13 = vcmp.eq.f32.partialorder %v5850_v59, 0.0 }
 0x1d4   :  { %v5991_v54 = vsel %vm7423_vm13, %v2352_v22, %v2350_v57  ;;  %v2362_v16 = vmul.f32 %v3997_v23, %v5854_v11  ;;  %vm2391_vm2 = vcmp.eq.f32.partialorder %v5862_v39, inf  ;;  %v3999_v24 = vpop.eup %3998  ;;  %v2357_v46 = vsel %vm2356_vm14, %v5852_v3, %v2355_v2 }
 0x1d5   :  { %vm2393_vm3 = vcmp.eq.f32.partialorder %v5862_v39, 0.0  ;;  %v2394_v47 = vand.u32 2147483648, %v5862_v39  ;;  %4006 = vrsqrt.f32 %v5864_v27  ;;  %v6003_v41 = vsel %vm2358_vm15, %v2359_v4, %v2357_v46 }
 0x1d6   :  { %v2364_v59 = vsel %vm2363_vm7, %v5854_v11, %v2362_v16  ;;  %v2369_v30 = vmul.f32 %v3999_v24, %v5856_v14  ;;  %v2401_v21 = vand.u32 2147483648, %v5864_v27  ;;  %v4001_v50 = vpop.eup %4000  ;;  %vm2398_vm10 = vcmp.eq.f32.partialorder %v5864_v27, inf }
 0x1d7   :  { %v6012_v32 = vsel %vm2365_vm9, %v2366_v53, %v2364_v59  ;;  %vm7424_vm14 = vcmask 1043456   ;;  %v2376_v49 = vmul.f32 %v4001_v50, %v5858_v0  ;;  %vm2400_vm7 = vcmp.eq.f32.partialorder %v5864_v27, 0.0 }
 0x1d8   :  { %v2403_v3 = vsel %vm7424_vm14, %v5914_v36, 0.0  ;;  %vm7425_vm15 = vmmov %vm7424_vm14  ;;  %v2371_v33 = vsel %vm2370_vm11, %v5856_v14, %v2369_v30  ;;  %v4003_v1 = vpop.eup %4002 }
 0x1d9   :  { %v2410_v56 = vsel %vm7425_vm15, %v5924_v19, 0.0  ;;  %vm7426_vm5 = vmmov %vm7424_vm14  ;;  %v2404_v11 = vrot.slane %v2403_v3, 4  ;;  %v6028_v13 = vsel %vm2372_vm0, %v2373_v31, %v2371_v33  ;;  %v2378_v22 = vsel %vm2377_vm8, %v5858_v0, %v2376_v49 }
 0x1da   :  { %v2417_v48 = vsel %vm7426_vm5, %v5931_v42, 0.0  ;;  %v2411_v58 = vrot.slane %v2410_v56, 4  ;;  %vm7427_vm9 = vmmov %vm7426_vm5  ;;  %v2383_v4 = vmul.f32 %v4003_v1, %v5860_v51  ;;  %v6040_v14 = vsel %vm2379_vm1, %v2380_v37, %v2378_v22 }
 0x1db   :  { %v2418_v12 = vrot.slane %v2417_v48, 4  ;;  %v2424_v63 = vsel %vm7427_vm9, %v5950_v10, 0.0  ;;  %vm7428_vm12 = vmmov %vm7426_vm5  ;;  %v2405_v43 = vadd.f32 %v2404_v11, %v2403_v3  ;;  %v4005_v25 = vpop.eup %4004 }
 0x1dc   :  { %v2431_v40 = vsel %vm7428_vm12, %v5960_v28, 0.0  ;;  %v2412_v38 = vadd.f32 %v2411_v58, %v2410_v56  ;;  %v2425_v8 = vrot.slane %v2424_v63, 4  ;;  %v2385_v17 = vsel %vm2384_vm4, %v5860_v51, %v2383_v4  ;;  %vm7429_vm11 = vmmov %vm7426_vm5 }
 0x1dd   :  { %v2419_v60 = vadd.f32 %v2418_v12, %v2417_v48  ;;  %v2432_v53 = vrot.slane %v2431_v40, 4  ;;  %v2406_v9 = vrot.slane %v2405_v43, 2  ;;  %v2438_v18 = vsel %vm7429_vm11, %v5969_v62, 0.0  ;;  %vm7430_vm0 = vmmov %vm7426_vm5 }
 0x1de   :  { %v2413_v7 = vrot.slane %v2412_v38, 2  ;;  %v6049_v31 = vsel %vm2386_vm6, %v2387_v55, %v2385_v17  ;;  %v2390_v0 = vmul.f32 %v4005_v25, %v5862_v39  ;;  %v2426_v45 = vadd.f32 %v2425_v8, %v2424_v63  ;;  %vm7431_vm8 = vmmov %vm7430_vm0 }
 0x1df   :  { %v2420_v5 = vrot.slane %v2419_v60, 2  ;;  %v2407_v44 = vadd.f32 %v2406_v9, %v2405_v43  ;;  %v2433_v26 = vadd.f32 %v2432_v53, %v2431_v40  ;;  %v2439_v52 = vrot.slane %v2438_v18, 4  ;;  %v4007_v37 = vpop.eup %4006  ;;  %v7432_v43 = vld [vmem:[#allocation9_spill] sm:$0xff]  ;;  %vm7433_vm1 = vmmov %vm7430_vm0 }
 0x1e0   :  { %v2414_v20 = vadd.f32 %v2413_v7, %v2412_v38  ;;  %v2392_v35 = vsel %vm2391_vm2, %v5862_v39, %v2390_v0  ;;  %v2427_v6 = vrot.slane %v2426_v45, 2  ;;  %v2445_v51 = vsel %vm7430_vm0, %v5978_v29, 0.0  ;;  %vm7434_vm4 = vmmov %vm7430_vm0 }
 0x1e1   :  { %v2421_v61 = vadd.f32 %v2420_v5, %v2419_v60  ;;  %v6059_v15 = vsel %vm2393_vm3, %v2394_v47, %v2392_v35  ;;  %v2397_v23 = vmul.f32 %v4007_v37, %v5864_v27  ;;  %v2408_v57 = vrot.slane %v2407_v44, 1  ;;  %vm7435_vm6 = vmmov %vm7430_vm0 }
 0x1e2   :  { %v2415_v2 = vrot.slane %v2414_v20, 1  ;;  %v2428_v16 = vadd.f32 %v2427_v6, %v2426_v45  ;;  %v2434_v24 = vrot.slane %v2433_v26, 2  ;;  %v2440_v46 = vadd.f32 %v2439_v52, %v2438_v18  ;;  %vm7436_vm13 = vmmov %vm7430_vm0 }
 0x1e3   :  { %v2422_v55 = vrot.slane %v2421_v61, 1  ;;  %v2399_v59 = vsel %vm2398_vm10, %v5864_v27, %v2397_v23  ;;  %v2409_v30 = vadd.f32 %v2408_v57, %v2407_v44  ;;  %v2446_v3 = vrot.slane %v2445_v51, 4  ;;  %vm7437_vm2 = vmmov %vm7430_vm0 }
 0x1e4   :  { %v2416_v50 = vadd.f32 %v2415_v2, %v2414_v20  ;;  %v6067_v39 = vsel %vm2400_vm7, %v2401_v21, %v2399_v59  ;;  %v2429_v56 = vrot.slane %v2428_v16, 1  ;;  %v2435_v48 = vadd.f32 %v2434_v24, %v2433_v26  ;;  %vm7438_vm3 = vmmov %vm7430_vm0 }
 0x1e5   :  { %v2423_v47 = vadd.f32 %v2422_v55, %v2421_v61  ;;  %v2441_v33 = vrot.slane %v2440_v46, 2  ;;  %v2447_v49 = vadd.f32 %v2446_v3, %v2445_v51  ;;  %v2452_v11 = vsel %vm7431_vm8, %v5987_v34, 0.0  ;;  %vm7439_vm10 = vmmov %vm7430_vm0 }
 0x1e6   :  { %v2467_v58 = vcombine.low %v2409_v30, %v2416_v50  ;;  %v2430_v1 = vadd.f32 %v2429_v56, %v2428_v16  ;;  %v2436_v12 = vrot.slane %v2435_v48, 1  ;;  %v2453_v63 = vrot.slane %v2452_v11, 4  ;;  %vm7440_vm14 = vmmov %vm7430_vm0 }
 0x1e7   :  { %v2527_v40 = vrot.slane %v5914_v36, 4  ;;  %v2442_v22 = vadd.f32 %v2441_v33, %v2440_v46  ;;  %v2448_v4 = vrot.slane %v2447_v49, 2  ;;  %v2528_v21 = vrot.slane %v5924_v19, 4  ;;  %vm7441_vm15 = vmmov %vm7430_vm0 }
 0x1e8   :  { %v2477_v27 = vrot.slane %v2467_v58, %v7432_v43  ;;  %v2437_v38 = vadd.f32 %v2436_v12, %v2435_v48  ;;  %v2454_v60 = vadd.f32 %v2453_v63, %v2452_v11  ;;  %v2468_v8 = vcombine.low %v2423_v47, %v2430_v1  ;;  %vm7442_vm5 = vmmov %vm7430_vm0 }
 0x1e9   :  { %v2529_v53 = vrot.slane %v5931_v42, 4  ;;  %v2443_v25 = vrot.slane %v2442_v22, 1  ;;  %v2449_v17 = vadd.f32 %v2448_v4, %v2447_v49  ;;  %v2530_v9 = vrot.slane %v5950_v10, 4  ;;  %vm7443_vm7 = vmmov %vm7430_vm0 }
 0x1ea   :  { %v2531_v7 = vrot.slane %v5960_v28, 4  ;;  %v2455_v18 = vrot.slane %v2454_v60, 2  ;;  %v2484_v36 = vrot.slane %v2468_v8, %v7432_v43  ;;  %v2532_v0 = vrot.slane %v5969_v62, 4  ;;  %vm7444_vm9 = vmmov %vm7430_vm0 }
 0x1eb   :  { %v2533_v5 = vrot.slane %v5978_v29, 4  ;;  %v2444_v45 = vadd.f32 %v2443_v25, %v2442_v22  ;;  %v2450_v19 = vrot.slane %v2449_v17, 1  ;;  %v2534_v44 = vrot.slane %v5987_v34, 4  ;;  %vm7445_vm12 = vmmov %vm7430_vm0 }
 0x1ec   :  { %v2543_v20 = vsel %vm7433_vm1, %v2527_v40, 0.0  ;;  %v2456_v42 = vadd.f32 %v2455_v18, %v2454_v60  ;;  %v2499_v26 = vcombine.low %v2477_v27, %v2484_v36  ;;  %v2550_v10 = vsel %vm7434_vm4, %v2528_v21, 0.0  ;;  %vm7446_vm11 = vmmov %vm7430_vm0 }
 0x1ed   :  { %v2544_v52 = vrot.slane %v2543_v20, 4  ;;  %v2451_v37 = vadd.f32 %v2450_v19, %v2449_v17  ;;  %v2469_v28 = vcombine.low %v2437_v38, %v2444_v45  ;;  %v2551_v35 = vrot.slane %v2550_v10, 4  ;;  %vm7447_vm8 = vmmov %vm7430_vm0 }
 0x1ee   :  { %v2557_v61 = vsel %vm7435_vm6, %v2529_v53, 0.0  ;;  %v2457_v6 = vrot.slane %v2456_v42, 1  ;;  %v2507_v62 = vrot.slane %v2499_v26, %v7432_v43  ;;  %v2564_v57 = vsel %vm7436_vm13, %v2530_v9, 0.0  ;;  %vm7448_vm1 = vmmov %vm7430_vm0 }
 0x1ef   :  { %v2545_v29 = vadd.f32 %v2544_v52, %v2543_v20  ;;  %v2558_v51 = vrot.slane %v2557_v61, 4  ;;  %v2491_v23 = vrot.slane %v2469_v28, %v7432_v43  ;;  %v2552_v34 = vadd.f32 %v2551_v35, %v2550_v10  ;;  %vm7449_vm4 = vmmov %vm7430_vm0 }
 0x1f0   :  { %v2571_v2 = vsel %vm7437_vm2, %v2531_v7, 0.0  ;;  %v2458_v55 = vadd.f32 %v2457_v6, %v2456_v42  ;;  %v2565_v46 = vrot.slane %v2564_v57, 4  ;;  %v2578_v50 = vsel %vm7438_vm3, %v2532_v0, 0.0  ;;  %vm7450_vm6 = vmmov %vm7430_vm0 }
 0x1f1   :  { %v2546_v16 = vrot.slane %v2545_v29, 2  ;;  %v2559_v24 = vadd.f32 %v2558_v51, %v2557_v61  ;;  %v2553_v59 = vrot.slane %v2552_v34, 2  ;;  %v2572_v30 = vrot.slane %v2571_v2, 4  ;;  %vm7451_vm13 = vmmov %vm7430_vm0 }
 0x1f2   :  { %v2585_v3 = vsel %vm7439_vm10, %v2533_v5, 0.0  ;;  %v2470_v47 = vcombine.low %v2451_v37, %v2458_v55  ;;  %v2566_v33 = vadd.f32 %v2565_v46, %v2564_v57  ;;  %v2579_v58 = vrot.slane %v2578_v50, 4  ;;  %vm7452_vm2 = vmmov %vm7430_vm0 }
 0x1f3   :  { %v2547_v56 = vadd.f32 %v2546_v16, %v2545_v29  ;;  %v2560_v48 = vrot.slane %v2559_v24, 2  ;;  %v2554_v49 = vadd.f32 %v2553_v59, %v2552_v34  ;;  %v2573_v11 = vadd.f32 %v2572_v30, %v2571_v2  ;;  %vm7453_vm3 = vmmov %vm7430_vm0 }
 0x1f4   :  { %v2586_v1 = vrot.slane %v2585_v3, 4  ;;  %v2498_v12 = vrot.slane %v2470_v47, %v7432_v43  ;;  %v2567_v22 = vrot.slane %v2566_v33, 2  ;;  %v2580_v21 = vadd.f32 %v2579_v58, %v2578_v50  ;;  %vm7454_vm10 = vmmov %vm7430_vm0 }
 0x1f5   :  { %v2548_v63 = vrot.slane %v2547_v56, 1  ;;  %v2561_v40 = vadd.f32 %v2560_v48, %v2559_v24  ;;  %v2555_v4 = vrot.slane %v2554_v49, 1  ;;  %v2574_v27 = vrot.slane %v2573_v11, 2 }
 0x1f6   :  { %v2587_v38 = vadd.f32 %v2586_v1, %v2585_v3  ;;  %v2500_v60 = vcombine.low %v2491_v23, %v2498_v12  ;;  %v2568_v25 = vadd.f32 %v2567_v22, %v2566_v33  ;;  %v2581_v7 = vrot.slane %v2580_v21, 2 }
 0x1f7   :  { %v2549_v8 = vadd.f32 %v2548_v63, %v2547_v56  ;;  %v2562_v53 = vrot.slane %v2561_v40, 1  ;;  %v2556_v17 = vadd.f32 %v2555_v4, %v2554_v49  ;;  %v2575_v9 = vadd.f32 %v2574_v27, %v2573_v11 }
 0x1f8   :  { %v2588_v18 = vrot.slane %v2587_v38, 2  ;;  %v2514_v36 = vrot.slane %v2500_v60, %v7432_v43  ;;  %v2569_v5 = vrot.slane %v2568_v25, 1  ;;  %v2592_v45 = vsel %vm7440_vm14, %v2534_v44, 0.0  ;;  %vm7455_vm14 = vmmov %vm7430_vm0 }
 0x1f9   :  { %v2563_v0 = vadd.f32 %v2562_v53, %v2561_v40  ;;  %v2576_v19 = vrot.slane %v2575_v9, 1  ;;  %v2582_v20 = vadd.f32 %v2581_v7, %v2580_v21  ;;  %v2593_v26 = vrot.slane %v2592_v45, 4 }
 0x1fa   :  { %v2589_v42 = vadd.f32 %v2588_v18, %v2587_v38  ;;  %v2515_v52 = vcombine.low %v2507_v62, %v2514_v36  ;;  %v2570_v10 = vadd.f32 %v2569_v5, %v2568_v25  ;;  %v2607_v37 = vcombine.low %v2549_v8, %v2556_v17 }
 0x1fb   :  { %v2659_v28 = vsel %vm7441_vm15, %v5991_v54, 0.0  ;;  %v2577_v35 = vadd.f32 %v2576_v19, %v2575_v9  ;;  %v2583_v61 = vrot.slane %v2582_v20, 1  ;;  %v2594_v29 = vadd.f32 %v2593_v26, %v2592_v45 }
 0x1fc   :  { %v2590_v6 = vrot.slane %v2589_v42, 1  ;;  %2518 = vst [vmem:[#allocation5 + $0x40] ss:$4 sm:$0xff] %v2515_v52  ;;  %v2608_v51 = vcombine.low %v2563_v0, %v2570_v10  ;;  %v2617_v23 = vrot.slane %v2607_v37, %v7432_v43  ;;  %v2660_v34 = vrot.slane %v2659_v28, 4 }
 0x1fd   :  { %v2666_v44 = vsel %vm7442_vm5, %v6003_v41, 0.0  ;;  %v2584_v57 = vadd.f32 %v2583_v61, %v2582_v20  ;;  %v2595_v62 = vrot.slane %v2594_v29, 2  ;;  %v2673_v46 = vsel %vm7443_vm7, %v6012_v32, 0.0 }
 0x1fe   :  { %v2591_v2 = vadd.f32 %v2590_v6, %v2589_v42  ;;  %v2667_v55 = vrot.slane %v2666_v44, 4  ;;  %v2624_v16 = vrot.slane %v2608_v51, %v7432_v43  ;;  %v2661_v24 = vadd.f32 %v2660_v34, %v2659_v28 }
 0x1ff   :  { %v2680_v59 = vsel %vm7444_vm9, %v6028_v13, 0.0  ;;  %v2596_v30 = vadd.f32 %v2595_v62, %v2594_v29  ;;  %v2609_v50 = vcombine.low %v2577_v35, %v2584_v57  ;;  %v2674_v47 = vrot.slane %v2673_v46, 4 }
 0x200   :  { %v2668_v3 = vadd.f32 %v2667_v55, %v2666_v44  ;;  %v2639_v56 = vcombine.low %v2617_v23, %v2624_v16  ;;  %v2662_v48 = vrot.slane %v2661_v24, 2  ;;  %v2681_v33 = vrot.slane %v2680_v59, 4 }
 0x201   :  { %v2687_v49 = vsel %vm7445_vm12, %v6040_v14, 0.0  ;;  %v2597_v11 = vrot.slane %v2596_v30, 1  ;;  %v2631_v58 = vrot.slane %v2609_v50, %v7432_v43  ;;  %v2675_v12 = vadd.f32 %v2674_v47, %v2673_v46 }
 0x202   :  { %v2669_v1 = vrot.slane %v2668_v3, 2  ;;  %v2647_v63 = vrot.slane %v2639_v56, %v7432_v43  ;;  %v2663_v40 = vadd.f32 %v2662_v48, %v2661_v24  ;;  %v2682_v22 = vadd.f32 %v2681_v33, %v2680_v59 }
 0x203   :  { %v2688_v4 = vrot.slane %v2687_v49, 4  ;;  %v2598_v27 = vadd.f32 %v2597_v11, %v2596_v30  ;;  %v2676_v38 = vrot.slane %v2675_v12, 2  ;;  %v2694_v60 = vsel %vm7446_vm11, %v6049_v31, 0.0 }
 0x204   :  { %v2670_v21 = vadd.f32 %v2669_v1, %v2668_v3  ;;  %v2664_v8 = vrot.slane %v2663_v40, 1  ;;  %v2683_v53 = vrot.slane %v2682_v22, 2  ;;  %v2695_v17 = vrot.slane %v2694_v60, 4 }
 0x205   :  { %v2689_v25 = vadd.f32 %v2688_v4, %v2687_v49  ;;  %v2610_v9 = vcombine.low %v2591_v2, %v2598_v27  ;;  %v2677_v18 = vadd.f32 %v2676_v38, %v2675_v12  ;;  %v2701_v36 = vsel %vm7430_vm0, %v6059_v15, 0.0 }
 0x206   :  { %v2671_v7 = vrot.slane %v2670_v21, 1  ;;  %v2665_v0 = vadd.f32 %v2664_v8, %v2663_v40  ;;  %v2684_v5 = vadd.f32 %v2683_v53, %v2682_v22  ;;  %v2696_v19 = vadd.f32 %v2695_v17, %v2694_v60 }
 0x207   :  { %v2690_v45 = vrot.slane %v2689_v25, 2  ;;  %v2638_v20 = vrot.slane %v2610_v9, %v7432_v43  ;;  %v2678_v26 = vrot.slane %v2677_v18, 1  ;;  %v2702_v52 = vrot.slane %v2701_v36, 4 }
 0x208   :  { %v2672_v42 = vadd.f32 %v2671_v7, %v2670_v21  ;;  %v2685_v10 = vrot.slane %v2684_v5, 1  ;;  %v2697_v28 = vrot.slane %v2696_v19, 2  ;;  %v2708_v35 = vsel %vm7447_vm8, %v6067_v39, 0.0 }
 0x209   :  { %v2691_v37 = vadd.f32 %v2690_v45, %v2689_v25  ;;  %v2640_v61 = vcombine.low %v2631_v58, %v2638_v20  ;;  %v2679_v6 = vadd.f32 %v2678_v26, %v2677_v18  ;;  %v2703_v29 = vadd.f32 %v2702_v52, %v2701_v36 }
 0x20a   :  { %v2709_v51 = vrot.slane %v2708_v35, 4  ;;  %v2686_v23 = vadd.f32 %v2685_v10, %v2684_v5  ;;  %v2698_v44 = vadd.f32 %v2697_v28, %v2696_v19  ;;  %v2723_v57 = vcombine.low %v2665_v0, %v2672_v42 }
 0x20b   :  { %v2692_v34 = vrot.slane %v2691_v37, 1  ;;  %v2654_v2 = vrot.slane %v2640_v61, %v7432_v43  ;;  %v2704_v62 = vrot.slane %v2703_v29, 2  ;;  %v2783_v16 = vrot.slane %v5991_v54, 4 }
 0x20c   :  { %v2710_v55 = vadd.f32 %v2709_v51, %v2708_v35  ;;  %v2699_v46 = vrot.slane %v2698_v44, 1  ;;  %v2724_v59 = vcombine.low %v2679_v6, %v2686_v23  ;;  %v2733_v30 = vrot.slane %v2723_v57, %v7432_v43 }
 0x20d   :  { %v2693_v24 = vadd.f32 %v2692_v34, %v2691_v37  ;;  %v2655_v50 = vcombine.low %v2647_v63, %v2654_v2  ;;  %v2705_v3 = vadd.f32 %v2704_v62, %v2703_v29  ;;  %v2784_v56 = vrot.slane %v6003_v41, 4 }
 0x20e   :  { %v2711_v47 = vrot.slane %v2710_v55, 2  ;;  %v2700_v48 = vadd.f32 %v2699_v46, %v2698_v44  ;;  %v2740_v33 = vrot.slane %v2724_v59, %v7432_v43  ;;  %v2785_v49 = vrot.slane %v6012_v32, 4 }
 0x20f   :  { %v2786_v11 = vrot.slane %v6028_v13, 4  ;;  %2658 = vst [vmem:[#allocation5 + $0x41] ss:$4 sm:$0xff] %v2655_v50  ;;  %v2706_v58 = vrot.slane %v2705_v3, 1  ;;  %v2787_v1 = vrot.slane %v6040_v14, 4  ;;  %v2788_v12 = vrot.slane %v6049_v31, 4 }
 0x210   :  { %v2712_v54 = vadd.f32 %v2711_v47, %v2710_v55  ;;  %v2725_v40 = vcombine.low %v2693_v24, %v2700_v48  ;;  %v2755_v63 = vcombine.low %v2733_v30, %v2740_v33  ;;  %v2789_v22 = vrot.slane %v6059_v15, 4 }
 0x211   :  { %v2790_v41 = vrot.slane %v6067_v39, 4  ;;  %v2707_v4 = vadd.f32 %v2706_v58, %v2705_v3  ;;  %v2799_v21 = vsel %vm7448_vm1, %v2783_v16, 0.0  ;;  %v2806_v32 = vsel %vm7449_vm4, %v2784_v56, 0.0 }
 0x212   :  { %v2713_v27 = vrot.slane %v2712_v54, 1  ;;  %v2747_v13 = vrot.slane %v2725_v40, %v7432_v43  ;;  %v2763_v38 = vrot.slane %v2755_v63, %v7432_v43  ;;  %v2800_v60 = vrot.slane %v2799_v21, 4 }
 0x213   :  { %v2807_v14 = vrot.slane %v2806_v32, 4  ;;  %v2813_v31 = vsel %vm7450_vm6, %v2785_v49, 0.0  ;;  %v2820_v53 = vsel %vm7451_vm13, %v2786_v11, 0.0  ;;  %v2827_v15 = vsel %vm7452_vm2, %v2787_v1, 0.0  ;;  %v6139_v1 = vld [vmem:[#allocation2 + $0x608] sm:$0xff] }
 0x214   :  { %v2714_v8 = vadd.f32 %v2713_v27, %v2712_v54  ;;  %v2801_v39 = vadd.f32 %v2800_v60, %v2799_v21  ;;  %v2814_v17 = vrot.slane %v2813_v31, 4  ;;  %v2821_v9 = vrot.slane %v2820_v53, 4  ;;  %v6137_v54 = vld [vmem:[#allocation2 + $0x600] sm:$0xff] }
 0x215   :  { %v2808_v25 = vadd.f32 %v2807_v14, %v2806_v32  ;;  %v2828_v18 = vrot.slane %v2827_v15, 4  ;;  %v2834_v36 = vsel %vm7453_vm3, %v2788_v12, 0.0  ;;  %v2841_v0 = vsel %vm7454_vm10, %v2789_v22, 0.0  ;;  %v6141_v12 = vld [vmem:[#allocation2 + $0x610] sm:$0xff]  ;;  %v6147_v27 = vld [vmem:[#allocation2 + $0x620] sm:$0xff]  ;;  %v6151_v32 = vld [vmem:[#allocation2 + $0x688] sm:$0xff] }
 0x216   :  { %v2726_v7 = vcombine.low %v2707_v4, %v2714_v8  ;;  %v2802_v5 = vrot.slane %v2801_v39, 2  ;;  %v2815_v19 = vadd.f32 %v2814_v17, %v2813_v31  ;;  %v2822_v20 = vadd.f32 %v2821_v9, %v2820_v53  ;;  %v6145_v4 = vld [vmem:[#allocation2 + $0x618] sm:$0xff]  ;;  %v6149_v21 = vld [vmem:[#allocation2 + $0x680] sm:$0xff]  ;;  %7456 = vst [vmem:[#allocation10_spill] sm:$0xff] %v6151_v32  ;;  %v6156_v14 = vld [vmem:[#allocation2 + $0x628] sm:$0xff] }
 0x217   :  { %v2809_v45 = vrot.slane %v2808_v25, 2  ;;  %v2829_v26 = vadd.f32 %v2828_v18, %v2827_v15  ;;  %v2835_v52 = vrot.slane %v2834_v36, 4  ;;  %v2842_v10 = vrot.slane %v2841_v0, 4  ;;  %v6158_v8 = vld [vmem:[#allocation2 + $0x630] sm:$0xff]  ;;  %v6160_v31 = vld [vmem:[#allocation2 + $0x638] sm:$0xff]  ;;  %v6164_v15 = vld [vmem:[#allocation2 + $0x6a0] sm:$0xff] }
 0x218   :  { %v2754_v42 = vrot.slane %v2726_v7, %v7432_v43  ;;  %v2803_v37 = vadd.f32 %v2802_v5, %v2801_v39  ;;  %v2816_v35 = vrot.slane %v2815_v19, 2  ;;  %v2823_v61 = vrot.slane %v2822_v20, 2  ;;  %v6162_v53 = vld [vmem:[#allocation2 + $0x698] sm:$0xff]  ;;  %7459 = vst [vmem:[#allocation13_spill] sm:$0xff] %v6164_v15  ;;  %v6166_v39 = vld [vmem:[#allocation2 + $0x6a8] sm:$0xff]  ;;  %v6168_v9 = vld [vmem:[#allocation2 + $0x640] sm:$0xff] }
 0x219   :  { %v2810_v28 = vadd.f32 %v2809_v45, %v2808_v25  ;;  %v2830_v29 = vrot.slane %v2829_v26, 2  ;;  %v2836_v51 = vadd.f32 %v2835_v52, %v2834_v36  ;;  %v2843_v23 = vadd.f32 %v2842_v10, %v2841_v0  ;;  %7458 = vst [vmem:[#allocation12_spill] sm:$0xff] %v6162_v53  ;;  %7460 = vst [vmem:[#allocation14_spill] sm:$0xff] %v6166_v39  ;;  %v6170_v7 = vld [vmem:[#allocation2 + $0x648] sm:$0xff]  ;;  %v6172_v18 = vld [vmem:[#allocation2 + $0x650] sm:$0xff] }
 0x21a   :  { %v2756_v6 = vcombine.low %v2747_v13, %v2754_v42  ;;  %v2804_v34 = vrot.slane %v2803_v37, 1  ;;  %v2817_v57 = vadd.f32 %v2816_v35, %v2815_v19  ;;  %v2824_v2 = vadd.f32 %v2823_v61, %v2822_v20  ;;  %v6174_v36 = vld [vmem:[#allocation2 + $0x658] sm:$0xff]  ;;  %v6176_v0 = vld [vmem:[#allocation2 + $0x6b0] sm:$0xff]  ;;  %v6180_v45 = vld [vmem:[#allocation2 + $0x6c0] sm:$0xff] }
 0x21b   :  { %v2811_v44 = vrot.slane %v2810_v28, 1  ;;  %v2831_v55 = vadd.f32 %v2830_v29, %v2829_v26  ;;  %v2837_v16 = vrot.slane %v2836_v51, 2  ;;  %v2844_v24 = vrot.slane %v2843_v23, 2  ;;  %7461 = vst [vmem:[#allocation15_spill] sm:$0xff] %v6176_v0  ;;  %v6178_v5 = vld [vmem:[#allocation2 + $0x6b8] sm:$0xff]  ;;  %7463 = vst [vmem:[#allocation17_spill] sm:$0xff] %v6180_v45 }
 0x21c   :  { %v2770_v62 = vrot.slane %v2756_v6, %v7432_v43  ;;  %v2805_v46 = vadd.f32 %v2804_v34, %v2803_v37  ;;  %v2818_v30 = vrot.slane %v2817_v57, 1  ;;  %v2825_v50 = vrot.slane %v2824_v2, 1  ;;  %7462 = vst [vmem:[#allocation16_spill] sm:$0xff] %v6178_v5  ;;  %v6183_v20 = vld [vmem:[#allocation2 + $0x660] sm:$0xff]  ;;  %v6185_v42 = vld [vmem:[#allocation2 + $0x668] sm:$0xff]  ;;  %v6189_v52 = vld [vmem:[#allocation2 + $0x6d0] sm:$0xff] }
 0x21d   :  { %v2812_v59 = vadd.f32 %v2811_v44, %v2810_v28  ;;  %v2832_v47 = vrot.slane %v2831_v55, 1  ;;  %v2838_v56 = vadd.f32 %v2837_v16, %v2836_v51  ;;  %v2845_v48 = vadd.f32 %v2844_v24, %v2843_v23  ;;  %v6187_v26 = vld [vmem:[#allocation2 + $0x6c8] sm:$0xff]  ;;  %7465 = vst [vmem:[#allocation19_spill] sm:$0xff] %v6189_v52  ;;  %v6191_v10 = vld [vmem:[#allocation2 + $0x6d8] sm:$0xff]  ;;  %v6196_v61 = vld [vmem:[#allocation2 + $0x670] sm:$0xff] }
 0x21e   :  { %v2771_v3 = vcombine.low %v2763_v38, %v2770_v62  ;;  %v2819_v33 = vadd.f32 %v2818_v30, %v2817_v57  ;;  %v2826_v49 = vadd.f32 %v2825_v50, %v2824_v2  ;;  %v2848_v11 = vsel %vm7455_vm14, %v2790_v41, 0.0  ;;  %v6153_v41 = vld [vmem:[#allocation2 + $0x690] sm:$0xff]  ;;  %7464 = vst [vmem:[#allocation18_spill] sm:$0xff] %v6187_v26  ;;  %7466 = vst [vmem:[#allocation21_spill] sm:$0xff] %v6191_v10  ;;  %v6198_v6 = vld [vmem:[#allocation2 + $0x678] sm:$0xff] }
 0x21f   :  { %v2863_v58 = vcombine.low %v2805_v46, %v2812_v59  ;;  %v6143_v40 = vadd.f32 %v2832_v47, %v2831_v55  ;;  %v2839_v63 = vrot.slane %v2838_v56, 1  ;;  %v2849_v22 = vrot.slane %v2848_v11, 4  ;;  %7457 = vst [vmem:[#allocation11_spill] sm:$0xff] %v6153_v41  ;;  %v6200_v29 = vld [vmem:[#allocation2 + $0x6e0] sm:$0xff]  ;;  %v6202_v51 = vld [vmem:[#allocation2 + $0x6e8] sm:$0xff]  ;;  %v6204_v23 = vld [vmem:[#allocation2 + $0x6f0] sm:$0xff] }
 0x220   :  { %2774 = vst [vmem:[#allocation5 + $0x42] ss:$4 sm:$0xff] %v2771_v3  ;;  %v2846_v13 = vrot.slane %v2845_v48, 1  ;;  %v2864_v38 = vcombine.low %v2819_v33, %v2826_v49  ;;  %v2949_v37 = vadd.f32 %v6149_v21, %v6137_v54  ;;  %7467 = vst [vmem:[#allocation22_spill] sm:$0xff] %v6200_v29  ;;  %v2950_v34 = vadd.f32 %v6151_v32, %v6139_v1  ;;  %v6212_v62 = vld [vmem:[#allocation2 + $0x6f8] sm:$0xff]  ;;  %v6218_v24 = vld [vmem:[#allocation2 + $0x700] sm:$0xff] }
 0x221   :  { %v2873_v60 = vrot.slane %v2863_v58, %v7432_v43  ;;  %v2840_v25 = vadd.f32 %v2839_v63, %v2838_v56  ;;  %v2850_v17 = vadd.f32 %v2849_v22, %v2848_v11  ;;  %7468 = vst [vmem:[#allocation23_spill] sm:$0xff] %v6202_v51  ;;  %7469 = vst [vmem:[#allocation24_spill] sm:$0xff] %v6204_v23  ;;  %v6220_v46 = vld [vmem:[#allocation2 + $0x708] sm:$0xff]  ;;  %v6228_v47 = vld [vmem:[#allocation2 + $0x710] sm:$0xff] }
 0x222   :  { %v2880_v19 = vrot.slane %v2864_v38, %v7432_v43  ;;  %v2951_v44 = vadd.f32 %v6153_v41, %v6141_v12  ;;  %v6210_v57 = vadd.f32 %v2846_v13, %v2845_v48  ;;  %7470 = vst [vmem:[#allocation49_spill] sm:$0xff] %v6212_v62  ;;  %v2952_v55 = vadd.f32 %v6162_v53, %v6145_v4  ;;  %v6230_v56 = vld [vmem:[#allocation2 + $0x718] sm:$0xff]  ;;  %v6232_v48 = vld [vmem:[#allocation2 + $0x720] sm:$0xff]  ;;  %v6244_v63 = vld [vmem:[#allocation2 + $0x730] sm:$0xff] }
 0x223   :  { %v2851_v28 = vrot.slane %v2850_v17, 2  ;;  %v2865_v35 = vcombine.low %v6143_v40, %v2840_v25  ;;  %v2953_v16 = vadd.f32 %v6164_v15, %v6147_v27  ;;  %7471 = vst [vmem:[#allocation25_spill] sm:$0xff] %v6218_v24  ;;  %v2954_v30 = vadd.f32 %v6166_v39, %v6156_v14  ;;  %7472 = vst [vmem:[#allocation50_spill] sm:$0xff] %v6232_v48  ;;  %v6242_v40 = vld [vmem:[#allocation2 + $0x728] sm:$0xff]  ;;  %v6246_v22 = vld [vmem:[#allocation2 + $0x738] sm:$0xff] }
 0x224   :  { %v2895_v2 = vcombine.low %v2873_v60, %v2880_v19  ;;  %v2955_v50 = vadd.f32 %v6176_v0, %v6158_v8  ;;  %v2956_v3 = vadd.f32 %v6178_v5, %v6160_v31  ;;  %v2957_v33 = vadd.f32 %v6180_v45, %v6168_v9  ;;  %7473 = vst [vmem:[#allocation26_spill] sm:$0xff] %v6242_v40  ;;  %v6257_v19 = vld [vmem:[#allocation2 + $0x748] sm:$0xff]  ;;  %v6275_v0 = vld [vmem:[#allocation2 + $0x770] sm:$0xff]  ;;  %v6277_v39 = vld [vmem:[#allocation2 + $0x778] sm:$0xff] }
 0x225   :  { %v2852_v59 = vadd.f32 %v2851_v28, %v2850_v17  ;;  %v2958_v49 = vadd.f32 %v6187_v26, %v6170_v7  ;;  %v2959_v11 = vadd.f32 %v6189_v52, %v6172_v18  ;;  %v2960_v58 = vadd.f32 %v6191_v10, %v6174_v36  ;;  %7474 = vst [vmem:[#allocation51_spill] sm:$0xff] %v6244_v63  ;;  %v6255_v17 = vld [vmem:[#allocation2 + $0x740] sm:$0xff]  ;;  %v6259_v28 = vld [vmem:[#allocation2 + $0x750] sm:$0xff]  ;;  %v6268_v26 = vld [vmem:[#allocation2 + $0x758] sm:$0xff] }
 0x226   :  { %7475 = vst [vmem:[#allocation27_spill] sm:$0xff] %v6246_v22  ;;  %v6249_v38 = vrot.slane %v2865_v35, %v7432_v43  ;;  %v2961_v60 = vadd.f32 %v6200_v29, %v6183_v20  ;;  %v2962_v25 = vadd.f32 %v6202_v51, %v6185_v42  ;;  %7476 = vst [vmem:[#allocation57_spill] sm:$0xff] %v6255_v17  ;;  %v6270_v29 = vld [vmem:[#allocation2 + $0x760] sm:$0xff]  ;;  %v6272_v51 = vld [vmem:[#allocation2 + $0x768] sm:$0xff] }
 0x227   :  { %v2853_v13 = vrot.slane %v2852_v59, 1  ;;  %7477 = vst [vmem:[#allocation48_spill] sm:$0xff] %v6257_v19  ;;  %7478 = vst [vmem:[#allocation54_spill] sm:$0xff] %v6259_v28  ;;  %v6262_v10 = vrot.slane %v2895_v2, %v7432_v43  ;;  %v2963_v52 = vadd.f32 %v6204_v23, %v6196_v61  ;;  %v2964_v35 = vadd.f32 %v6212_v62, %v6198_v6  ;;  %v6282_v62 = vld [vmem:[#allocation2 + $0x780] sm:$0xff] }
 0x228   :  { %7479 = vst [vmem:[#allocation28_spill] sm:$0xff] %v6268_v26  ;;  %7480 = vst [vmem:[#allocation58_spill] sm:$0xff] %v6270_v29  ;;  %v2982_v45 = vadd.f32 %v6218_v24, %v2949_v37  ;;  %v2983_v2 = vadd.f32 %v6220_v46, %v2950_v34  ;;  %v2984_v23 = vadd.f32 %v6228_v47, %v2951_v44  ;;  %v6292_v24 = vld [vmem:[#allocation2 + $0x798] sm:$0xff] }
 0x229   :  { %7481 = vst [vmem:[#allocation20_spill] sm:$0xff] %v6272_v51  ;;  %v2854_v5 = vadd.f32 %v2853_v13, %v2852_v59  ;;  %7482 = vst [vmem:[#allocation29_spill] sm:$0xff] %v6275_v0  ;;  %v2985_v15 = vadd.f32 %v6230_v56, %v2952_v55  ;;  %v2986_v53 = vadd.f32 %v6232_v48, %v2953_v16  ;;  %v6288_v59 = vld [vmem:[#allocation2 + $0x788] sm:$0xff]  ;;  %v6290_v13 = vld [vmem:[#allocation2 + $0x790] sm:$0xff] }
 0x22a   :  { %7483 = vst [vmem:[#allocation8_spill] sm:$0xff] %v6277_v39  ;;  %7484 = vst [vmem:[#allocation30_spill] sm:$0xff] %v6282_v62  ;;  %v2987_v41 = vadd.f32 %v6242_v40, %v2954_v30  ;;  %v2988_v32 = vadd.f32 %v6244_v63, %v2955_v50  ;;  %v2989_v37 = vadd.f32 %v6246_v22, %v2956_v3  ;;  %v6298_v48 = vld [vmem:[#allocation2 + $0x7a0] sm:$0xff]  ;;  %v6300_v30 = vld [vmem:[#allocation2 + $0x7a8] sm:$0xff] }
 0x22b   :  { %7485 = vst [vmem:[#allocation31_spill] sm:$0xff] %v6288_v59  ;;  %7486 = vst [vmem:[#allocation32_spill] sm:$0xff] %v6290_v13  ;;  %v2866_v34 = vcombine.low %v6210_v57, %v2854_v5  ;;  %v2990_v44 = vadd.f32 %v6255_v17, %v2957_v33  ;;  %v2991_v55 = vadd.f32 %v6257_v19, %v2958_v49  ;;  %v6302_v50 = vld [vmem:[#allocation2 + $0x7b0] sm:$0xff]  ;;  %v6308_v57 = vld [vmem:[#allocation2 + $0x7b8] sm:$0xff] }
 0x22c   :  { %7487 = vst [vmem:[#allocation33_spill] sm:$0xff] %v6292_v24  ;;  %v2992_v16 = vadd.f32 %v6259_v28, %v2959_v11  ;;  %7488 = vst [vmem:[#allocation34_spill] sm:$0xff] %v6298_v48  ;;  %v2993_v3 = vadd.f32 %v6268_v26, %v2960_v58  ;;  %v2994_v22 = vadd.f32 %v6270_v29, %v2961_v60  ;;  %v6310_v33 = vld [vmem:[#allocation2 + $0x7c0] sm:$0xff]  ;;  %v6312_v49 = vld [vmem:[#allocation2 + $0x7c8] sm:$0xff] }
 0x22d   :  { %7489 = vst [vmem:[#allocation35_spill] sm:$0xff] %v6300_v30  ;;  %7490 = vst [vmem:[#allocation36_spill] sm:$0xff] %v6302_v50  ;;  %v2995_v63 = vadd.f32 %v6272_v51, %v2962_v25  ;;  %v2996_v5 = vadd.f32 %v6275_v0, %v2963_v52  ;;  %v2894_v11 = vrot.slane %v2866_v34, %v7432_v43  ;;  %v6316_v19 = vld [vmem:[#allocation2 + $0x7d0] sm:$0xff]  ;;  %v6318_v17 = vld [vmem:[#allocation2 + $0x7d8] sm:$0xff] }
 0x22e   :  { %7491 = vst [vmem:[#allocation37_spill] sm:$0xff] %v6308_v57  ;;  %7492 = vst [vmem:[#allocation38_spill] sm:$0xff] %v6310_v33  ;;  %v2997_v28 = vadd.f32 %v6277_v39, %v2964_v35  ;;  %v6320_v58 = vld [vmem:[#allocation2 + $0x7e0] sm:$0xff]  ;;  %v3015_v60 = vadd.f32 %v6282_v62, %v2982_v45  ;;  %v3016_v52 = vadd.f32 %v6288_v59, %v2983_v2  ;;  %v6324_v25 = vld [vmem:[#allocation2 + $0x7e8] sm:$0xff] }
 0x22f   :  { %7493 = vst [vmem:[#allocation39_spill] sm:$0xff] %v6312_v49  ;;  %7494 = vst [vmem:[#allocation40_spill] sm:$0xff] %v6316_v19  ;;  %v6326_v0 = vld [vmem:[#allocation2 + $0x7f0] sm:$0xff]  ;;  %v6328_v51 = vld [vmem:[#allocation2 + $0x7f8] sm:$0xff]  ;;  %v3017_v34 = vadd.f32 %v6290_v13, %v2984_v23  ;;  %v3018_v35 = vadd.f32 %v6292_v24, %v2985_v15  ;;  %v3019_v39 = vadd.f32 %v6298_v48, %v2986_v53 }
 0x230   :  { %7495 = vst [vmem:[#allocation41_spill] sm:$0xff] %v6318_v17  ;;  %7496 = vst [vmem:[#allocation42_spill] sm:$0xff] %v6320_v58  ;;  %v3020_v29 = vadd.f32 %v6300_v30, %v2987_v41  ;;  %v2896_v26 = vcombine.low %v6249_v38, %v2894_v11  ;;  %v3021_v45 = vadd.f32 %v6302_v50, %v2988_v32  ;;  %v6346_v11 = vmul.f32 0.25, %v3015_v60 }
 0x231   :  { %7497 = vst [vmem:[#allocation43_spill] sm:$0xff] %v6324_v25  ;;  %7498 = vst [vmem:[#allocation46_spill] sm:$0xff] %v6326_v0  ;;  %v3022_v2 = vadd.f32 %v6308_v57, %v2989_v37  ;;  %v3023_v59 = vadd.f32 %v6310_v33, %v2990_v44  ;;  %v3024_v62 = vadd.f32 %v6312_v49, %v2991_v55  ;;  %v6348_v37 = vmul.f32 0.25, %v3016_v52 }
 0x232   :  { %7499 = vst [vmem:[#allocation52_spill] sm:$0xff] %v6328_v51  ;;  %v3025_v40 = vadd.f32 %v6316_v19, %v2992_v16  ;;  %v3026_v23 = vadd.f32 %v6318_v17, %v2993_v3  ;;  %v3027_v15 = vadd.f32 %v6320_v58, %v2994_v22  ;;  %v2910_v53 = vrot.slane %v2896_v26, %v7432_v43 }
 0x233   :  { %v3028_v41 = vadd.f32 %v6324_v25, %v2995_v63  ;;  %v3029_v38 = vadd.f32 %v6326_v0, %v2996_v5  ;;  %v3030_v32 = vadd.f32 %v6328_v51, %v2997_v28  ;;  %v6350_v44 = vmul.f32 0.25, %v3017_v34 }
 0x234   :  { %v6352_v55 = vmul.f32 0.25, %v3018_v35  ;;  %v2911_v16 = vcombine.low %v6262_v10, %v2910_v53  ;;  %v6355_v3 = vmul.f32 0.25, %v3019_v39  ;;  %v6357_v22 = vmul.f32 0.25, %v3020_v29 }
 0x235   :  { %v6359_v26 = vmul.f32 0.25, %v3021_v45  ;;  %v6361_v63 = vmul.f32 0.25, %v3022_v2  ;;  %v6363_v5 = vmul.f32 0.25, %v3023_v59  ;;  %v6365_v28 = vmul.f32 0.25, %v3024_v62 }
 0x236   :  { %v6367_v60 = vmul.f32 0.25, %v3025_v40  ;;  %2914 = vst [vmem:[#allocation5 + $0x43] ss:$4 sm:$0xff] %v2911_v16  ;;  %v6369_v52 = vmul.f32 0.25, %v3026_v23  ;;  %v6371_v34 = vmul.f32 0.25, %v3027_v15  ;;  %v6373_v10 = vmul.f32 0.25, %v3028_v41 }
 0x237   :  { %7500 = vst [vmem:[#allocation59_spill] sm:$0xff] %v6363_v5  ;;  %7501 = vst [vmem:[#allocation44_spill] sm:$0xff] %v6365_v28  ;;  %v6375_v39 = vmul.f32 0.25, %v3029_v38  ;;  %v6377_v29 = vmul.f32 0.25, %v3030_v32  ;;  %v3047_v35 = vsub.f32 %v6137_v54, %v6346_v11  ;;  %v3048_v62 = vsub.f32 %v6139_v1, %v6348_v37 }
 0x238   :  { %7502 = vst [vmem:[#allocation55_spill] sm:$0xff] %v6367_v60  ;;  %7503 = vst [vmem:[#allocation53_spill] sm:$0xff] %v6369_v52  ;;  %v3049_v40 = vsub.f32 %v6141_v12, %v6350_v44  ;;  %v3050_v59 = vsub.f32 %v6145_v4, %v6352_v55  ;;  %v3051_v45 = vsub.f32 %v6147_v27, %v6355_v3 }
 0x239   :  { %7504 = vst [vmem:[#allocation47_spill] sm:$0xff] %v6371_v34  ;;  %7505 = vst [vmem:[#allocation56_spill] sm:$0xff] %v6373_v10  ;;  %v3052_v2 = vsub.f32 %v6156_v14, %v6357_v22  ;;  %v3053_v23 = vsub.f32 %v6158_v8, %v6359_v26  ;;  %v3054_v54 = vsub.f32 %v6160_v31, %v6361_v63 }
 0x23a   :  { %7506 = vst [vmem:[#allocation45_spill] sm:$0xff] %v6375_v39  ;;  %v3055_v1 = vsub.f32 %v6168_v9, %v6363_v5  ;;  %v3056_v12 = vsub.f32 %v6170_v7, %v6365_v28  ;;  %v3057_v4 = vsub.f32 %v6172_v18, %v6367_v60  ;;  %v3058_v27 = vsub.f32 %v6174_v36, %v6369_v52 }
 0x23b   :  { %v3059_v14 = vsub.f32 %v6183_v20, %v6371_v34  ;;  %v3060_v8 = vsub.f32 %v6185_v42, %v6373_v10  ;;  %v3061_v31 = vsub.f32 %v6196_v61, %v6375_v39  ;;  %v3062_v9 = vsub.f32 %v6198_v6, %v6377_v29  ;;  %v7507_v6 = vld [vmem:[#allocation10_spill] sm:$0xff] }
 0x23c   :  { %v3063_v15 = vmul.f32 %v3047_v35, %v3047_v35  ;;  %v3064_v7 = vmul.f32 %v3048_v62, %v3048_v62  ;;  %v3065_v53 = vmul.f32 %v3049_v40, %v3049_v40  ;;  %v3066_v41 = vmul.f32 %v3050_v59, %v3050_v59  ;;  %v7508_v62 = vld [vmem:[#allocation11_spill] sm:$0xff]  ;;  %v7509_v59 = vld [vmem:[#allocation12_spill] sm:$0xff] }
 0x23d   :  { %v3067_v18 = vmul.f32 %v3051_v45, %v3051_v45  ;;  %v3068_v38 = vmul.f32 %v3052_v2, %v3052_v2  ;;  %v3069_v32 = vmul.f32 %v3053_v23, %v3053_v23  ;;  %v3070_v36 = vmul.f32 %v3054_v54, %v3054_v54  ;;  %v7510_v2 = vld [vmem:[#allocation13_spill] sm:$0xff]  ;;  %v7511_v54 = vld [vmem:[#allocation14_spill] sm:$0xff] }
 0x23e   :  { %v3071_v16 = vmul.f32 %v3055_v1, %v3055_v1  ;;  %v3072_v43 = vmul.f32 %v3056_v12, %v3056_v12  ;;  %v3073_v20 = vmul.f32 %v3057_v4, %v3057_v4  ;;  %v3074_v51 = vmul.f32 %v3058_v27, %v3058_v27  ;;  %v7512_v12 = vld [vmem:[#allocation15_spill] sm:$0xff] }
 0x23f   :  { %v3075_v0 = vmul.f32 %v3059_v14, %v3059_v14  ;;  %v3076_v42 = vmul.f32 %v3060_v8, %v3060_v8  ;;  %v3077_v25 = vmul.f32 %v3061_v31, %v3061_v31  ;;  %v3078_v58 = vmul.f32 %v3062_v9, %v3062_v9  ;;  %v7514_v14 = vld [vmem:[#allocation17_spill] sm:$0xff]  ;;  %v7515_v31 = vld [vmem:[#allocation18_spill] sm:$0xff] }
 0x240   :  { %v3079_v61 = vsub.f32 %v6149_v21, %v6346_v11  ;;  %v3080_v35 = vsub.f32 %v7507_v6, %v6348_v37  ;;  %v3081_v40 = vsub.f32 %v7508_v62, %v6350_v44  ;;  %v3082_v45 = vsub.f32 %v7509_v59, %v6352_v55  ;;  %v7513_v21 = vld [vmem:[#allocation16_spill] sm:$0xff]  ;;  %v7516_v6 = vld [vmem:[#allocation19_spill] sm:$0xff]  ;;  %v7517_v59 = vld [vmem:[#allocation21_spill] sm:$0xff] }
 0x241   :  { %v3083_v23 = vsub.f32 %v7510_v2, %v6355_v3  ;;  %v3084_v1 = vsub.f32 %v7511_v54, %v6357_v22  ;;  %v3085_v4 = vsub.f32 %v7512_v12, %v6359_v26  ;;  %v3086_v27 = vsub.f32 %v7513_v21, %v6361_v63  ;;  %v7518_v54 = vld [vmem:[#allocation22_spill] sm:$0xff]  ;;  %v7519_v12 = vld [vmem:[#allocation23_spill] sm:$0xff]  ;;  %v7520_v21 = vld [vmem:[#allocation24_spill] sm:$0xff] }
 0x242   :  { %v3087_v8 = vsub.f32 %v7514_v14, %v6363_v5  ;;  %v3088_v9 = vsub.f32 %v7515_v31, %v6365_v28  ;;  %v3089_v62 = vsub.f32 %v7516_v6, %v6367_v60  ;;  %v3090_v2 = vsub.f32 %v7517_v59, %v6369_v52  ;;  %v7521_v14 = vld [vmem:[#allocation49_spill] sm:$0xff] }
 0x243   :  { %v3091_v17 = vsub.f32 %v7518_v54, %v6371_v34  ;;  %v3092_v19 = vsub.f32 %v7519_v12, %v6373_v10  ;;  %v3093_v49 = vsub.f32 %v7520_v21, %v6375_v39  ;;  %v3094_v33 = vsub.f32 %v7521_v14, %v6377_v29 }
 0x244   :  { %v3095_v57 = vmul.f32 %v3079_v61, %v3079_v61  ;;  %v3096_v31 = vmul.f32 %v3080_v35, %v3080_v35  ;;  %v3097_v50 = vmul.f32 %v3081_v40, %v3081_v40  ;;  %v3098_v30 = vmul.f32 %v3082_v45, %v3082_v45 }
 0x245   :  { %v3099_v6 = vmul.f32 %v3083_v23, %v3083_v23  ;;  %v3100_v48 = vmul.f32 %v3084_v1, %v3084_v1  ;;  %v3101_v24 = vmul.f32 %v3085_v4, %v3085_v4  ;;  %v3102_v59 = vmul.f32 %v3086_v27, %v3086_v27 }
 0x246   :  { %v3103_v13 = vmul.f32 %v3087_v8, %v3087_v8  ;;  %v3104_v52 = vmul.f32 %v3088_v9, %v3088_v9  ;;  %v3105_v54 = vmul.f32 %v3089_v62, %v3089_v62  ;;  %v3106_v34 = vmul.f32 %v3090_v2, %v3090_v2 }
 0x247   :  { %v3107_v60 = vmul.f32 %v3091_v17, %v3091_v17  ;;  %v3108_v12 = vmul.f32 %v3092_v19, %v3092_v19  ;;  %v3109_v10 = vmul.f32 %v3093_v49, %v3093_v49  ;;  %v3110_v28 = vmul.f32 %v3094_v33, %v3094_v33  ;;  %v7522_v17 = vld [vmem:[#allocation25_spill] sm:$0xff]  ;;  %v7526_v33 = vld [vmem:[#allocation27_spill] sm:$0xff] }
 0x248   :  { %v3111_v21 = vadd.f32 %v3095_v57, %v3063_v15  ;;  %v3112_v39 = vadd.f32 %v3096_v31, %v3064_v7  ;;  %v3113_v5 = vadd.f32 %v3097_v50, %v3065_v53  ;;  %v3114_v14 = vadd.f32 %v3098_v30, %v3066_v41  ;;  %v7534_v15 = vld [vmem:[#allocation28_spill] sm:$0xff]  ;;  %v7535_v53 = vld [vmem:[#allocation47_spill] sm:$0xff]  ;;  %v7536_v41 = vld [vmem:[#allocation58_spill] sm:$0xff] }
 0x249   :  { %v3115_v61 = vadd.f32 %v3099_v6, %v3067_v18  ;;  %v3116_v35 = vadd.f32 %v3100_v48, %v3068_v38  ;;  %v3117_v40 = vadd.f32 %v3101_v24, %v3069_v32  ;;  %v3118_v45 = vadd.f32 %v3102_v59, %v3070_v36  ;;  %v7537_v38 = vld [vmem:[#allocation56_spill] sm:$0xff] }
 0x24a   :  { %v3119_v23 = vadd.f32 %v3103_v13, %v3071_v16  ;;  %v3120_v1 = vadd.f32 %v3104_v52, %v3072_v43  ;;  %v3121_v4 = vadd.f32 %v3105_v54, %v3073_v20  ;;  %v3122_v27 = vadd.f32 %v3106_v34, %v3074_v51  ;;  %v7523_v43 = vld [vmem:[#allocation50_spill] sm:$0xff]  ;;  %v7525_v13 = vld [vmem:[#allocation51_spill] sm:$0xff]  ;;  %v7538_v32 = vld [vmem:[#allocation20_spill] sm:$0xff] }
 0x24b   :  { %v3123_v8 = vadd.f32 %v3107_v60, %v3075_v0  ;;  %v3124_v9 = vadd.f32 %v3108_v12, %v3076_v42  ;;  %v3125_v62 = vadd.f32 %v3109_v10, %v3077_v25  ;;  %v3126_v2 = vadd.f32 %v3110_v28, %v3078_v58  ;;  %v7524_v0 = vld [vmem:[#allocation26_spill] sm:$0xff]  ;;  %v7527_v58 = vld [vmem:[#allocation59_spill] sm:$0xff]  ;;  %v7529_v28 = vld [vmem:[#allocation44_spill] sm:$0xff] }
 0x24c   :  { %v3127_v19 = vsub.f32 %v7522_v17, %v6346_v11  ;;  %v3128_v57 = vsub.f32 %v6220_v46, %v6348_v37  ;;  %v3129_v30 = vsub.f32 %v6228_v47, %v6350_v44  ;;  %v3130_v24 = vsub.f32 %v6230_v56, %v6352_v55  ;;  %v7528_v46 = vld [vmem:[#allocation57_spill] sm:$0xff]  ;;  %v7530_v47 = vld [vmem:[#allocation48_spill] sm:$0xff]  ;;  %v7531_v52 = vld [vmem:[#allocation55_spill] sm:$0xff] }
 0x24d   :  { %v3131_v48 = vsub.f32 %v7523_v43, %v6355_v3  ;;  %v3132_v51 = vsub.f32 %v7524_v0, %v6357_v22  ;;  %v3133_v50 = vsub.f32 %v7525_v13, %v6359_v26  ;;  %v3134_v49 = vsub.f32 %v7526_v33, %v6361_v63  ;;  %v7532_v56 = vld [vmem:[#allocation54_spill] sm:$0xff]  ;;  %v7533_v10 = vld [vmem:[#allocation53_spill] sm:$0xff]  ;;  %v7541_v31 = vld [vmem:[#allocation8_spill] sm:$0xff] }
 0x24e   :  { %v3135_v25 = vsub.f32 %v7528_v46, %v7527_v58  ;;  %v3136_v60 = vsub.f32 %v7530_v47, %v7529_v28  ;;  %v3137_v34 = vsub.f32 %v7532_v56, %v7531_v52  ;;  %v3138_v7 = vsub.f32 %v7534_v15, %v7533_v10  ;;  %v7539_v16 = vld [vmem:[#allocation45_spill] sm:$0xff] }
 0x24f   :  { %v3139_v18 = vsub.f32 %v7536_v41, %v7535_v53  ;;  %v3140_v36 = vsub.f32 %v7538_v32, %v7537_v38  ;;  %v7540_v20 = vld [vmem:[#allocation29_spill] sm:$0xff]  ;;  %v3142_v6 = vsub.f32 %v7541_v31, %v6377_v29  ;;  %v3143_v59 = vmul.f32 %v3127_v19, %v3127_v19 }
 0x250   :  { %v3141_v42 = vsub.f32 %v7540_v20, %v7539_v16  ;;  %v3144_v54 = vmul.f32 %v3128_v57, %v3128_v57  ;;  %v3145_v12 = vmul.f32 %v3129_v30, %v3129_v30  ;;  %v3146_v17 = vmul.f32 %v3130_v24, %v3130_v24 }
 0x251   :  { %v3147_v43 = vmul.f32 %v3131_v48, %v3131_v48  ;;  %v3148_v0 = vmul.f32 %v3132_v51, %v3132_v51  ;;  %v3149_v13 = vmul.f32 %v3133_v50, %v3133_v50  ;;  %v3150_v33 = vmul.f32 %v3134_v49, %v3134_v49  ;;  %v7542_v51 = vld [vmem:[#allocation30_spill] sm:$0xff]  ;;  %v7543_v49 = vld [vmem:[#allocation31_spill] sm:$0xff] }
 0x252   :  { %v3151_v46 = vmul.f32 %v3135_v25, %v3135_v25  ;;  %v3152_v47 = vmul.f32 %v3136_v60, %v3136_v60  ;;  %v3153_v56 = vmul.f32 %v3137_v34, %v3137_v34  ;;  %v3154_v15 = vmul.f32 %v3138_v7, %v3138_v7 }
 0x253   :  { %v3155_v41 = vmul.f32 %v3139_v18, %v3139_v18  ;;  %v3156_v32 = vmul.f32 %v3140_v36, %v3140_v36  ;;  %v3157_v38 = vmul.f32 %v3141_v42, %v3141_v42  ;;  %v3158_v53 = vmul.f32 %v3142_v6, %v3142_v6  ;;  %v7544_v18 = vld [vmem:[#allocation32_spill] sm:$0xff]  ;;  %v7554_v42 = vld [vmem:[#allocation41_spill] sm:$0xff] }
 0x254   :  { %v3159_v20 = vadd.f32 %v3143_v59, %v3111_v21  ;;  %v3160_v16 = vadd.f32 %v3144_v54, %v3112_v39  ;;  %v3161_v10 = vadd.f32 %v3145_v12, %v3113_v5  ;;  %v3162_v31 = vadd.f32 %v3146_v17, %v3114_v14  ;;  %v7555_v59 = vld [vmem:[#allocation47_spill] sm:$0xff]  ;;  %v7557_v12 = vld [vmem:[#allocation56_spill] sm:$0xff] }
 0x255   :  { %v3163_v19 = vadd.f32 %v3147_v43, %v3115_v61  ;;  %v3164_v57 = vadd.f32 %v3148_v0, %v3116_v35  ;;  %v3165_v30 = vadd.f32 %v3149_v13, %v3117_v40  ;;  %v3166_v24 = vadd.f32 %v3150_v33, %v3118_v45  ;;  %v7545_v35 = vld [vmem:[#allocation33_spill] sm:$0xff]  ;;  %v7546_v45 = vld [vmem:[#allocation34_spill] sm:$0xff]  ;;  %v7561_v13 = vld [vmem:[#allocation52_spill] sm:$0xff] }
 0x256   :  { %v3167_v48 = vadd.f32 %v3151_v46, %v3119_v23  ;;  %v3175_v50 = vsub.f32 %v7542_v51, %v6346_v11  ;;  %v3176_v25 = vsub.f32 %v7543_v49, %v6348_v37  ;;  %v3168_v60 = vadd.f32 %v3152_v47, %v3120_v1  ;;  %v7547_v11 = vld [vmem:[#allocation35_spill] sm:$0xff]  ;;  %v7548_v37 = vld [vmem:[#allocation36_spill] sm:$0xff]  ;;  %v7559_v43 = vld [vmem:[#allocation45_spill] sm:$0xff] }
 0x257   :  { %v3169_v34 = vadd.f32 %v3153_v56, %v3121_v4  ;;  %v3170_v7 = vadd.f32 %v3154_v15, %v3122_v27  ;;  %v3177_v21 = vsub.f32 %v7544_v18, %v6350_v44  ;;  %v3171_v39 = vadd.f32 %v3155_v41, %v3123_v8  ;;  %v7549_v4 = vld [vmem:[#allocation37_spill] sm:$0xff]  ;;  %v7550_v44 = vld [vmem:[#allocation38_spill] sm:$0xff] }
 0x258   :  { %v3172_v5 = vadd.f32 %v3156_v32, %v3124_v9  ;;  %v3173_v14 = vadd.f32 %v3157_v38, %v3125_v62  ;;  %v3174_v61 = vadd.f32 %v3158_v53, %v3126_v2  ;;  %v3178_v40 = vsub.f32 %v7545_v35, %v6352_v55  ;;  %v7551_v2 = vld [vmem:[#allocation39_spill] sm:$0xff]  ;;  %v7552_v53 = vld [vmem:[#allocation40_spill] sm:$0xff]  ;;  %v7553_v38 = vld [vmem:[#allocation53_spill] sm:$0xff] }
 0x259   :  { %v3179_v23 = vsub.f32 %v7546_v45, %v6355_v3  ;;  %v3180_v36 = vsub.f32 %v7547_v11, %v6357_v22  ;;  %v3181_v1 = vsub.f32 %v7548_v37, %v6359_v26  ;;  %v3182_v27 = vsub.f32 %v7549_v4, %v6361_v63  ;;  %v7556_v26 = vld [vmem:[#allocation42_spill] sm:$0xff]  ;;  %v7558_v63 = vld [vmem:[#allocation43_spill] sm:$0xff] }
 0x25a   :  { %v3183_v8 = vsub.f32 %v7550_v44, %v7527_v58  ;;  %v3191_v9 = vmul.f32 %v3175_v50, %v3175_v50  ;;  %v3192_v62 = vmul.f32 %v3176_v25, %v3176_v25  ;;  %v3184_v55 = vsub.f32 %v7551_v2, %v7529_v28  ;;  %v7560_v58 = vld [vmem:[#allocation46_spill] sm:$0xff] }
 0x25b   :  { %v3185_v3 = vsub.f32 %v7552_v53, %v7531_v52  ;;  %v3186_v22 = vsub.f32 %v7554_v42, %v7553_v38  ;;  %v3193_v6 = vmul.f32 %v3177_v21, %v3177_v21  ;;  %v3187_v54 = vsub.f32 %v7556_v26, %v7555_v59 }
 0x25c   :  { %v3188_v17 = vsub.f32 %v7558_v63, %v7557_v12  ;;  %v3189_v0 = vsub.f32 %v7560_v58, %v7559_v43  ;;  %v3190_v33 = vsub.f32 %v7561_v13, %v6377_v29  ;;  %v3194_v28 = vmul.f32 %v3178_v40, %v3178_v40 }
 0x25d   :  { %v3195_v46 = vmul.f32 %v3179_v23, %v3179_v23  ;;  %v3196_v47 = vmul.f32 %v3180_v36, %v3180_v36  ;;  %v3197_v52 = vmul.f32 %v3181_v1, %v3181_v1  ;;  %v3198_v56 = vmul.f32 %v3182_v27, %v3182_v27 }
 0x25e   :  { %v3199_v15 = vmul.f32 %v3183_v8, %v3183_v8  ;;  %v3207_v41 = vadd.f32 %v3191_v9, %v3159_v20  ;;  %v3208_v32 = vadd.f32 %v3192_v62, %v3160_v16  ;;  %v3200_v51 = vmul.f32 %v3184_v55, %v3184_v55 }
 0x25f   :  { %v3201_v50 = vmul.f32 %v3185_v3, %v3185_v3  ;;  %v3202_v49 = vmul.f32 %v3186_v22, %v3186_v22  ;;  %v3209_v25 = vadd.f32 %v3193_v6, %v3161_v10  ;;  %v3203_v18 = vmul.f32 %v3187_v54, %v3187_v54 }
 0x260   :  { %v3204_v21 = vmul.f32 %v3188_v17, %v3188_v17  ;;  %v3205_v35 = vmul.f32 %v3189_v0, %v3189_v0  ;;  %v3206_v45 = vmul.f32 %v3190_v33, %v3190_v33  ;;  %v3210_v11 = vadd.f32 %v3194_v28, %v3162_v31 }
 0x261   :  { %v3211_v37 = vadd.f32 %v3195_v46, %v3163_v19  ;;  %v3212_v4 = vadd.f32 %v3196_v47, %v3164_v57  ;;  %v3213_v29 = vadd.f32 %v3197_v52, %v3165_v30  ;;  %v3214_v40 = vadd.f32 %v3198_v56, %v3166_v24 }
 0x262   :  { %v3215_v23 = vadd.f32 %v3199_v15, %v3167_v48  ;;  %v3223_v36 = vmul.f32 0.25, %v3207_v41  ;;  %v3224_v1 = vmul.f32 0.25, %v3208_v32  ;;  %v3216_v27 = vadd.f32 %v3200_v51, %v3168_v60 }
 0x263   :  { %v3217_v44 = vadd.f32 %v3201_v50, %v3169_v34  ;;  %v3218_v20 = vadd.f32 %v3202_v49, %v3170_v7  ;;  %v3225_v16 = vmul.f32 0.25, %v3209_v25  ;;  %v3219_v8 = vadd.f32 %v3203_v18, %v3171_v39 }
 0x264   :  { %v3220_v9 = vadd.f32 %v3204_v21, %v3172_v5  ;;  %v3221_v62 = vadd.f32 %v3205_v35, %v3173_v14  ;;  %v3222_v10 = vadd.f32 %v3206_v45, %v3174_v61  ;;  %v3226_v2 = vmul.f32 0.25, %v3210_v11 }
 0x265   :  { %v3227_v55 = vmul.f32 0.25, %v3211_v37  ;;  %v3228_v53 = vmul.f32 0.25, %v3212_v4  ;;  %v3229_v3 = vmul.f32 0.25, %v3213_v29  ;;  %v3230_v31 = vmul.f32 0.25, %v3214_v40 }
 0x266   :  { %v3231_v19 = vmul.f32 0.25, %v3215_v23  ;;  %v6507_v57 = vadd.f32 1e-14, %v3223_v36  ;;  %v6509_v30 = vadd.f32 1e-14, %v3224_v1  ;;  %v3232_v24 = vmul.f32 0.25, %v3216_v27 }
 0x267   :  { %v3233_v48 = vmul.f32 0.25, %v3217_v44  ;;  %v3234_v60 = vmul.f32 0.25, %v3218_v20  ;;  %v6511_v34 = vadd.f32 1e-14, %v3225_v16  ;;  %v3235_v7 = vmul.f32 0.25, %v3219_v8 }
 0x268   :  { %v3236_v39 = vmul.f32 0.25, %v3220_v9  ;;  %v3237_v5 = vmul.f32 0.25, %v3221_v62  ;;  %4008 = vrsqrt.f32 %v6507_v57  ;;  %v3238_v14 = vmul.f32 0.25, %v3222_v10 }
 0x269   :  { %v6514_v61 = vadd.f32 1e-14, %v3226_v2  ;;  %v6516_v38 = vadd.f32 1e-14, %v3227_v55  ;;  %4010 = vrsqrt.f32 %v6509_v30  ;;  %v6519_v42 = vadd.f32 1e-14, %v3228_v53 }
 0x26a   :  { %v6521_v22 = vadd.f32 1e-14, %v3229_v3  ;;  %v6523_v6 = vadd.f32 1e-14, %v3230_v31  ;;  %4012 = vrsqrt.f32 %v6511_v34  ;;  %v6526_v59 = vadd.f32 1e-14, %v3231_v19 }
 0x26b   :  { %v6528_v26 = vadd.f32 1e-14, %v3232_v24  ;;  %v6530_v54 = vadd.f32 1e-14, %v3233_v48  ;;  %v6532_v12 = vadd.f32 1e-14, %v3234_v60  ;;  %4014 = vrsqrt.f32 %v6514_v61 }
 0x26c   :  { %v6534_v63 = vadd.f32 1e-14, %v3235_v7  ;;  %v6536_v17 = vadd.f32 1e-14, %v3236_v39  ;;  %v6538_v43 = vadd.f32 1e-14, %v3237_v5  ;;  %4016 = vrsqrt.f32 %v6516_v38 }
 0x26d   :  { %v6540_v58 = vadd.f32 1e-14, %v3238_v14  ;;  %vm3257_vm15 = vcmp.eq.f32.partialorder %v6507_v57, inf  ;;  %vm3259_vm5 = vcmp.eq.f32.partialorder %v6507_v57, 0.0  ;;  %v3260_v0 = vand.u32 2147483648, %v6507_v57 }
 0x26e   :  { %vm3264_vm7 = vcmp.eq.f32.partialorder %v6509_v30, inf  ;;  %vm3266_vm9 = vcmp.eq.f32.partialorder %v6509_v30, 0.0  ;;  %v3267_v13 = vand.u32 2147483648, %v6509_v30  ;;  %vm3271_vm12 = vcmp.eq.f32.partialorder %v6511_v34, inf }
 0x26f   :  { %4018 = vrsqrt.f32 %v6519_v42  ;;  %vm3273_vm11 = vcmp.eq.f32.partialorder %v6511_v34, 0.0  ;;  %v3274_v33 = vand.u32 2147483648, %v6511_v34  ;;  %vm3278_vm0 = vcmp.eq.f32.partialorder %v6514_v61, inf }
 0x270   :  { %4020 = vrsqrt.f32 %v6521_v22  ;;  %vm3280_vm8 = vcmp.eq.f32.partialorder %v6514_v61, 0.0  ;;  %v3281_v28 = vand.u32 2147483648, %v6514_v61  ;;  %vm3285_vm1 = vcmp.eq.f32.partialorder %v6516_v38, inf }
 0x271   :  { %4022 = vrsqrt.f32 %v6523_v6  ;;  %vm3287_vm4 = vcmp.eq.f32.partialorder %v6516_v38, 0.0  ;;  %v3288_v47 = vand.u32 2147483648, %v6516_v38  ;;  %vm3292_vm6 = vcmp.eq.f32.partialorder %v6519_v42, inf }
 0x272   :  { %v4009_v46 = vpop.eup %4008  ;;  %v3295_v52 = vand.u32 2147483648, %v6519_v42  ;;  %4024 = vrsqrt.f32 %v6526_v59  ;;  %vm3299_vm2 = vcmp.eq.f32.partialorder %v6521_v22, inf  ;;  %v3302_v41 = vand.u32 2147483648, %v6521_v22 }
 0x273   :  { %v4011_v56 = vpop.eup %4010  ;;  %v3256_v15 = vmul.f32 %v4009_v46, %v6507_v57  ;;  %vm3301_vm10 = vcmp.eq.f32.partialorder %v6521_v22, 0.0  ;;  %v3309_v50 = vand.u32 2147483648, %v6523_v6  ;;  %4026 = vrsqrt.f32 %v6528_v26 }
 0x274   :  { %v4013_v32 = vpop.eup %4012  ;;  %v3263_v51 = vmul.f32 %v4011_v56, %v6509_v30  ;;  %vm3308_vm13 = vcmp.eq.f32.partialorder %v6523_v6, 0.0  ;;  %4028 = vrsqrt.f32 %v6530_v54  ;;  %v3316_v21 = vand.u32 2147483648, %v6526_v59 }
 0x275   :  { %v3258_v49 = vsel %vm3257_vm15, %v6507_v57, %v3256_v15  ;;  %v3270_v25 = vmul.f32 %v4013_v32, %v6511_v34  ;;  %vm3320_vm14 = vcmp.eq.f32.partialorder %v6528_v26, inf  ;;  %v3323_v35 = vand.u32 2147483648, %v6528_v26  ;;  %v4015_v45 = vpop.eup %4014 }
 0x276   :  { %v3265_v18 = vsel %vm3264_vm7, %v6509_v30, %v3263_v51  ;;  %v6590_v11 = vsel %vm3259_vm5, %v3260_v0, %v3258_v49  ;;  %vm3322_vm15 = vcmp.eq.f32.partialorder %v6528_v26, 0.0  ;;  %vm3327_vm3 = vcmp.eq.f32.partialorder %v6530_v54, inf  ;;  %v4017_v4 = vpop.eup %4016 }
 0x277   :  { %v3272_v37 = vsel %vm3271_vm12, %v6511_v34, %v3270_v25  ;;  %4030 = vrsqrt.f32 %v6532_v12  ;;  %v6600_v29 = vsel %vm3266_vm9, %v3267_v13, %v3265_v18  ;;  %v3277_v40 = vmul.f32 %v4015_v45, %v6514_v61 }
 0x278   :  { %vm3329_vm5 = vcmp.eq.f32.partialorder %v6530_v54, 0.0  ;;  %v3330_v23 = vand.u32 2147483648, %v6530_v54  ;;  %v6607_v1 = vsel %vm3273_vm11, %v3274_v33, %v3272_v37  ;;  %v3284_v27 = vmul.f32 %v4017_v4, %v6516_v38 }
 0x279   :  { %v4019_v36 = vpop.eup %4018  ;;  %vm3334_vm7 = vcmp.eq.f32.partialorder %v6532_v12, inf  ;;  %4032 = vrsqrt.f32 %v6534_v63  ;;  %v3279_v20 = vsel %vm3278_vm0, %v6514_v61, %v3277_v40  ;;  %vm3336_vm9 = vcmp.eq.f32.partialorder %v6532_v12, 0.0 }
 0x27a   :  { %v4021_v44 = vpop.eup %4020  ;;  %v3291_v16 = vmul.f32 %v4019_v36, %v6519_v42  ;;  %v3337_v8 = vand.u32 2147483648, %v6532_v12  ;;  %v3286_v62 = vsel %vm3285_vm1, %v6516_v38, %v3284_v27  ;;  %vm3341_vm12 = vcmp.eq.f32.partialorder %v6534_v63, inf }
 0x27b   :  { %v4023_v9 = vpop.eup %4022  ;;  %v3298_v10 = vmul.f32 %v4021_v44, %v6521_v22  ;;  %4034 = vrsqrt.f32 %v6536_v17  ;;  %v6626_v55 = vsel %vm3280_vm8, %v3281_v28, %v3279_v20  ;;  %vm3343_vm11 = vcmp.eq.f32.partialorder %v6534_v63, 0.0 }
 0x27c   :  { %v4025_v2 = vpop.eup %4024  ;;  %v3293_v53 = vsel %vm3292_vm6, %v6519_v42, %v3291_v16  ;;  %v3305_v3 = vmul.f32 %v4023_v9, %v6523_v6  ;;  %v3344_v31 = vand.u32 2147483648, %v6534_v63  ;;  %v6636_v19 = vsel %vm3287_vm4, %v3288_v47, %v3286_v62 }
 0x27d   :  { %v3300_v57 = vsel %vm3299_vm2, %v6521_v22, %v3298_v10  ;;  %v3312_v30 = vmul.f32 %v4025_v2, %v6526_v59  ;;  %vm3348_vm0 = vcmp.eq.f32.partialorder %v6536_v17, inf  ;;  %v4027_v24 = vpop.eup %4026  ;;  %vm7562_vm8 = vcmp.eq.f32.partialorder %v6519_v42, 0.0 }
 0x27e   :  { %v6645_v48 = vsel %vm7562_vm8, %v3295_v52, %v3293_v53  ;;  %vm7563_vm1 = vcmp.eq.f32.partialorder %v6523_v6, inf  ;;  %vm3350_vm4 = vcmp.eq.f32.partialorder %v6536_v17, 0.0  ;;  %4036 = vrsqrt.f32 %v6538_v43  ;;  %v4029_v34 = vpop.eup %4028 }
 0x27f   :  { %v3307_v60 = vsel %vm7563_vm1, %v6523_v6, %v3305_v3  ;;  %v6654_v7 = vsel %vm3301_vm10, %v3302_v41, %v3300_v57  ;;  %vm7564_vm6 = vcmp.eq.f32.partialorder %v6526_v59, inf  ;;  %v3319_v5 = vmul.f32 %v4027_v24, %v6528_v26 }
 0x280   :  { %v3314_v39 = vsel %vm7564_vm6, %v6526_v59, %v3312_v30  ;;  %v3351_v14 = vand.u32 2147483648, %v6536_v17  ;;  %v6663_v61 = vsel %vm3308_vm13, %v3309_v50, %v3307_v60  ;;  %vm7565_vm2 = vcmp.eq.f32.partialorder %v6526_v59, 0.0 }
 0x281   :  { %v6667_v38 = vsel %vm7565_vm2, %v3316_v21, %v3314_v39  ;;  %v3326_v42 = vmul.f32 %v4029_v34, %v6530_v54  ;;  %vm3355_vm10 = vcmp.eq.f32.partialorder %v6538_v43, inf  ;;  %v4031_v22 = vpop.eup %4030  ;;  %v3321_v0 = vsel %vm3320_vm14, %v6528_v26, %v3319_v5 }
 0x282   :  { %vm3357_vm8 = vcmp.eq.f32.partialorder %v6538_v43, 0.0  ;;  %v3358_v13 = vand.u32 2147483648, %v6538_v43  ;;  %4038 = vrsqrt.f32 %v6540_v58  ;;  %v6679_v6 = vsel %vm3322_vm15, %v3323_v35, %v3321_v0 }
 0x283   :  { %v3328_v59 = vsel %vm3327_vm3, %v6530_v54, %v3326_v42  ;;  %v3333_v33 = vmul.f32 %v4031_v22, %v6532_v12  ;;  %v3365_v28 = vand.u32 2147483648, %v6540_v58  ;;  %v4033_v46 = vpop.eup %4032  ;;  %vm3362_vm13 = vcmp.eq.f32.partialorder %v6540_v58, inf }
 0x284   :  { %v6688_v47 = vsel %vm3329_vm5, %v3330_v23, %v3328_v59  ;;  %vm7566_vm14 = vcmask 1043456   ;;  %v3340_v41 = vmul.f32 %v4033_v46, %v6534_v63  ;;  %vm3364_vm3 = vcmp.eq.f32.partialorder %v6540_v58, 0.0 }
 0x285   :  { %v3367_v26 = vsel %vm7566_vm14, %v6590_v11, 0.0  ;;  %vm7567_vm15 = vmmov %vm7566_vm14  ;;  %v3335_v15 = vsel %vm3334_vm7, %v6532_v12, %v3333_v33  ;;  %v4035_v51 = vpop.eup %4034 }
 0x286   :  { %v3374_v52 = vsel %vm7567_vm15, %v6600_v29, 0.0  ;;  %vm7568_vm1 = vmmov %vm7566_vm14  ;;  %v3368_v54 = vrot.slane %v3367_v26, 4  ;;  %v6704_v50 = vsel %vm3336_vm9, %v3337_v8, %v3335_v15  ;;  %v3342_v21 = vsel %vm3341_vm12, %v6534_v63, %v3340_v41 }
 0x287   :  { %v3381_v56 = vsel %vm7568_vm1, %v6607_v1, 0.0  ;;  %v3375_v32 = vrot.slane %v3374_v52, 4  ;;  %vm7569_vm5 = vmmov %vm7568_vm1  ;;  %v3347_v35 = vmul.f32 %v4035_v51, %v6536_v17  ;;  %v6716_v12 = vsel %vm3343_vm11, %v3344_v31, %v3342_v21 }
 0x288   :  { %v3382_v49 = vrot.slane %v3381_v56, 4  ;;  %v3388_v25 = vsel %vm7569_vm5, %v6626_v55, 0.0  ;;  %vm7570_vm6 = vmmov %vm7568_vm1  ;;  %v3369_v45 = vadd.f32 %v3368_v54, %v3367_v26  ;;  %v4037_v36 = vpop.eup %4036 }
 0x289   :  { %v3395_v18 = vsel %vm7570_vm6, %v6636_v19, 0.0  ;;  %v3376_v37 = vadd.f32 %v3375_v32, %v3374_v52  ;;  %v3389_v40 = vrot.slane %v3388_v25, 4  ;;  %v3349_v27 = vsel %vm3348_vm0, %v6536_v17, %v3347_v35  ;;  %vm7571_vm7 = vmmov %vm7568_vm1 }
 0x28a   :  { %v3383_v4 = vadd.f32 %v3382_v49, %v3381_v56  ;;  %v3396_v23 = vrot.slane %v3395_v18, 4  ;;  %v3370_v44 = vrot.slane %v3369_v45, 2  ;;  %v3402_v16 = vsel %vm7571_vm7, %v6645_v48, 0.0  ;;  %vm7572_vm9 = vmmov %vm7568_vm1 }
 0x28b   :  { %v3377_v20 = vrot.slane %v3376_v37, 2  ;;  %v6725_v8 = vsel %vm3350_vm4, %v3351_v14, %v3349_v27  ;;  %v3354_v63 = vmul.f32 %v4037_v36, %v6538_v43  ;;  %v3390_v62 = vadd.f32 %v3389_v40, %v3388_v25  ;;  %vm7573_vm12 = vmmov %vm7568_vm1 }
 0x28c   :  { %v3384_v9 = vrot.slane %v3383_v4, 2  ;;  %v3371_v10 = vadd.f32 %v3370_v44, %v3369_v45  ;;  %v3397_v53 = vadd.f32 %v3396_v23, %v3395_v18  ;;  %v3403_v3 = vrot.slane %v3402_v16, 4  ;;  %v4039_v31 = vpop.eup %4038  ;;  %v7574_v45 = vld [vmem:[#allocation9_spill] sm:$0xff]  ;;  %vm7575_vm11 = vmmov %vm7568_vm1 }
 0x28d   :  { %v3378_v2 = vadd.f32 %v3377_v20, %v3376_v37  ;;  %v3356_v57 = vsel %vm3355_vm10, %v6538_v43, %v3354_v63  ;;  %v3391_v24 = vrot.slane %v3390_v62, 2  ;;  %v3409_v17 = vsel %vm7572_vm9, %v6654_v7, 0.0  ;;  %vm7576_vm0 = vmmov %vm7568_vm1 }
 0x28e   :  { %v3385_v30 = vadd.f32 %v3384_v9, %v3383_v4  ;;  %v6735_v60 = vsel %vm3357_vm8, %v3358_v13, %v3356_v57  ;;  %v3361_v34 = vmul.f32 %v4039_v31, %v6540_v58  ;;  %v3372_v39 = vrot.slane %v3371_v10, 1  ;;  %vm7577_vm4 = vmmov %vm7576_vm0 }
 0x28f   :  { %v3379_v5 = vrot.slane %v3378_v2, 1  ;;  %v3392_v42 = vadd.f32 %v3391_v24, %v3390_v62  ;;  %v3398_v22 = vrot.slane %v3397_v53, 2  ;;  %v3404_v0 = vadd.f32 %v3403_v3, %v3402_v16  ;;  %vm7578_vm2 = vmmov %vm7576_vm0 }
 0x290   :  { %v3386_v14 = vrot.slane %v3385_v30, 1  ;;  %v3363_v59 = vsel %vm3362_vm13, %v6540_v58, %v3361_v34  ;;  %v3373_v33 = vadd.f32 %v3372_v39, %v3371_v10  ;;  %v3410_v26 = vrot.slane %v3409_v17, 4  ;;  %vm7579_vm10 = vmmov %vm7576_vm0 }
 0x291   :  { %v3380_v46 = vadd.f32 %v3379_v5, %v3378_v2  ;;  %v6743_v43 = vsel %vm3364_vm3, %v3365_v28, %v3363_v59  ;;  %v3393_v52 = vrot.slane %v3392_v42, 1  ;;  %v3399_v56 = vadd.f32 %v3398_v22, %v3397_v53  ;;  %vm7580_vm8 = vmmov %vm7576_vm0 }
 0x292   :  { %v3387_v13 = vadd.f32 %v3386_v14, %v3385_v30  ;;  %v3405_v15 = vrot.slane %v3404_v0, 2  ;;  %v3411_v41 = vadd.f32 %v3410_v26, %v3409_v17  ;;  %v3416_v54 = vsel %vm7573_vm12, %v6663_v61, 0.0  ;;  %vm7581_vm13 = vmmov %vm7576_vm0 }
 0x293   :  { %v3431_v32 = vcombine.low %v3373_v33, %v3380_v46  ;;  %v3394_v51 = vadd.f32 %v3393_v52, %v3392_v42  ;;  %v3400_v49 = vrot.slane %v3399_v56, 1  ;;  %v3417_v25 = vrot.slane %v3416_v54, 4  ;;  %vm7582_vm14 = vmmov %vm7576_vm0 }
 0x294   :  { %v3491_v18 = vrot.slane %v6590_v11, 4  ;;  %v3406_v21 = vadd.f32 %v3405_v15, %v3404_v0  ;;  %v3412_v35 = vrot.slane %v3411_v41, 2  ;;  %v3492_v28 = vrot.slane %v6600_v29, 4  ;;  %vm7583_vm15 = vmmov %vm7576_vm0 }
 0x295   :  { %v3441_v58 = vrot.slane %v3431_v32, %v7574_v45  ;;  %v3401_v37 = vadd.f32 %v3400_v49, %v3399_v56  ;;  %v3418_v4 = vadd.f32 %v3417_v25, %v3416_v54  ;;  %v3432_v40 = vcombine.low %v3387_v13, %v3394_v51  ;;  %vm7584_vm1 = vmmov %vm7576_vm0 }
 0x296   :  { %v3493_v23 = vrot.slane %v6607_v1, 4  ;;  %v3407_v36 = vrot.slane %v3406_v21, 1  ;;  %v3413_v27 = vadd.f32 %v3412_v35, %v3411_v41  ;;  %v3494_v44 = vrot.slane %v6626_v55, 4  ;;  %vm7585_vm3 = vmmov %vm7576_vm0 }
 0x297   :  { %v3495_v20 = vrot.slane %v6636_v19, 4  ;;  %v3419_v16 = vrot.slane %v3418_v4, 2  ;;  %v3448_v11 = vrot.slane %v3432_v40, %v7574_v45  ;;  %v3496_v63 = vrot.slane %v6645_v48, 4  ;;  %vm7586_vm5 = vmmov %vm7576_vm0 }
 0x298   :  { %v3497_v9 = vrot.slane %v6654_v7, 4  ;;  %v3408_v62 = vadd.f32 %v3407_v36, %v3406_v21  ;;  %v3414_v29 = vrot.slane %v3413_v27, 1  ;;  %v3498_v10 = vrot.slane %v6663_v61, 4  ;;  %vm7587_vm6 = vmmov %vm7576_vm0 }
 0x299   :  { %v3507_v2 = vsel %vm7575_vm11, %v3491_v18, 0.0  ;;  %v3420_v1 = vadd.f32 %v3419_v16, %v3418_v4  ;;  %v3463_v53 = vcombine.low %v3441_v58, %v3448_v11  ;;  %v3514_v55 = vsel %vm7576_vm0, %v3492_v28, 0.0  ;;  %vm7588_vm7 = vmmov %vm7576_vm0 }
 0x29a   :  { %v3508_v3 = vrot.slane %v3507_v2, 4  ;;  %v3415_v31 = vadd.f32 %v3414_v29, %v3413_v27  ;;  %v3433_v19 = vcombine.low %v3401_v37, %v3408_v62  ;;  %v3515_v57 = vrot.slane %v3514_v55, 4  ;;  %vm7589_vm9 = vmmov %vm7576_vm0 }
 0x29b   :  { %v3521_v30 = vsel %vm7577_vm4, %v3493_v23, 0.0  ;;  %v3421_v24 = vrot.slane %v3420_v1, 1  ;;  %v3471_v48 = vrot.slane %v3463_v53, %v7574_v45  ;;  %v3528_v39 = vsel %vm7578_vm2, %v3494_v44, 0.0  ;;  %vm7590_vm12 = vmmov %vm7576_vm0 }
 0x29c   :  { %v3509_v7 = vadd.f32 %v3508_v3, %v3507_v2  ;;  %v3522_v17 = vrot.slane %v3521_v30, 4  ;;  %v3455_v34 = vrot.slane %v3433_v19, %v7574_v45  ;;  %v3516_v61 = vadd.f32 %v3515_v57, %v3514_v55  ;;  %vm7591_vm11 = vmmov %vm7576_vm0 }
 0x29d   :  { %v3535_v5 = vsel %vm7579_vm10, %v3495_v20, 0.0  ;;  %v3422_v14 = vadd.f32 %v3421_v24, %v3420_v1  ;;  %v3529_v0 = vrot.slane %v3528_v39, 4  ;;  %v3542_v46 = vsel %vm7580_vm8, %v3496_v63, 0.0  ;;  %vm7592_vm4 = vmmov %vm7576_vm0 }
 0x29e   :  { %v3510_v42 = vrot.slane %v3509_v7, 2  ;;  %v3523_v22 = vadd.f32 %v3522_v17, %v3521_v30  ;;  %v3517_v59 = vrot.slane %v3516_v61, 2  ;;  %v3536_v33 = vrot.slane %v3535_v5, 4  ;;  %vm7593_vm2 = vmmov %vm7576_vm0 }
 0x29f   :  { %v3549_v26 = vsel %vm7581_vm13, %v3497_v9, 0.0  ;;  %v3434_v13 = vcombine.low %v3415_v31, %v3422_v14  ;;  %v3530_v15 = vadd.f32 %v3529_v0, %v3528_v39  ;;  %v3543_v32 = vrot.slane %v3542_v46, 4  ;;  %vm7594_vm10 = vmmov %vm7576_vm0 }
 0x2a0   :  { %v3511_v52 = vadd.f32 %v3510_v42, %v3509_v7  ;;  %v3524_v56 = vrot.slane %v3523_v22, 2  ;;  %v3518_v41 = vadd.f32 %v3517_v59, %v3516_v61  ;;  %v3537_v54 = vadd.f32 %v3536_v33, %v3535_v5  ;;  %vm7595_vm8 = vmmov %vm7576_vm0 }
 0x2a1   :  { %v3550_v51 = vrot.slane %v3549_v26, 4  ;;  %v3462_v49 = vrot.slane %v3434_v13, %v7574_v45  ;;  %v3531_v21 = vrot.slane %v3530_v15, 2  ;;  %v3544_v28 = vadd.f32 %v3543_v32, %v3542_v46  ;;  %vm7596_vm13 = vmmov %vm7576_vm0 }
 0x2a2   :  { %v3512_v25 = vrot.slane %v3511_v52, 1  ;;  %v3525_v18 = vadd.f32 %v3524_v56, %v3523_v22  ;;  %v3519_v35 = vrot.slane %v3518_v41, 1  ;;  %v3538_v58 = vrot.slane %v3537_v54, 2 }
 0x2a3   :  { %v3551_v37 = vadd.f32 %v3550_v51, %v3549_v26  ;;  %v3464_v4 = vcombine.low %v3455_v34, %v3462_v49  ;;  %v3532_v36 = vadd.f32 %v3531_v21, %v3530_v15  ;;  %v3545_v20 = vrot.slane %v3544_v28, 2 }
 0x2a4   :  { %v3513_v40 = vadd.f32 %v3512_v25, %v3511_v52  ;;  %v3526_v23 = vrot.slane %v3525_v18, 1  ;;  %v3520_v27 = vadd.f32 %v3519_v35, %v3518_v41  ;;  %v3539_v44 = vadd.f32 %v3538_v58, %v3537_v54 }
 0x2a5   :  { %v3552_v16 = vrot.slane %v3551_v37, 2  ;;  %v3478_v11 = vrot.slane %v3464_v4, %v7574_v45  ;;  %v3533_v9 = vrot.slane %v3532_v36, 1  ;;  %v3556_v62 = vsel %vm7582_vm14, %v3498_v10, 0.0  ;;  %vm7597_vm14 = vmmov %vm7576_vm0 }
 0x2a6   :  { %v3527_v63 = vadd.f32 %v3526_v23, %v3525_v18  ;;  %v3540_v29 = vrot.slane %v3539_v44, 1  ;;  %v3546_v2 = vadd.f32 %v3545_v20, %v3544_v28  ;;  %v3557_v53 = vrot.slane %v3556_v62, 4 }
 0x2a7   :  { %v3553_v1 = vadd.f32 %v3552_v16, %v3551_v37  ;;  %v3479_v3 = vcombine.low %v3471_v48, %v3478_v11  ;;  %v3534_v55 = vadd.f32 %v3533_v9, %v3532_v36  ;;  %v3571_v31 = vcombine.low %v3513_v40, %v3520_v27 }
 0x2a8   :  { %v3623_v19 = vsel %vm7583_vm15, %v6667_v38, 0.0  ;;  %v3541_v57 = vadd.f32 %v3540_v29, %v3539_v44  ;;  %v3547_v30 = vrot.slane %v3546_v2, 1  ;;  %v3558_v7 = vadd.f32 %v3557_v53, %v3556_v62 }
 0x2a9   :  { %v3554_v24 = vrot.slane %v3553_v1, 1  ;;  %3482 = vst [vmem:[#allocation5 + $0x60] ss:$4 sm:$0xff] %v3479_v3  ;;  %v3572_v17 = vcombine.low %v3527_v63, %v3534_v55  ;;  %v3581_v34 = vrot.slane %v3571_v31, %v7574_v45  ;;  %v3624_v61 = vrot.slane %v3623_v19, 4 }
 0x2aa   :  { %v3630_v10 = vsel %vm7584_vm1, %v6679_v6, 0.0  ;;  %v3548_v39 = vadd.f32 %v3547_v30, %v3546_v2  ;;  %v3559_v48 = vrot.slane %v3558_v7, 2  ;;  %v3637_v0 = vsel %vm7585_vm3, %v6688_v47, 0.0 }
 0x2ab   :  { %v3555_v5 = vadd.f32 %v3554_v24, %v3553_v1  ;;  %v3631_v14 = vrot.slane %v3630_v10, 4  ;;  %v3588_v42 = vrot.slane %v3572_v17, %v7574_v45  ;;  %v3625_v22 = vadd.f32 %v3624_v61, %v3623_v19 }
 0x2ac   :  { %v3644_v59 = vsel %vm7586_vm5, %v6704_v50, 0.0  ;;  %v3560_v33 = vadd.f32 %v3559_v48, %v3558_v7  ;;  %v3573_v46 = vcombine.low %v3541_v57, %v3548_v39  ;;  %v3638_v13 = vrot.slane %v3637_v0, 4 }
 0x2ad   :  { %v3632_v26 = vadd.f32 %v3631_v14, %v3630_v10  ;;  %v3603_v52 = vcombine.low %v3581_v34, %v3588_v42  ;;  %v3626_v56 = vrot.slane %v3625_v22, 2  ;;  %v3645_v15 = vrot.slane %v3644_v59, 4 }
 0x2ae   :  { %v3651_v41 = vsel %vm7587_vm6, %v6716_v12, 0.0  ;;  %v3561_v54 = vrot.slane %v3560_v33, 1  ;;  %v3595_v32 = vrot.slane %v3573_v46, %v7574_v45  ;;  %v3639_v49 = vadd.f32 %v3638_v13, %v3637_v0 }
 0x2af   :  { %v3633_v51 = vrot.slane %v3632_v26, 2  ;;  %v3611_v25 = vrot.slane %v3603_v52, %v7574_v45  ;;  %v3627_v18 = vadd.f32 %v3626_v56, %v3625_v22  ;;  %v3646_v21 = vadd.f32 %v3645_v15, %v3644_v59 }
 0x2b0   :  { %v3652_v35 = vrot.slane %v3651_v41, 4  ;;  %v3562_v58 = vadd.f32 %v3561_v54, %v3560_v33  ;;  %v3640_v37 = vrot.slane %v3639_v49, 2  ;;  %v3658_v4 = vsel %vm7588_vm7, %v6725_v8, 0.0 }
 0x2b1   :  { %v3634_v28 = vadd.f32 %v3633_v51, %v3632_v26  ;;  %v3628_v40 = vrot.slane %v3627_v18, 1  ;;  %v3647_v23 = vrot.slane %v3646_v21, 2  ;;  %v3659_v27 = vrot.slane %v3658_v4, 4 }
 0x2b2   :  { %v3653_v36 = vadd.f32 %v3652_v35, %v3651_v41  ;;  %v3574_v44 = vcombine.low %v3555_v5, %v3562_v58  ;;  %v3641_v16 = vadd.f32 %v3640_v37, %v3639_v49  ;;  %v3665_v11 = vsel %vm7589_vm9, %v6735_v60, 0.0 }
 0x2b3   :  { %v3635_v20 = vrot.slane %v3634_v28, 1  ;;  %v3629_v63 = vadd.f32 %v3628_v40, %v3627_v18  ;;  %v3648_v9 = vadd.f32 %v3647_v23, %v3646_v21  ;;  %v3660_v29 = vadd.f32 %v3659_v27, %v3658_v4 }
 0x2b4   :  { %v3654_v62 = vrot.slane %v3653_v36, 2  ;;  %v3602_v2 = vrot.slane %v3574_v44, %v7574_v45  ;;  %v3642_v53 = vrot.slane %v3641_v16, 1  ;;  %v3666_v3 = vrot.slane %v3665_v11, 4 }
 0x2b5   :  { %v3636_v1 = vadd.f32 %v3635_v20, %v3634_v28  ;;  %v3649_v55 = vrot.slane %v3648_v9, 1  ;;  %v3661_v19 = vrot.slane %v3660_v29, 2  ;;  %v3672_v57 = vsel %vm7590_vm12, %v6743_v43, 0.0 }
 0x2b6   :  { %v3655_v31 = vadd.f32 %v3654_v62, %v3653_v36  ;;  %v3604_v30 = vcombine.low %v3595_v32, %v3602_v2  ;;  %v3643_v24 = vadd.f32 %v3642_v53, %v3641_v16  ;;  %v3667_v7 = vadd.f32 %v3666_v3, %v3665_v11 }
 0x2b7   :  { %v3673_v17 = vrot.slane %v3672_v57, 4  ;;  %v3650_v34 = vadd.f32 %v3649_v55, %v3648_v9  ;;  %v3662_v10 = vadd.f32 %v3661_v19, %v3660_v29  ;;  %v3687_v39 = vcombine.low %v3629_v63, %v3636_v1 }
 0x2b8   :  { %v3656_v61 = vrot.slane %v3655_v31, 1  ;;  %v3618_v5 = vrot.slane %v3604_v30, %v7574_v45  ;;  %v3668_v48 = vrot.slane %v3667_v7, 2  ;;  %v3747_v42 = vrot.slane %v6667_v38, 4 }
 0x2b9   :  { %v3674_v14 = vadd.f32 %v3673_v17, %v3672_v57  ;;  %v3663_v0 = vrot.slane %v3662_v10, 1  ;;  %v3688_v59 = vcombine.low %v3643_v24, %v3650_v34  ;;  %v3697_v33 = vrot.slane %v3687_v39, %v7574_v45 }
 0x2ba   :  { %v3657_v22 = vadd.f32 %v3656_v61, %v3655_v31  ;;  %v3619_v46 = vcombine.low %v3611_v25, %v3618_v5  ;;  %v3669_v26 = vadd.f32 %v3668_v48, %v3667_v7  ;;  %v3748_v52 = vrot.slane %v6679_v6, 4 }
 0x2bb   :  { %v3675_v13 = vrot.slane %v3674_v14, 2  ;;  %v3664_v56 = vadd.f32 %v3663_v0, %v3662_v10  ;;  %v3704_v15 = vrot.slane %v3688_v59, %v7574_v45  ;;  %v3749_v41 = vrot.slane %v6688_v47, 4 }
 0x2bc   :  { %v3750_v54 = vrot.slane %v6704_v50, 4  ;;  %3622 = vst [vmem:[#allocation5 + $0x61] ss:$4 sm:$0xff] %v3619_v46  ;;  %v3670_v32 = vrot.slane %v3669_v26, 1  ;;  %v3751_v51 = vrot.slane %v6716_v12, 4  ;;  %v3752_v49 = vrot.slane %v6725_v8, 4 }
 0x2bd   :  { %v3676_v38 = vadd.f32 %v3675_v13, %v3674_v14  ;;  %v3689_v18 = vcombine.low %v3657_v22, %v3664_v56  ;;  %v3719_v25 = vcombine.low %v3697_v33, %v3704_v15  ;;  %v3753_v21 = vrot.slane %v6735_v60, 4 }
 0x2be   :  { %v3754_v6 = vrot.slane %v6743_v43, 4  ;;  %v3671_v35 = vadd.f32 %v3670_v32, %v3669_v26  ;;  %v3763_v28 = vsel %vm7591_vm11, %v3747_v42, 0.0  ;;  %v3770_v47 = vsel %vm7576_vm0, %v3748_v52, 0.0 }
 0x2bf   :  { %v3677_v58 = vrot.slane %v3676_v38, 1  ;;  %v3711_v50 = vrot.slane %v3689_v18, %v7574_v45  ;;  %v3727_v37 = vrot.slane %v3719_v25, %v7574_v45  ;;  %v3764_v4 = vrot.slane %v3763_v28, 4 }
 0x2c0   :  { %v3771_v12 = vrot.slane %v3770_v47, 4  ;;  %v3777_v8 = vsel %vm7592_vm4, %v3749_v41, 0.0  ;;  %v3784_v23 = vsel %vm7593_vm2, %v3750_v54, 0.0  ;;  %v3791_v60 = vsel %vm7594_vm10, %v3751_v51, 0.0 }
 0x2c1   :  { %v3678_v40 = vadd.f32 %v3677_v58, %v3676_v38  ;;  %v3765_v43 = vadd.f32 %v3764_v4, %v3763_v28  ;;  %v3778_v27 = vrot.slane %v3777_v8, 4  ;;  %v3785_v44 = vrot.slane %v3784_v23, 4 }
 0x2c2   :  { %v3772_v36 = vadd.f32 %v3771_v12, %v3770_v47  ;;  %v3792_v16 = vrot.slane %v3791_v60, 4  ;;  %v3798_v11 = vsel %vm7595_vm8, %v3752_v49, 0.0  ;;  %v3805_v63 = vsel %vm7596_vm13, %v3753_v21, 0.0 }
 0x2c3   :  { %v3690_v20 = vcombine.low %v3671_v35, %v3678_v40  ;;  %v3766_v9 = vrot.slane %v3765_v43, 2  ;;  %v3779_v29 = vadd.f32 %v3778_v27, %v3777_v8  ;;  %v3786_v2 = vadd.f32 %v3785_v44, %v3784_v23 }
 0x2c4   :  { %v3773_v62 = vrot.slane %v3772_v36, 2  ;;  %v3793_v53 = vadd.f32 %v3792_v16, %v3791_v60  ;;  %v3799_v3 = vrot.slane %v3798_v11, 4  ;;  %v3806_v55 = vrot.slane %v3805_v63, 4 }
 0x2c5   :  { %v3718_v1 = vrot.slane %v3690_v20, %v7574_v45  ;;  %v3767_v31 = vadd.f32 %v3766_v9, %v3765_v43  ;;  %v3780_v57 = vrot.slane %v3779_v29, 2  ;;  %v3787_v30 = vrot.slane %v3786_v2, 2 }
 0x2c6   :  { %v3774_v19 = vadd.f32 %v3773_v62, %v3772_v36  ;;  %v3794_v7 = vrot.slane %v3793_v53, 2  ;;  %v3800_v17 = vadd.f32 %v3799_v3, %v3798_v11  ;;  %v3807_v34 = vadd.f32 %v3806_v55, %v3805_v63 }
 0x2c7   :  { %v3720_v24 = vcombine.low %v3711_v50, %v3718_v1  ;;  %v3768_v61 = vrot.slane %v3767_v31, 1  ;;  %v3781_v39 = vadd.f32 %v3780_v57, %v3779_v29  ;;  %v3788_v5 = vadd.f32 %v3787_v30, %v3786_v2 }
 0x2c8   :  { %v3775_v10 = vrot.slane %v3774_v19, 1  ;;  %v3795_v14 = vadd.f32 %v3794_v7, %v3793_v53  ;;  %v3801_v42 = vrot.slane %v3800_v17, 2  ;;  %v3808_v22 = vrot.slane %v3807_v34, 2 }
 0x2c9   :  { %v3734_v48 = vrot.slane %v3720_v24, %v7574_v45  ;;  %v3782_v0 = vrot.slane %v3781_v39, 1  ;;  %v3789_v59 = vrot.slane %v3788_v5, 1  ;;  %v3769_v46 = vadd.f32 %v3768_v61, %v3767_v31 }
 0x2ca   :  { %v3802_v26 = vadd.f32 %v3801_v42, %v3800_v17  ;;  %v3776_v13 = vadd.f32 %v3775_v10, %v3774_v19  ;;  %v3796_v52 = vrot.slane %v3795_v14, 1  ;;  %v3809_v56 = vadd.f32 %v3808_v22, %v3807_v34 }
 0x2cb   :  { %v3735_v33 = vcombine.low %v3727_v37, %v3734_v48  ;;  %v3812_v15 = vsel %vm7597_vm14, %v3754_v6, 0.0  ;;  %v3783_v41 = vadd.f32 %v3782_v0, %v3781_v39  ;;  %v3790_v54 = vadd.f32 %v3789_v59, %v3788_v5 }
 0x2cc   :  { %v3803_v32 = vrot.slane %v3802_v26, 1  ;;  %v3813_v38 = vrot.slane %v3812_v15, 4  ;;  %v3797_v49 = vadd.f32 %v3796_v52, %v3795_v14  ;;  %v3827_v18 = vcombine.low %v3769_v46, %v3776_v13 }
 0x2cd   :  { %3738 = vst [vmem:[#allocation5 + $0x62] ss:$4 sm:$0xff] %v3735_v33  ;;  %v3810_v21 = vrot.slane %v3809_v56, 1  ;;  %v3828_v58 = vcombine.low %v3783_v41, %v3790_v54 }
 0x2ce   :  { %v3814_v51 = vadd.f32 %v3813_v38, %v3812_v15  ;;  %v3804_v25 = vadd.f32 %v3803_v32, %v3802_v26  ;;  %v3837_v47 = vrot.slane %v3827_v18, %v7574_v45 }
 0x2cf   :  { %v3811_v50 = vadd.f32 %v3810_v21, %v3809_v56  ;;  %v3844_v6 = vrot.slane %v3828_v58, %v7574_v45 }
 0x2d0   :  { %v3815_v35 = vrot.slane %v3814_v51, 2  ;;  %v3829_v4 = vcombine.low %v3797_v49, %v3804_v25 }
 0x2d1   :  { %v3859_v23 = vcombine.low %v3837_v47, %v3844_v6 }
 0x2d2   :  { %v3816_v28 = vadd.f32 %v3815_v35, %v3814_v51  ;;  %v3851_v8 = vrot.slane %v3829_v4, %v7574_v45 }
 0x2d3   :  { %v3867_v36 = vrot.slane %v3859_v23, %v7574_v45 }
 0x2d4   :  { %v3817_v37 = vrot.slane %v3816_v28, 1 }
 0x2d6   :  { %v3818_v12 = vadd.f32 %v3817_v37, %v3816_v28 }
 0x2d8   :  { %v3830_v40 = vcombine.low %v3811_v50, %v3818_v12 }
 0x2da   :  { %v3858_v60 = vrot.slane %v3830_v40, %v7574_v45 }
 0x2dc   :  { %v3860_v43 = vcombine.low %v3851_v8, %v3858_v60 }
 0x2de   :  { %v3874_v27 = vrot.slane %v3860_v43, %v7574_v45 }
 0x2e0   :  { %v3875_v44 = vcombine.low %v3867_v36, %v3874_v27 }
 0x2e2   :  { %3878 = vst [vmem:[#allocation5 + $0x63] ss:$4 sm:$0xff] %v3875_v44 }
 0x2e3   :  { %4073 = shalt.err (!%p4070_p12)
}
 0x2e4   :  { %s4074_s24 = scalar_lea.hbm %s6832_s1, 2048 }
 0x2e5   :  { %p4075_p13 = scmp.ne.s32.totalorder %s6832_s1, %s4074_s24  ;;  %p4078_p0 = scmp.lt.u32.totalorder %s4074_s24, %s6832_s1 }
 0x2e7   :  { %p4080_p1 = pnand %p4078_p0, %p4075_p13 }
 0x2e9   :  { %4083 = shalt.err (!%p4080_p1)
}
 0x2ea   :  { %s4093_s29 = smov 512   ;;  %s4094_s30 = smov 32  }
 0x2eb   :  { %3890 = dma.vmem_to_hbm [thread:$0]  %s3885_s20, 2048, %s6832_s1, [#allocation4], %s4093_s29, %s4093_s29, %s4094_s30  }
 0x2ec   :  { %4086 = dma.done.wait [#allocation4], 2048  }
 0x2ed   :  { %4087 = vsyncadd [#allocation4], 4294965248 }
 0x2ee   :  { %3894 = vsyncpa [#allocation3], 1 }
 0x2ef   :  { %3895 = vsyncpa [#allocation4], 1 }

</bundles_post_ra>
